<compile_context>
chip_gen: v6e
topology: v6e:2x2x1
jax: 0.10.0
libtpu: 0.0.40
codegen_flags: <defaults>
</compile_context>

<pallas_src>
import functools

import jax
import jax.numpy as jnp
from jax.experimental import pallas as pl
from jax.experimental.pallas import tpu as pltpu

# ----------------------------- model dimensions ------------------------------
B        = 2                      # image batch
IMG_C    = 3                      # channels
IMG_HW   = 32                     # spatial size
PATCH    = 16                     # patch size  -> 2x2 = 4 patches
GRID     = IMG_HW // PATCH
NP       = GRID * GRID
SV       = NP + 1                 # vision sequence (patches + CLS)
CPP      = IMG_C * PATCH * PATCH  # flattened patch length (768)
D        = 64                     # hidden size
HEADS    = 2
DH       = D // HEADS
MLP      = 128                    # MLP intermediate size
P        = 32                     # joint projection dim
NUM_CLS  = 4                      # number of class prompts ("text batch")
ST       = 8                      # text sequence length
VOCAB    = 64                     # synthetic vocab
NEG_INF  = -1e9

_VMEM = pltpu.MemorySpace.VMEM
_SMEM = pltpu.MemorySpace.SMEM

_LAYER_KEYS = ("ln1_g", "ln1_b", "wqkv", "bqkv", "wo", "bo",
               "ln2_g", "ln2_b", "w1", "b1", "w2", "b2")


# --------------------------- in-kernel math helpers ---------------------------
def _ln(x, g, b, eps=1e-5):
    mu = jnp.mean(x, axis=-1, keepdims=True)
    var = jnp.mean((x - mu) ** 2, axis=-1, keepdims=True)
    return (x - mu) * jax.lax.rsqrt(var + eps) * g + b


def _encoder_block(h, lp, mask, qkv_scr):
    """Pre-LN transformer block on a flat (N, D) activation.

    `lp` holds parameter *refs*; `mask` is a block-diagonal (optionally causal)
    additive mask so the whole batch*seq token stream goes through one fused
    matmul per head instead of a per-(batch, head) grid loop.
    """
    res = h
    hn = _ln(h, lp["ln1_g"][...], lp["ln1_b"][...])

    # Fused QKV projection: one (N, D) @ (D, 3D) MXU pass, staged through a VMEM
    # scratch so per-head q/k/v are plain ref-slice loads.
    qkv_scr[...] = (jnp.dot(hn, lp["wqkv"][...], preferred_element_type=jnp.float32)
                    + lp["bqkv"][...])

    scale = DH ** -0.5
    attn = None
    for hh in range(HEADS):                       # static unroll (HEADS == 2)
        q = qkv_scr[:, hh * DH:(hh + 1) * DH] * scale
        k = qkv_scr[:, D + hh * DH:D + (hh + 1) * DH]
        v = qkv_scr[:, 2 * D + hh * DH:2 * D + (hh + 1) * DH]
        s = jnp.dot(q, k.T, preferred_element_type=jnp.float32) + mask
        s = s - jnp.max(s, axis=-1, keepdims=True)
        e = jnp.exp(s)
        p = e * pl.reciprocal(jnp.sum(e, axis=-1, keepdims=True), approx=False)
        o = jnp.dot(p, v, preferred_element_type=jnp.float32)              # (N, DH)
        # Out-projection applied per head via its (DH, D) row-block of wo.
        c = jnp.dot(o, lp["wo"][hh], preferred_element_type=jnp.float32)   # (N, D)
        attn = c if attn is None else attn + c
    h = res + attn + lp["bo"][...]

    res = h
    hn = _ln(h, lp["ln2_g"][...], lp["ln2_b"][...])
    m = jnp.dot(hn, lp["w1"][...], preferred_element_type=jnp.float32) + lp["b1"][...]
    m = m * jax.nn.sigmoid(1.702 * m)            # QuickGELU (EUP transcendental)
    return res + jnp.dot(m, lp["w2"][...], preferred_element_type=jnp.float32) + lp["b2"][...]


# ------------------------------- fused kernels --------------------------------
def _tower_kernel(*refs, is_vision):
    """Entire CLIP tower in one kernel: embed -> transformer block -> pool -> proj."""
    if is_vision:
        (x_ref, wemb_ref, pos_ref, mask_ref, sel_ref, pre_g, pre_b,
         *layer_refs, post_g, post_b, wproj_ref, out_ref, qkv_scr) = refs
    else:
        (x_ref, wemb_ref, pos_ref, mask_ref, sel_ref,
         *layer_refs, fin_g, fin_b, wproj_ref, out_ref, qkv_scr) = refs
    lp = dict(zip(_LAYER_KEYS, layer_refs))

    # Embedding: patch-conv-as-matmul (vision) / one-hot token lookup (text);
    # positional embeddings (with the CLS token folded into row 0) added on top.
    h = jnp.dot(x_ref[...], wemb_ref[...], preferred_element_type=jnp.float32)
    h = h + pos_ref[...]

    if is_vision:
        h = _ln(h, pre_g[...], pre_b[...])                       # pre_layrnorm

    h = _encoder_block(h, lp, mask_ref[...], qkv_scr)

    if is_vision:
        pooled = jnp.dot(sel_ref[...], h, preferred_element_type=jnp.float32)  # CLS rows
        pooled = _ln(pooled, post_g[...], post_b[...])           # post_layernorm
    else:
        h = _ln(h, fin_g[...], fin_b[...])                       # final_layer_norm
        pooled = jnp.dot(sel_ref[...], h, preferred_element_type=jnp.float32)  # EOS rows

    out_ref[...] = jnp.dot(pooled, wproj_ref[...],
                           preferred_element_type=jnp.float32).astype(out_ref.dtype)


def _head_kernel(img_ref, txt_ref, scale_ref, y_ref, logits_ref, loss_ref):
    """L2-normalize, logits_per_image = scale * img @ txt.T, mean cross-entropy."""
    img = img_ref[...]
    txt = txt_ref[...]
    img_n = img * jax.lax.rsqrt(jnp.maximum(jnp.sum(img * img, -1, keepdims=True), 1e-12))
    txt_n = txt * jax.lax.rsqrt(jnp.maximum(jnp.sum(txt * txt, -1, keepdims=True), 1e-12))
    logits = scale_ref[0, 0] * jnp.dot(img_n, txt_n.T, preferred_element_type=jnp.float32)
    logits_ref[...] = logits.astype(logits_ref.dtype)
    m = jnp.max(logits, axis=-1, keepdims=True)
    lse = jnp.log(jnp.sum(jnp.exp(logits - m), axis=-1, keepdims=True)) + m
    logp = logits - lse
    loss_ref[...] = -jnp.sum(y_ref[...] * logp, keepdims=True) / img.shape[0]


# ------------------------------ pallas_call wrappers ---------------------------
def _layer_args(lp):
    return [
        lp["ln1_g"].reshape(1, D), lp["ln1_b"].reshape(1, D),
        lp["wqkv"], lp["bqkv"].reshape(1, 3 * D),
        lp["wo"].reshape(HEADS, DH, D), lp["bo"].reshape(1, D),
        lp["ln2_g"].reshape(1, D), lp["ln2_b"].reshape(1, D),
        lp["w1"], lp["b1"].reshape(1, MLP),
        lp["w2"], lp["b2"].reshape(1, D),
    ]


def _run_tower(args, n_rows, n_out_rows, is_vision):
    return pl.pallas_call(
        functools.partial(_tower_kernel, is_vision=is_vision),
        out_shape=jax.ShapeDtypeStruct((n_out_rows, P), jnp.float32),
        in_specs=[pl.BlockSpec(memory_space=_VMEM)] * len(args),
        out_specs=pl.BlockSpec(memory_space=_VMEM),
        scratch_shapes=[pltpu.VMEM((n_rows, 3 * D), jnp.float32)],
    )(*args)


def _run_head(img_emb, txt_emb, scale, onehot_labels):
    return pl.pallas_call(
        _head_kernel,
        out_shape=(
            jax.ShapeDtypeStruct((img_emb.shape[0], txt_emb.shape[0]), jnp.float32),
            jax.ShapeDtypeStruct((1, 1), jnp.float32),
        ),
        in_specs=[
            pl.BlockSpec(memory_space=_VMEM),
            pl.BlockSpec(memory_space=_VMEM),
            pl.BlockSpec(memory_space=_SMEM),
            pl.BlockSpec(memory_space=_VMEM),
        ],
        out_specs=(
            pl.BlockSpec(memory_space=_VMEM),
            pl.BlockSpec(memory_space=_VMEM),
        ),
    )(img_emb, txt_emb, scale, onehot_labels)


def _block_mask(nb, seq, causal):
    """Block-diagonal (optionally causal-within-block) additive mask, (nb*seq,)^2."""
    idx = jnp.arange(nb * seq)
    same_block = (idx[:, None] // seq) == (idx[None, :] // seq)
    if causal:
        allowed = same_block & (idx[None, :] <= idx[:, None])
    else:
        allowed = same_block
    return jnp.where(allowed, 0.0, NEG_INF).astype(jnp.float32)


# ------------------------------- parameter init --------------------------------
def _init_layer(ks):
    def nrm(shape):
        return (0.02 * jax.random.normal(next(ks), shape)).astype(jnp.float32)

    zeros = lambda n: jnp.zeros((n,), jnp.float32)
    ones = lambda n: jnp.ones((n,), jnp.float32)
    return dict(
        ln1_g=ones(D), ln1_b=zeros(D),
        wqkv=nrm((D, 3 * D)), bqkv=zeros(3 * D),   # fused Q|K|V projection
        wo=nrm((D, D)), bo=zeros(D),
        ln2_g=ones(D), ln2_b=zeros(D),
        w1=nrm((D, MLP)), b1=zeros(MLP),
        w2=nrm((MLP, D)), b2=zeros(D),
    )


def init_params(key):
    ks = iter(jax.random.split(key, 64))

    def nrm(shape):
        return (0.02 * jax.random.normal(next(ks), shape)).astype(jnp.float32)

    zeros = lambda n: jnp.zeros((n,), jnp.float32)
    ones = lambda n: jnp.ones((n,), jnp.float32)
    return dict(
        # vision tower
        v_patch_w=nrm((CPP, D)),         # conv(3->D, k=16, s=16, no bias) as matmul
        v_cls=nrm((D,)),
        v_pos=nrm((SV, D)),
        v_pre_g=ones(D), v_pre_b=zeros(D),
        v_layer=_init_layer(ks),
        v_post_g=ones(D), v_post_b=zeros(D),
        v_proj=nrm((D, P)),              # no bias (as in CLIP)
        # text tower
        t_tok=nrm((VOCAB, D)),
        t_pos=nrm((ST, D)),
        t_layer=_init_layer(ks),
        t_final_g=ones(D), t_final_b=zeros(D),
        t_proj=nrm((D, P)),              # no bias
        # learned temperature, CLIP init = log(1/0.07)
        logit_scale=jnp.asarray(2.6592641, jnp.float32),
    )


# --------------------------------- full forward --------------------------------
@jax.jit
def clip_forward(params, pixel_values, input_ids, labels):
    # ---- vision tower: conv(3->D, k=16, s=16) == patch flatten + matmul ----
    x = pixel_values.reshape(B, IMG_C, GRID, PATCH, GRID, PATCH)
    x = x.transpose(0, 2, 4, 1, 3, 5).reshape(B, NP, CPP)
    # prepend an all-zero "CLS" pixel row per image; its embedding comes from the
    # class token folded into position row 0 below.
    x_full = jnp.concatenate([jnp.zeros((B, 1, CPP), jnp.float32), x], axis=1)
    x_full = x_full.reshape(B * SV, CPP)
    pos_v = params["v_pos"].at[0].add(params["v_cls"])      # CLS token + pos[0]
    pos_full_v = jnp.tile(pos_v, (B, 1))                    # (B*SV, D)
    sel_v = jax.nn.one_hot(jnp.arange(B) * SV, B * SV, dtype=jnp.float32)   # CLS pooling
    mask_v = _block_mask(B, SV, causal=False)

    vp = params["v_layer"]
    vision_args = [x_full, params["v_patch_w"], pos_full_v, mask_v, sel_v,
                   params["v_pre_g"].reshape(1, D), params["v_pre_b"].reshape(1, D),
                   *_layer_args(vp),
                   params["v_post_g"].reshape(1, D), params["v_post_b"].reshape(1, D),
                   params["v_proj"]]
    image_embeds = _run_tower(vision_args, B * SV, B, is_vision=True)

    # ---- text encoder over the NUM_CLS class prompts ----
    onehot_tok = jax.nn.one_hot(input_ids.reshape(-1), VOCAB, dtype=jnp.float32)  # (C*ST, V)
    pos_full_t = jnp.tile(params["t_pos"], (NUM_CLS, 1))                          # (C*ST, D)
    # TODO(synk): real CLIP pools the hidden state at the EOS-token position; with
    # synthetic (unpadded) prompts we pool the last token of each prompt.
    sel_t = jax.nn.one_hot(jnp.arange(NUM_CLS) * ST + (ST - 1), NUM_CLS * ST,
                           dtype=jnp.float32)
    mask_t = _block_mask(NUM_CLS, ST, causal=True)

    tp = params["t_layer"]
    text_args = [onehot_tok, params["t_tok"], pos_full_t, mask_t, sel_t,
                 *_layer_args(tp),
                 params["t_final_g"].reshape(1, D), params["t_final_b"].reshape(1, D),
                 params["t_proj"]]
    # TODO(synk): on v7x the independent vision/text towers could be placed on the
    # two TensorCores (pl.core_map over a tensorcore mesh); kept sequential here.
    text_embeds = _run_tower(text_args, NUM_CLS * ST, NUM_CLS, is_vision=False)

    # ---- logits_per_image + cross-entropy (one kernel) ----
    onehot_lbl = jax.nn.one_hot(labels, NUM_CLS, dtype=jnp.float32)
    scale = jnp.exp(params["logit_scale"]).reshape(1, 1)
    logits, loss = _run_head(image_embeds, text_embeds, scale, onehot_lbl)
    return loss[0, 0], logits


# ------------------------------------ main -------------------------------------
if __name__ == "__main__":
    key = jax.random.PRNGKey(0)
    k_param, k_img, k_ids = jax.random.split(key, 3)

    params = init_params(k_param)

    pixel_values = jax.random.normal(k_img, (B, IMG_C, IMG_HW, IMG_HW), jnp.float32)
    # synthetic tokenized "a photo of a {class}" prompts (processor/tokenizer unavailable)
    input_ids = jax.random.randint(k_ids, (NUM_CLS, ST), 0, VOCAB, dtype=jnp.int32)
    labels = jnp.array([0, 2], dtype=jnp.int32)

    loss, logits = clip_forward(params, pixel_values, input_ids, labels)
    jax.block_until_ready((loss, logits))

    assert logits.shape == (B, NUM_CLS)
    assert loss.shape == ()
    print("KERNEL_OK")
</pallas_src>

<mosaic_0001>
module attributes {stable_mosaic.version = 11 : i64} {
  func.func @_tower_kernel(%arg0: memref<10x768xf32, #tpu.memory_space<vmem>>, %arg1: memref<768x64xf32, #tpu.memory_space<vmem>>, %arg2: memref<10x64xf32, #tpu.memory_space<vmem>>, %arg3: memref<10x10xf32, #tpu.memory_space<vmem>>, %arg4: memref<2x10xf32, #tpu.memory_space<vmem>>, %arg5: memref<1x64xf32, #tpu.memory_space<vmem>>, %arg6: memref<1x64xf32, #tpu.memory_space<vmem>>, %arg7: memref<1x64xf32, #tpu.memory_space<vmem>>, %arg8: memref<1x64xf32, #tpu.memory_space<vmem>>, %arg9: memref<64x192xf32, #tpu.memory_space<vmem>>, %arg10: memref<1x192xf32, #tpu.memory_space<vmem>>, %arg11: memref<2x32x64xf32, #tpu.memory_space<vmem>>, %arg12: memref<1x64xf32, #tpu.memory_space<vmem>>, %arg13: memref<1x64xf32, #tpu.memory_space<vmem>>, %arg14: memref<1x64xf32, #tpu.memory_space<vmem>>, %arg15: memref<64x128xf32, #tpu.memory_space<vmem>>, %arg16: memref<1x128xf32, #tpu.memory_space<vmem>>, %arg17: memref<128x64xf32, #tpu.memory_space<vmem>>, %arg18: memref<1x64xf32, #tpu.memory_space<vmem>>, %arg19: memref<1x64xf32, #tpu.memory_space<vmem>>, %arg20: memref<1x64xf32, #tpu.memory_space<vmem>>, %arg21: memref<64x32xf32, #tpu.memory_space<vmem>>, %arg22: memref<2x32xf32, #tpu.memory_space<vmem>>, %arg23: memref<10x192xf32, #tpu.memory_space<vmem>>) attributes {dimension_semantics = [], scalar_prefetch = 0 : i64, scratch_operands = 1 : i64, tpu.core_type = #tpu.core_type<tc>} {
    %c0 = arith.constant 0 : index
    %c0_0 = arith.constant 0 : index
    %0 = vector.load %arg0[%c0, %c0_0] : memref<10x768xf32, #tpu.memory_space<vmem>>, vector<10x768xf32>
    %c0_1 = arith.constant 0 : index
    %c0_2 = arith.constant 0 : index
    %1 = vector.load %arg1[%c0_1, %c0_2] : memref<768x64xf32, #tpu.memory_space<vmem>>, vector<768x64xf32>
    %cst = arith.constant dense<0.000000e+00> : vector<10x64xf32>
    %2 = tpu.matmul %0, %1, %cst {dimension_numbers = #tpu.dot_dimension_numbers<[1], [0], [0], [1], [0, 0, 1, 1], [], []>} : vector<10x768xf32>, vector<768x64xf32>, vector<10x64xf32> -> vector<10x64xf32>
    %c0_3 = arith.constant 0 : index
    %c0_4 = arith.constant 0 : index
    %3 = vector.load %arg2[%c0_3, %c0_4] : memref<10x64xf32, #tpu.memory_space<vmem>>, vector<10x64xf32>
    %4 = arith.addf %2, %3 : vector<10x64xf32>
    %c0_5 = arith.constant 0 : index
    %c0_6 = arith.constant 0 : index
    %5 = vector.load %arg5[%c0_5, %c0_6] : memref<1x64xf32, #tpu.memory_space<vmem>>, vector<1x64xf32>
    %c0_7 = arith.constant 0 : index
    %c0_8 = arith.constant 0 : index
    %6 = vector.load %arg6[%c0_7, %c0_8] : memref<1x64xf32, #tpu.memory_space<vmem>>, vector<1x64xf32>
    %cst_9 = arith.constant dense<0.000000e+00> : vector<10xf32>
    %7 = vector.multi_reduction <add>, %4, %cst_9 [1] : vector<10x64xf32> to vector<10xf32>
    %8 = vector.shape_cast %7 : vector<10xf32> to vector<10x1xf32>
    %cst_10 = arith.constant 6.400000e+01 : f32
    %9 = vector.broadcast %cst_10 : f32 to vector<10x1xf32>
    %10 = arith.divf %8, %9 : vector<10x1xf32>
    %11 = vector.broadcast %10 : vector<10x1xf32> to vector<10x64xf32>
    %12 = arith.subf %4, %11 : vector<10x64xf32>
    %13 = arith.mulf %12, %12 : vector<10x64xf32>
    %cst_11 = arith.constant dense<0.000000e+00> : vector<10xf32>
    %14 = vector.multi_reduction <add>, %13, %cst_11 [1] : vector<10x64xf32> to vector<10xf32>
    %15 = vector.shape_cast %14 : vector<10xf32> to vector<10x1xf32>
    %cst_12 = arith.constant 6.400000e+01 : f32
    %16 = vector.broadcast %cst_12 : f32 to vector<10x1xf32>
    %17 = arith.divf %15, %16 : vector<10x1xf32>
    %18 = vector.broadcast %10 : vector<10x1xf32> to vector<10x64xf32>
    %19 = arith.subf %4, %18 : vector<10x64xf32>
    %cst_13 = arith.constant 9.99999974E-6 : f32
    %20 = vector.broadcast %cst_13 : f32 to vector<10x1xf32>
    %21 = arith.addf %17, %20 : vector<10x1xf32>
    %22 = math.rsqrt %21 : vector<10x1xf32>
    %23 = vector.broadcast %22 : vector<10x1xf32> to vector<10x64xf32>
    %24 = arith.mulf %19, %23 : vector<10x64xf32>
    %25 = vector.broadcast %5 : vector<1x64xf32> to vector<10x64xf32>
    %26 = arith.mulf %24, %25 : vector<10x64xf32>
    %27 = vector.broadcast %6 : vector<1x64xf32> to vector<10x64xf32>
    %28 = arith.addf %26, %27 : vector<10x64xf32>
    %c0_14 = arith.constant 0 : index
    %c0_15 = arith.constant 0 : index
    %29 = vector.load %arg3[%c0_14, %c0_15] : memref<10x10xf32, #tpu.memory_space<vmem>>, vector<10x10xf32>
    %c0_16 = arith.constant 0 : index
    %c0_17 = arith.constant 0 : index
    %30 = vector.load %arg7[%c0_16, %c0_17] : memref<1x64xf32, #tpu.memory_space<vmem>>, vector<1x64xf32>
    %c0_18 = arith.constant 0 : index
    %c0_19 = arith.constant 0 : index
    %31 = vector.load %arg8[%c0_18, %c0_19] : memref<1x64xf32, #tpu.memory_space<vmem>>, vector<1x64xf32>
    %cst_20 = arith.constant dense<0.000000e+00> : vector<10xf32>
    %32 = vector.multi_reduction <add>, %28, %cst_20 [1] : vector<10x64xf32> to vector<10xf32>
    %33 = vector.shape_cast %32 : vector<10xf32> to vector<10x1xf32>
    %cst_21 = arith.constant 6.400000e+01 : f32
    %34 = vector.broadcast %cst_21 : f32 to vector<10x1xf32>
    %35 = arith.divf %33, %34 : vector<10x1xf32>
    %36 = vector.broadcast %35 : vector<10x1xf32> to vector<10x64xf32>
    %37 = arith.subf %28, %36 : vector<10x64xf32>
    %38 = arith.mulf %37, %37 : vector<10x64xf32>
    %cst_22 = arith.constant dense<0.000000e+00> : vector<10xf32>
    %39 = vector.multi_reduction <add>, %38, %cst_22 [1] : vector<10x64xf32> to vector<10xf32>
    %40 = vector.shape_cast %39 : vector<10xf32> to vector<10x1xf32>
    %cst_23 = arith.constant 6.400000e+01 : f32
    %41 = vector.broadcast %cst_23 : f32 to vector<10x1xf32>
    %42 = arith.divf %40, %41 : vector<10x1xf32>
    %43 = vector.broadcast %35 : vector<10x1xf32> to vector<10x64xf32>
    %44 = arith.subf %28, %43 : vector<10x64xf32>
    %cst_24 = arith.constant 9.99999974E-6 : f32
    %45 = vector.broadcast %cst_24 : f32 to vector<10x1xf32>
    %46 = arith.addf %42, %45 : vector<10x1xf32>
    %47 = math.rsqrt %46 : vector<10x1xf32>
    %48 = vector.broadcast %47 : vector<10x1xf32> to vector<10x64xf32>
    %49 = arith.mulf %44, %48 : vector<10x64xf32>
    %50 = vector.broadcast %30 : vector<1x64xf32> to vector<10x64xf32>
    %51 = arith.mulf %49, %50 : vector<10x64xf32>
    %52 = vector.broadcast %31 : vector<1x64xf32> to vector<10x64xf32>
    %53 = arith.addf %51, %52 : vector<10x64xf32>
    %c0_25 = arith.constant 0 : index
    %c0_26 = arith.constant 0 : index
    %54 = vector.load %arg9[%c0_25, %c0_26] : memref<64x192xf32, #tpu.memory_space<vmem>>, vector<64x192xf32>
    %cst_27 = arith.constant dense<0.000000e+00> : vector<10x192xf32>
    %55 = tpu.matmul %53, %54, %cst_27 {dimension_numbers = #tpu.dot_dimension_numbers<[1], [0], [0], [1], [0, 0, 1, 1], [], []>} : vector<10x64xf32>, vector<64x192xf32>, vector<10x192xf32> -> vector<10x192xf32>
    %c0_28 = arith.constant 0 : index
    %c0_29 = arith.constant 0 : index
    %56 = vector.load %arg10[%c0_28, %c0_29] : memref<1x192xf32, #tpu.memory_space<vmem>>, vector<1x192xf32>
    %57 = vector.broadcast %56 : vector<1x192xf32> to vector<10x192xf32>
    %58 = arith.addf %55, %57 : vector<10x192xf32>
    %c0_30 = arith.constant 0 : index
    %c0_31 = arith.constant 0 : index
    %59 = vector.load %arg23[%c0_30, %c0_31] : memref<10x192xf32, #tpu.memory_space<vmem>>, vector<10x192xf32>
    tpu.vector_store %arg23[%c0_30, %c0_31], %58 {strides = array<i32>} : memref<10x192xf32, #tpu.memory_space<vmem>>, vector<10x192xf32>,
    %c0_32 = arith.constant 0 : index
    %c0_33 = arith.constant 0 : index
    %60 = vector.load %arg23[%c0_32, %c0_33] : memref<10x192xf32, #tpu.memory_space<vmem>>, vector<10x32xf32>
    %cst_34 = arith.constant 0.176776692 : f32
    %61 = vector.broadcast %cst_34 : f32 to vector<10x32xf32>
    %62 = arith.mulf %60, %61 : vector<10x32xf32>
    %c0_35 = arith.constant 0 : index
    %c64 = arith.constant 64 : index
    %63 = vector.load %arg23[%c0_35, %c64] : memref<10x192xf32, #tpu.memory_space<vmem>>, vector<10x32xf32>
    %c0_36 = arith.constant 0 : index
    %c128 = arith.constant 128 : index
    %64 = vector.load %arg23[%c0_36, %c128] : memref<10x192xf32, #tpu.memory_space<vmem>>, vector<10x32xf32>
    %65 = tpu.transpose %63, [1, 0] : vector<10x32xf32> -> vector<32x10xf32>
    %cst_37 = arith.constant dense<0.000000e+00> : vector<10x10xf32>
    %66 = tpu.matmul %62, %65, %cst_37 {dimension_numbers = #tpu.dot_dimension_numbers<[1], [0], [0], [1], [0, 0, 1, 1], [], []>} : vector<10x32xf32>, vector<32x10xf32>, vector<10x10xf32> -> vector<10x10xf32>
    %67 = arith.addf %66, %29 : vector<10x10xf32>
    %cst_38 = arith.constant dense<0xFF800000> : vector<10xf32>
    %68 = vector.multi_reduction <maximumf>, %67, %cst_38 [1] : vector<10x10xf32> to vector<10xf32>
    %69 = vector.shape_cast %68 : vector<10xf32> to vector<10x1xf32>
    %70 = vector.broadcast %69 : vector<10x1xf32> to vector<10x10xf32>
    %71 = arith.subf %67, %70 : vector<10x10xf32>
    %72 = math.exp %71 : vector<10x10xf32>
    %cst_39 = arith.constant dense<0.000000e+00> : vector<10xf32>
    %73 = vector.multi_reduction <add>, %72, %cst_39 [1] : vector<10x10xf32> to vector<10xf32>
    %74 = vector.shape_cast %73 : vector<10xf32> to vector<10x1xf32>
    %75 = tpu.reciprocal %74 : vector<10x1xf32> -> vector<10x1xf32>
    %76 = vector.broadcast %75 : vector<10x1xf32> to vector<10x10xf32>
    %77 = arith.mulf %72, %76 : vector<10x10xf32>
    %cst_40 = arith.constant dense<0.000000e+00> : vector<10x32xf32>
    %78 = tpu.matmul %77, %64, %cst_40 {dimension_numbers = #tpu.dot_dimension_numbers<[1], [0], [0], [1], [0, 0, 1, 1], [], []>} : vector<10x10xf32>, vector<10x32xf32>, vector<10x32xf32> -> vector<10x32xf32>
    %c0_41 = arith.constant 0 : index
    %c0_42 = arith.constant 0 : index
    %c0_43 = arith.constant 0 : index
    %79 = vector.load %arg11[%c0_41, %c0_42, %c0_43] : memref<2x32x64xf32, #tpu.memory_space<vmem>>, vector<1x32x64xf32>
    %80 = vector.shape_cast %79 : vector<1x32x64xf32> to vector<32x64xf32>
    %cst_44 = arith.constant dense<0.000000e+00> : vector<10x64xf32>
    %81 = tpu.matmul %78, %80, %cst_44 {dimension_numbers = #tpu.dot_dimension_numbers<[1], [0], [0], [1], [0, 0, 1, 1], [], []>} : vector<10x32xf32>, vector<32x64xf32>, vector<10x64xf32> -> vector<10x64xf32>
    %c0_45 = arith.constant 0 : index
    %c32 = arith.constant 32 : index
    %82 = vector.load %arg23[%c0_45, %c32] : memref<10x192xf32, #tpu.memory_space<vmem>>, vector<10x32xf32>
    %cst_46 = arith.constant 0.176776692 : f32
    %83 = vector.broadcast %cst_46 : f32 to vector<10x32xf32>
    %84 = arith.mulf %82, %83 : vector<10x32xf32>
    %c0_47 = arith.constant 0 : index
    %c96 = arith.constant 96 : index
    %85 = vector.load %arg23[%c0_47, %c96] : memref<10x192xf32, #tpu.memory_space<vmem>>, vector<10x32xf32>
    %c0_48 = arith.constant 0 : index
    %c160 = arith.constant 160 : index
    %86 = vector.load %arg23[%c0_48, %c160] : memref<10x192xf32, #tpu.memory_space<vmem>>, vector<10x32xf32>
    %87 = tpu.transpose %85, [1, 0] : vector<10x32xf32> -> vector<32x10xf32>
    %cst_49 = arith.constant dense<0.000000e+00> : vector<10x10xf32>
    %88 = tpu.matmul %84, %87, %cst_49 {dimension_numbers = #tpu.dot_dimension_numbers<[1], [0], [0], [1], [0, 0, 1, 1], [], []>} : vector<10x32xf32>, vector<32x10xf32>, vector<10x10xf32> -> vector<10x10xf32>
    %89 = arith.addf %88, %29 : vector<10x10xf32>
    %cst_50 = arith.constant dense<0xFF800000> : vector<10xf32>
    %90 = vector.multi_reduction <maximumf>, %89, %cst_50 [1] : vector<10x10xf32> to vector<10xf32>
    %91 = vector.shape_cast %90 : vector<10xf32> to vector<10x1xf32>
    %92 = vector.broadcast %91 : vector<10x1xf32> to vector<10x10xf32>
    %93 = arith.subf %89, %92 : vector<10x10xf32>
    %94 = math.exp %93 : vector<10x10xf32>
    %cst_51 = arith.constant dense<0.000000e+00> : vector<10xf32>
    %95 = vector.multi_reduction <add>, %94, %cst_51 [1] : vector<10x10xf32> to vector<10xf32>
    %96 = vector.shape_cast %95 : vector<10xf32> to vector<10x1xf32>
    %97 = tpu.reciprocal %96 : vector<10x1xf32> -> vector<10x1xf32>
    %98 = vector.broadcast %97 : vector<10x1xf32> to vector<10x10xf32>
    %99 = arith.mulf %94, %98 : vector<10x10xf32>
    %cst_52 = arith.constant dense<0.000000e+00> : vector<10x32xf32>
    %100 = tpu.matmul %99, %86, %cst_52 {dimension_numbers = #tpu.dot_dimension_numbers<[1], [0], [0], [1], [0, 0, 1, 1], [], []>} : vector<10x10xf32>, vector<10x32xf32>, vector<10x32xf32> -> vector<10x32xf32>
    %c1 = arith.constant 1 : index
    %c0_53 = arith.constant 0 : index
    %c0_54 = arith.constant 0 : index
    %101 = vector.load %arg11[%c1, %c0_53, %c0_54] : memref<2x32x64xf32, #tpu.memory_space<vmem>>, vector<1x32x64xf32>
    %102 = vector.shape_cast %101 : vector<1x32x64xf32> to vector<32x64xf32>
    %cst_55 = arith.constant dense<0.000000e+00> : vector<10x64xf32>
    %103 = tpu.matmul %100, %102, %cst_55 {dimension_numbers = #tpu.dot_dimension_numbers<[1], [0], [0], [1], [0, 0, 1, 1], [], []>} : vector<10x32xf32>, vector<32x64xf32>, vector<10x64xf32> -> vector<10x64xf32>
    %104 = arith.addf %81, %103 : vector<10x64xf32>
    %105 = arith.addf %28, %104 : vector<10x64xf32>
    %c0_56 = arith.constant 0 : index
    %c0_57 = arith.constant 0 : index
    %106 = vector.load %arg12[%c0_56, %c0_57] : memref<1x64xf32, #tpu.memory_space<vmem>>, vector<1x64xf32>
    %107 = vector.broadcast %106 : vector<1x64xf32> to vector<10x64xf32>
    %108 = arith.addf %105, %107 : vector<10x64xf32>
    %c0_58 = arith.constant 0 : index
    %c0_59 = arith.constant 0 : index
    %109 = vector.load %arg13[%c0_58, %c0_59] : memref<1x64xf32, #tpu.memory_space<vmem>>, vector<1x64xf32>
    %c0_60 = arith.constant 0 : index
    %c0_61 = arith.constant 0 : index
    %110 = vector.load %arg14[%c0_60, %c0_61] : memref<1x64xf32, #tpu.memory_space<vmem>>, vector<1x64xf32>
    %cst_62 = arith.constant dense<0.000000e+00> : vector<10xf32>
    %111 = vector.multi_reduction <add>, %108, %cst_62 [1] : vector<10x64xf32> to vector<10xf32>
    %112 = vector.shape_cast %111 : vector<10xf32> to vector<10x1xf32>
    %cst_63 = arith.constant 6.400000e+01 : f32
    %113 = vector.broadcast %cst_63 : f32 to vector<10x1xf32>
    %114 = arith.divf %112, %113 : vector<10x1xf32>
    %115 = vector.broadcast %114 : vector<10x1xf32> to vector<10x64xf32>
    %116 = arith.subf %108, %115 : vector<10x64xf32>
    %117 = arith.mulf %116, %116 : vector<10x64xf32>
    %cst_64 = arith.constant dense<0.000000e+00> : vector<10xf32>
    %118 = vector.multi_reduction <add>, %117, %cst_64 [1] : vector<10x64xf32> to vector<10xf32>
    %119 = vector.shape_cast %118 : vector<10xf32> to vector<10x1xf32>
    %cst_65 = arith.constant 6.400000e+01 : f32
    %120 = vector.broadcast %cst_65 : f32 to vector<10x1xf32>
    %121 = arith.divf %119, %120 : vector<10x1xf32>
    %122 = vector.broadcast %114 : vector<10x1xf32> to vector<10x64xf32>
    %123 = arith.subf %108, %122 : vector<10x64xf32>
    %cst_66 = arith.constant 9.99999974E-6 : f32
    %124 = vector.broadcast %cst_66 : f32 to vector<10x1xf32>
    %125 = arith.addf %121, %124 : vector<10x1xf32>
    %126 = math.rsqrt %125 : vector<10x1xf32>
    %127 = vector.broadcast %126 : vector<10x1xf32> to vector<10x64xf32>
    %128 = arith.mulf %123, %127 : vector<10x64xf32>
    %129 = vector.broadcast %109 : vector<1x64xf32> to vector<10x64xf32>
    %130 = arith.mulf %128, %129 : vector<10x64xf32>
    %131 = vector.broadcast %110 : vector<1x64xf32> to vector<10x64xf32>
    %132 = arith.addf %130, %131 : vector<10x64xf32>
    %c0_67 = arith.constant 0 : index
    %c0_68 = arith.constant 0 : index
    %133 = vector.load %arg15[%c0_67, %c0_68] : memref<64x128xf32, #tpu.memory_space<vmem>>, vector<64x128xf32>
    %cst_69 = arith.constant dense<0.000000e+00> : vector<10x128xf32>
    %134 = tpu.matmul %132, %133, %cst_69 {dimension_numbers = #tpu.dot_dimension_numbers<[1], [0], [0], [1], [0, 0, 1, 1], [], []>} : vector<10x64xf32>, vector<64x128xf32>, vector<10x128xf32> -> vector<10x128xf32>
    %c0_70 = arith.constant 0 : index
    %c0_71 = arith.constant 0 : index
    %135 = vector.load %arg16[%c0_70, %c0_71] : memref<1x128xf32, #tpu.memory_space<vmem>>, vector<1x128xf32>
    %136 = vector.broadcast %135 : vector<1x128xf32> to vector<10x128xf32>
    %137 = arith.addf %134, %136 : vector<10x128xf32>
    %cst_72 = arith.constant 1.702000e+00 : f32
    %138 = vector.broadcast %cst_72 : f32 to vector<10x128xf32>
    %139 = arith.mulf %138, %137 : vector<10x128xf32>
    %140 = arith.negf %139 : vector<10x128xf32>
    %141 = math.exp %140 : vector<10x128xf32>
    %cst_73 = arith.constant 1.000000e+00 : f32
    %142 = vector.broadcast %cst_73 : f32 to vector<10x128xf32>
    %143 = arith.addf %142, %141 : vector<10x128xf32>
    %144 = arith.divf %142, %143 : vector<10x128xf32>
    %145 = arith.mulf %137, %144 : vector<10x128xf32>
    %c0_74 = arith.constant 0 : index
    %c0_75 = arith.constant 0 : index
    %146 = vector.load %arg17[%c0_74, %c0_75] : memref<128x64xf32, #tpu.memory_space<vmem>>, vector<128x64xf32>
    %cst_76 = arith.constant dense<0.000000e+00> : vector<10x64xf32>
    %147 = tpu.matmul %145, %146, %cst_76 {dimension_numbers = #tpu.dot_dimension_numbers<[1], [0], [0], [1], [0, 0, 1, 1], [], []>} : vector<10x128xf32>, vector<128x64xf32>, vector<10x64xf32> -> vector<10x64xf32>
    %148 = arith.addf %108, %147 : vector<10x64xf32>
    %c0_77 = arith.constant 0 : index
    %c0_78 = arith.constant 0 : index
    %149 = vector.load %arg18[%c0_77, %c0_78] : memref<1x64xf32, #tpu.memory_space<vmem>>, vector<1x64xf32>
    %150 = vector.broadcast %149 : vector<1x64xf32> to vector<10x64xf32>
    %151 = arith.addf %148, %150 : vector<10x64xf32>
    %c0_79 = arith.constant 0 : index
    %c0_80 = arith.constant 0 : index
    %152 = vector.load %arg4[%c0_79, %c0_80] : memref<2x10xf32, #tpu.memory_space<vmem>>, vector<2x10xf32>
    %cst_81 = arith.constant dense<0.000000e+00> : vector<2x64xf32>
    %153 = tpu.matmul %152, %151, %cst_81 {dimension_numbers = #tpu.dot_dimension_numbers<[1], [0], [0], [1], [0, 0, 1, 1], [], []>} : vector<2x10xf32>, vector<10x64xf32>, vector<2x64xf32> -> vector<2x64xf32>
    %c0_82 = arith.constant 0 : index
    %c0_83 = arith.constant 0 : index
    %154 = vector.load %arg19[%c0_82, %c0_83] : memref<1x64xf32, #tpu.memory_space<vmem>>, vector<1x64xf32>
    %c0_84 = arith.constant 0 : index
    %c0_85 = arith.constant 0 : index
    %155 = vector.load %arg20[%c0_84, %c0_85] : memref<1x64xf32, #tpu.memory_space<vmem>>, vector<1x64xf32>
    %cst_86 = arith.constant dense<0.000000e+00> : vector<2xf32>
    %156 = vector.multi_reduction <add>, %153, %cst_86 [1] : vector<2x64xf32> to vector<2xf32>
    %157 = vector.shape_cast %156 : vector<2xf32> to vector<2x1xf32>
    %cst_87 = arith.constant 6.400000e+01 : f32
    %158 = vector.broadcast %cst_87 : f32 to vector<2x1xf32>
    %159 = arith.divf %157, %158 : vector<2x1xf32>
    %160 = vector.broadcast %159 : vector<2x1xf32> to vector<2x64xf32>
    %161 = arith.subf %153, %160 : vector<2x64xf32>
    %162 = arith.mulf %161, %161 : vector<2x64xf32>
    %cst_88 = arith.constant dense<0.000000e+00> : vector<2xf32>
    %163 = vector.multi_reduction <add>, %162, %cst_88 [1] : vector<2x64xf32> to vector<2xf32>
    %164 = vector.shape_cast %163 : vector<2xf32> to vector<2x1xf32>
    %cst_89 = arith.constant 6.400000e+01 : f32
    %165 = vector.broadcast %cst_89 : f32 to vector<2x1xf32>
    %166 = arith.divf %164, %165 : vector<2x1xf32>
    %167 = vector.broadcast %159 : vector<2x1xf32> to vector<2x64xf32>
    %168 = arith.subf %153, %167 : vector<2x64xf32>
    %cst_90 = arith.constant 9.99999974E-6 : f32
    %169 = vector.broadcast %cst_90 : f32 to vector<2x1xf32>
    %170 = arith.addf %166, %169 : vector<2x1xf32>
    %171 = math.rsqrt %170 : vector<2x1xf32>
    %172 = vector.broadcast %171 : vector<2x1xf32> to vector<2x64xf32>
    %173 = arith.mulf %168, %172 : vector<2x64xf32>
    %174 = vector.broadcast %154 : vector<1x64xf32> to vector<2x64xf32>
    %175 = arith.mulf %173, %174 : vector<2x64xf32>
    %176 = vector.broadcast %155 : vector<1x64xf32> to vector<2x64xf32>
    %177 = arith.addf %175, %176 : vector<2x64xf32>
    %c0_91 = arith.constant 0 : index
    %c0_92 = arith.constant 0 : index
    %178 = vector.load %arg21[%c0_91, %c0_92] : memref<64x32xf32, #tpu.memory_space<vmem>>, vector<64x32xf32>
    %cst_93 = arith.constant dense<0.000000e+00> : vector<2x32xf32>
    %179 = tpu.matmul %177, %178, %cst_93 {dimension_numbers = #tpu.dot_dimension_numbers<[1], [0], [0], [1], [0, 0, 1, 1], [], []>} : vector<2x64xf32>, vector<64x32xf32>, vector<2x32xf32> -> vector<2x32xf32>
    %c0_94 = arith.constant 0 : index
    %c0_95 = arith.constant 0 : index
    %180 = vector.load %arg22[%c0_94, %c0_95] : memref<2x32xf32, #tpu.memory_space<vmem>>, vector<2x32xf32>
    tpu.vector_store %arg22[%c0_94, %c0_95], %179 {strides = array<i32>} : memref<2x32xf32, #tpu.memory_space<vmem>>, vector<2x32xf32>,
    return
  }
}

module attributes {stable_mosaic.version = 11 : i64} {
  func.func @_head_kernel(%arg0: memref<2x32xf32, #tpu.memory_space<vmem>>, %arg1: memref<4x32xf32, #tpu.memory_space<vmem>>, %arg2: memref<1x1xf32, #tpu.memory_space<smem>>, %arg3: memref<2x4xf32, #tpu.memory_space<vmem>>, %arg4: memref<2x4xf32, #tpu.memory_space<vmem>>, %arg5: memref<1x1xf32, #tpu.memory_space<vmem>>) attributes {dimension_semantics = [], scalar_prefetch = 0 : i64, scratch_operands = 0 : i64, tpu.core_type = #tpu.core_type<tc>} {
    %c0 = arith.constant 0 : index
    %c0_0 = arith.constant 0 : index
    %0 = vector.load %arg0[%c0, %c0_0] : memref<2x32xf32, #tpu.memory_space<vmem>>, vector<2x32xf32>
    %c0_1 = arith.constant 0 : index
    %c0_2 = arith.constant 0 : index
    %1 = vector.load %arg1[%c0_1, %c0_2] : memref<4x32xf32, #tpu.memory_space<vmem>>, vector<4x32xf32>
    %2 = arith.mulf %0, %0 : vector<2x32xf32>
    %cst = arith.constant dense<0.000000e+00> : vector<2xf32>
    %3 = vector.multi_reduction <add>, %2, %cst [1] : vector<2x32xf32> to vector<2xf32>
    %4 = vector.shape_cast %3 : vector<2xf32> to vector<2x1xf32>
    %cst_3 = arith.constant 9.99999996E-13 : f32
    %5 = vector.broadcast %cst_3 : f32 to vector<2x1xf32>
    %6 = arith.maximumf %4, %5 : vector<2x1xf32>
    %7 = math.rsqrt %6 : vector<2x1xf32>
    %8 = vector.broadcast %7 : vector<2x1xf32> to vector<2x32xf32>
    %9 = arith.mulf %0, %8 : vector<2x32xf32>
    %10 = arith.mulf %1, %1 : vector<4x32xf32>
    %cst_4 = arith.constant dense<0.000000e+00> : vector<4xf32>
    %11 = vector.multi_reduction <add>, %10, %cst_4 [1] : vector<4x32xf32> to vector<4xf32>
    %12 = vector.shape_cast %11 : vector<4xf32> to vector<4x1xf32>
    %cst_5 = arith.constant 9.99999996E-13 : f32
    %13 = vector.broadcast %cst_5 : f32 to vector<4x1xf32>
    %14 = arith.maximumf %12, %13 : vector<4x1xf32>
    %15 = math.rsqrt %14 : vector<4x1xf32>
    %16 = vector.broadcast %15 : vector<4x1xf32> to vector<4x32xf32>
    %17 = arith.mulf %1, %16 : vector<4x32xf32>
    %c0_6 = arith.constant 0 : index
    %c0_7 = arith.constant 0 : index
    %18 = memref.load %arg2[%c0_6, %c0_7] : memref<1x1xf32, #tpu.memory_space<smem>>
    %19 = tpu.transpose %17, [1, 0] : vector<4x32xf32> -> vector<32x4xf32>
    %cst_8 = arith.constant dense<0.000000e+00> : vector<2x4xf32>
    %20 = tpu.matmul %9, %19, %cst_8 {dimension_numbers = #tpu.dot_dimension_numbers<[1], [0], [0], [1], [0, 0, 1, 1], [], []>} : vector<2x32xf32>, vector<32x4xf32>, vector<2x4xf32> -> vector<2x4xf32>
    %21 = vector.broadcast %18 : f32 to vector<2x4xf32>
    %22 = arith.mulf %21, %20 : vector<2x4xf32>
    %c0_9 = arith.constant 0 : index
    %c0_10 = arith.constant 0 : index
    %23 = vector.load %arg4[%c0_9, %c0_10] : memref<2x4xf32, #tpu.memory_space<vmem>>, vector<2x4xf32>
    tpu.vector_store %arg4[%c0_9, %c0_10], %22 {strides = array<i32>} : memref<2x4xf32, #tpu.memory_space<vmem>>, vector<2x4xf32>,
    %cst_11 = arith.constant dense<0xFF800000> : vector<2xf32>
    %24 = vector.multi_reduction <maximumf>, %22, %cst_11 [1] : vector<2x4xf32> to vector<2xf32>
    %25 = vector.shape_cast %24 : vector<2xf32> to vector<2x1xf32>
    %26 = vector.broadcast %25 : vector<2x1xf32> to vector<2x4xf32>
    %27 = arith.subf %22, %26 : vector<2x4xf32>
    %28 = math.exp %27 : vector<2x4xf32>
    %cst_12 = arith.constant dense<0.000000e+00> : vector<2xf32>
    %29 = vector.multi_reduction <add>, %28, %cst_12 [1] : vector<2x4xf32> to vector<2xf32>
    %30 = vector.shape_cast %29 : vector<2xf32> to vector<2x1xf32>
    %31 = math.log %30 : vector<2x1xf32>
    %32 = arith.addf %31, %25 : vector<2x1xf32>
    %33 = vector.broadcast %32 : vector<2x1xf32> to vector<2x4xf32>
    %34 = arith.subf %22, %33 : vector<2x4xf32>
    %c0_13 = arith.constant 0 : index
    %c0_14 = arith.constant 0 : index
    %35 = vector.load %arg3[%c0_13, %c0_14] : memref<2x4xf32, #tpu.memory_space<vmem>>, vector<2x4xf32>
    %36 = arith.mulf %35, %34 : vector<2x4xf32>
    %37 = vector.shape_cast %36 : vector<2x4xf32> to vector<1x2x4xf32>
    %cst_15 = arith.constant dense<0.000000e+00> : vector<1xf32>
    %38 = vector.multi_reduction <add>, %37, %cst_15 [1, 2] : vector<1x2x4xf32> to vector<1xf32>
    %39 = vector.shape_cast %38 : vector<1xf32> to vector<1x1x1xf32>
    %40 = vector.extract %39[0, 0, 0] : f32 from vector<1x1x1xf32>
    %41 = vector.broadcast %40 : f32 to vector<1x1xf32>
    %cst_16 = arith.constant 0.000000e+00 : f32
    %42 = vector.broadcast %cst_16 : f32 to vector<1x1xf32>
    %43 = arith.subf %42, %41 : vector<1x1xf32>
    %cst_17 = arith.constant 2.000000e+00 : f32
    %44 = vector.broadcast %cst_17 : f32 to vector<1x1xf32>
    %45 = arith.divf %43, %44 : vector<1x1xf32>
    %c0_18 = arith.constant 0 : index
    %c0_19 = arith.constant 0 : index
    %46 = vector.load %arg5[%c0_18, %c0_19] : memref<1x1xf32, #tpu.memory_space<vmem>>, vector<1x1xf32>
    tpu.vector_store %arg5[%c0_18, %c0_19], %45 {strides = array<i32>} : memref<1x1xf32, #tpu.memory_space<vmem>>, vector<1x1xf32>,
    return
  }
}

module attributes {stable_mosaic.version = 11 : i64} {
  func.func @_tower_kernel(%arg0: memref<32x64xf32, #tpu.memory_space<vmem>>, %arg1: memref<64x64xf32, #tpu.memory_space<vmem>>, %arg2: memref<32x64xf32, #tpu.memory_space<vmem>>, %arg3: memref<32x32xf32, #tpu.memory_space<vmem>>, %arg4: memref<4x32xf32, #tpu.memory_space<vmem>>, %arg5: memref<1x64xf32, #tpu.memory_space<vmem>>, %arg6: memref<1x64xf32, #tpu.memory_space<vmem>>, %arg7: memref<64x192xf32, #tpu.memory_space<vmem>>, %arg8: memref<1x192xf32, #tpu.memory_space<vmem>>, %arg9: memref<2x32x64xf32, #tpu.memory_space<vmem>>, %arg10: memref<1x64xf32, #tpu.memory_space<vmem>>, %arg11: memref<1x64xf32, #tpu.memory_space<vmem>>, %arg12: memref<1x64xf32, #tpu.memory_space<vmem>>, %arg13: memref<64x128xf32, #tpu.memory_space<vmem>>, %arg14: memref<1x128xf32, #tpu.memory_space<vmem>>, %arg15: memref<128x64xf32, #tpu.memory_space<vmem>>, %arg16: memref<1x64xf32, #tpu.memory_space<vmem>>, %arg17: memref<1x64xf32, #tpu.memory_space<vmem>>, %arg18: memref<1x64xf32, #tpu.memory_space<vmem>>, %arg19: memref<64x32xf32, #tpu.memory_space<vmem>>, %arg20: memref<4x32xf32, #tpu.memory_space<vmem>>, %arg21: memref<32x192xf32, #tpu.memory_space<vmem>>) attributes {dimension_semantics = [], scalar_prefetch = 0 : i64, scratch_operands = 1 : i64, tpu.core_type = #tpu.core_type<tc>} {
    %c0 = arith.constant 0 : index
    %c0_0 = arith.constant 0 : index
    %0 = vector.load %arg0[%c0, %c0_0] : memref<32x64xf32, #tpu.memory_space<vmem>>, vector<32x64xf32>
    %c0_1 = arith.constant 0 : index
    %c0_2 = arith.constant 0 : index
    %1 = vector.load %arg1[%c0_1, %c0_2] : memref<64x64xf32, #tpu.memory_space<vmem>>, vector<64x64xf32>
    %cst = arith.constant dense<0.000000e+00> : vector<32x64xf32>
    %2 = tpu.matmul %0, %1, %cst {dimension_numbers = #tpu.dot_dimension_numbers<[1], [0], [0], [1], [0, 0, 1, 1], [], []>} : vector<32x64xf32>, vector<64x64xf32>, vector<32x64xf32> -> vector<32x64xf32>
    %c0_3 = arith.constant 0 : index
    %c0_4 = arith.constant 0 : index
    %3 = vector.load %arg2[%c0_3, %c0_4] : memref<32x64xf32, #tpu.memory_space<vmem>>, vector<32x64xf32>
    %4 = arith.addf %2, %3 : vector<32x64xf32>
    %c0_5 = arith.constant 0 : index
    %c0_6 = arith.constant 0 : index
    %5 = vector.load %arg3[%c0_5, %c0_6] : memref<32x32xf32, #tpu.memory_space<vmem>>, vector<32x32xf32>
    %c0_7 = arith.constant 0 : index
    %c0_8 = arith.constant 0 : index
    %6 = vector.load %arg5[%c0_7, %c0_8] : memref<1x64xf32, #tpu.memory_space<vmem>>, vector<1x64xf32>
    %c0_9 = arith.constant 0 : index
    %c0_10 = arith.constant 0 : index
    %7 = vector.load %arg6[%c0_9, %c0_10] : memref<1x64xf32, #tpu.memory_space<vmem>>, vector<1x64xf32>
    %cst_11 = arith.constant dense<0.000000e+00> : vector<32xf32>
    %8 = vector.multi_reduction <add>, %4, %cst_11 [1] : vector<32x64xf32> to vector<32xf32>
    %9 = vector.shape_cast %8 : vector<32xf32> to vector<32x1xf32>
    %cst_12 = arith.constant 6.400000e+01 : f32
    %10 = vector.broadcast %cst_12 : f32 to vector<32x1xf32>
    %11 = arith.divf %9, %10 : vector<32x1xf32>
    %12 = vector.broadcast %11 : vector<32x1xf32> to vector<32x64xf32>
    %13 = arith.subf %4, %12 : vector<32x64xf32>
    %14 = arith.mulf %13, %13 : vector<32x64xf32>
    %cst_13 = arith.constant dense<0.000000e+00> : vector<32xf32>
    %15 = vector.multi_reduction <add>, %14, %cst_13 [1] : vector<32x64xf32> to vector<32xf32>
    %16 = vector.shape_cast %15 : vector<32xf32> to vector<32x1xf32>
    %cst_14 = arith.constant 6.400000e+01 : f32
    %17 = vector.broadcast %cst_14 : f32 to vector<32x1xf32>
    %18 = arith.divf %16, %17 : vector<32x1xf32>
    %19 = vector.broadcast %11 : vector<32x1xf32> to vector<32x64xf32>
    %20 = arith.subf %4, %19 : vector<32x64xf32>
    %cst_15 = arith.constant 9.99999974E-6 : f32
    %21 = vector.broadcast %cst_15 : f32 to vector<32x1xf32>
    %22 = arith.addf %18, %21 : vector<32x1xf32>
    %23 = math.rsqrt %22 : vector<32x1xf32>
    %24 = vector.broadcast %23 : vector<32x1xf32> to vector<32x64xf32>
    %25 = arith.mulf %20, %24 : vector<32x64xf32>
    %26 = vector.broadcast %6 : vector<1x64xf32> to vector<32x64xf32>
    %27 = arith.mulf %25, %26 : vector<32x64xf32>
    %28 = vector.broadcast %7 : vector<1x64xf32> to vector<32x64xf32>
    %29 = arith.addf %27, %28 : vector<32x64xf32>
    %c0_16 = arith.constant 0 : index
    %c0_17 = arith.constant 0 : index
    %30 = vector.load %arg7[%c0_16, %c0_17] : memref<64x192xf32, #tpu.memory_space<vmem>>, vector<64x192xf32>
    %cst_18 = arith.constant dense<0.000000e+00> : vector<32x192xf32>
    %31 = tpu.matmul %29, %30, %cst_18 {dimension_numbers = #tpu.dot_dimension_numbers<[1], [0], [0], [1], [0, 0, 1, 1], [], []>} : vector<32x64xf32>, vector<64x192xf32>, vector<32x192xf32> -> vector<32x192xf32>
    %c0_19 = arith.constant 0 : index
    %c0_20 = arith.constant 0 : index
    %32 = vector.load %arg8[%c0_19, %c0_20] : memref<1x192xf32, #tpu.memory_space<vmem>>, vector<1x192xf32>
    %33 = vector.broadcast %32 : vector<1x192xf32> to vector<32x192xf32>
    %34 = arith.addf %31, %33 : vector<32x192xf32>
    %c0_21 = arith.constant 0 : index
    %c0_22 = arith.constant 0 : index
    %35 = vector.load %arg21[%c0_21, %c0_22] : memref<32x192xf32, #tpu.memory_space<vmem>>, vector<32x192xf32>
    tpu.vector_store %arg21[%c0_21, %c0_22], %34 {strides = array<i32>} : memref<32x192xf32, #tpu.memory_space<vmem>>, vector<32x192xf32>,
    %c0_23 = arith.constant 0 : index
    %c0_24 = arith.constant 0 : index
    %36 = vector.load %arg21[%c0_23, %c0_24] : memref<32x192xf32, #tpu.memory_space<vmem>>, vector<32x32xf32>
    %cst_25 = arith.constant 0.176776692 : f32
    %37 = vector.broadcast %cst_25 : f32 to vector<32x32xf32>
    %38 = arith.mulf %36, %37 : vector<32x32xf32>
    %c0_26 = arith.constant 0 : index
    %c64 = arith.constant 64 : index
    %39 = vector.load %arg21[%c0_26, %c64] : memref<32x192xf32, #tpu.memory_space<vmem>>, vector<32x32xf32>
    %c0_27 = arith.constant 0 : index
    %c128 = arith.constant 128 : index
    %40 = vector.load %arg21[%c0_27, %c128] : memref<32x192xf32, #tpu.memory_space<vmem>>, vector<32x32xf32>
    %41 = tpu.transpose %39, [1, 0] : vector<32x32xf32> -> vector<32x32xf32>
    %cst_28 = arith.constant dense<0.000000e+00> : vector<32x32xf32>
    %42 = tpu.matmul %38, %41, %cst_28 {dimension_numbers = #tpu.dot_dimension_numbers<[1], [0], [0], [1], [0, 0, 1, 1], [], []>} : vector<32x32xf32>, vector<32x32xf32>, vector<32x32xf32> -> vector<32x32xf32>
    %43 = arith.addf %42, %5 : vector<32x32xf32>
    %cst_29 = arith.constant dense<0xFF800000> : vector<32xf32>
    %44 = vector.multi_reduction <maximumf>, %43, %cst_29 [1] : vector<32x32xf32> to vector<32xf32>
    %45 = vector.shape_cast %44 : vector<32xf32> to vector<32x1xf32>
    %46 = vector.broadcast %45 : vector<32x1xf32> to vector<32x32xf32>
    %47 = arith.subf %43, %46 : vector<32x32xf32>
    %48 = math.exp %47 : vector<32x32xf32>
    %cst_30 = arith.constant dense<0.000000e+00> : vector<32xf32>
    %49 = vector.multi_reduction <add>, %48, %cst_30 [1] : vector<32x32xf32> to vector<32xf32>
    %50 = vector.shape_cast %49 : vector<32xf32> to vector<32x1xf32>
    %51 = tpu.reciprocal %50 : vector<32x1xf32> -> vector<32x1xf32>
    %52 = vector.broadcast %51 : vector<32x1xf32> to vector<32x32xf32>
    %53 = arith.mulf %48, %52 : vector<32x32xf32>
    %cst_31 = arith.constant dense<0.000000e+00> : vector<32x32xf32>
    %54 = tpu.matmul %53, %40, %cst_31 {dimension_numbers = #tpu.dot_dimension_numbers<[1], [0], [0], [1], [0, 0, 1, 1], [], []>} : vector<32x32xf32>, vector<32x32xf32>, vector<32x32xf32> -> vector<32x32xf32>
    %c0_32 = arith.constant 0 : index
    %c0_33 = arith.constant 0 : index
    %c0_34 = arith.constant 0 : index
    %55 = vector.load %arg9[%c0_32, %c0_33, %c0_34] : memref<2x32x64xf32, #tpu.memory_space<vmem>>, vector<1x32x64xf32>
    %56 = vector.shape_cast %55 : vector<1x32x64xf32> to vector<32x64xf32>
    %cst_35 = arith.constant dense<0.000000e+00> : vector<32x64xf32>
    %57 = tpu.matmul %54, %56, %cst_35 {dimension_numbers = #tpu.dot_dimension_numbers<[1], [0], [0], [1], [0, 0, 1, 1], [], []>} : vector<32x32xf32>, vector<32x64xf32>, vector<32x64xf32> -> vector<32x64xf32>
    %c0_36 = arith.constant 0 : index
    %c32 = arith.constant 32 : index
    %58 = vector.load %arg21[%c0_36, %c32] : memref<32x192xf32, #tpu.memory_space<vmem>>, vector<32x32xf32>
    %cst_37 = arith.constant 0.176776692 : f32
    %59 = vector.broadcast %cst_37 : f32 to vector<32x32xf32>
    %60 = arith.mulf %58, %59 : vector<32x32xf32>
    %c0_38 = arith.constant 0 : index
    %c96 = arith.constant 96 : index
    %61 = vector.load %arg21[%c0_38, %c96] : memref<32x192xf32, #tpu.memory_space<vmem>>, vector<32x32xf32>
    %c0_39 = arith.constant 0 : index
    %c160 = arith.constant 160 : index
    %62 = vector.load %arg21[%c0_39, %c160] : memref<32x192xf32, #tpu.memory_space<vmem>>, vector<32x32xf32>
    %63 = tpu.transpose %61, [1, 0] : vector<32x32xf32> -> vector<32x32xf32>
    %cst_40 = arith.constant dense<0.000000e+00> : vector<32x32xf32>
    %64 = tpu.matmul %60, %63, %cst_40 {dimension_numbers = #tpu.dot_dimension_numbers<[1], [0], [0], [1], [0, 0, 1, 1], [], []>} : vector<32x32xf32>, vector<32x32xf32>, vector<32x32xf32> -> vector<32x32xf32>
    %65 = arith.addf %64, %5 : vector<32x32xf32>
    %cst_41 = arith.constant dense<0xFF800000> : vector<32xf32>
    %66 = vector.multi_reduction <maximumf>, %65, %cst_41 [1] : vector<32x32xf32> to vector<32xf32>
    %67 = vector.shape_cast %66 : vector<32xf32> to vector<32x1xf32>
    %68 = vector.broadcast %67 : vector<32x1xf32> to vector<32x32xf32>
    %69 = arith.subf %65, %68 : vector<32x32xf32>
    %70 = math.exp %69 : vector<32x32xf32>
    %cst_42 = arith.constant dense<0.000000e+00> : vector<32xf32>
    %71 = vector.multi_reduction <add>, %70, %cst_42 [1] : vector<32x32xf32> to vector<32xf32>
    %72 = vector.shape_cast %71 : vector<32xf32> to vector<32x1xf32>
    %73 = tpu.reciprocal %72 : vector<32x1xf32> -> vector<32x1xf32>
    %74 = vector.broadcast %73 : vector<32x1xf32> to vector<32x32xf32>
    %75 = arith.mulf %70, %74 : vector<32x32xf32>
    %cst_43 = arith.constant dense<0.000000e+00> : vector<32x32xf32>
    %76 = tpu.matmul %75, %62, %cst_43 {dimension_numbers = #tpu.dot_dimension_numbers<[1], [0], [0], [1], [0, 0, 1, 1], [], []>} : vector<32x32xf32>, vector<32x32xf32>, vector<32x32xf32> -> vector<32x32xf32>
    %c1 = arith.constant 1 : index
    %c0_44 = arith.constant 0 : index
    %c0_45 = arith.constant 0 : index
    %77 = vector.load %arg9[%c1, %c0_44, %c0_45] : memref<2x32x64xf32, #tpu.memory_space<vmem>>, vector<1x32x64xf32>
    %78 = vector.shape_cast %77 : vector<1x32x64xf32> to vector<32x64xf32>
    %cst_46 = arith.constant dense<0.000000e+00> : vector<32x64xf32>
    %79 = tpu.matmul %76, %78, %cst_46 {dimension_numbers = #tpu.dot_dimension_numbers<[1], [0], [0], [1], [0, 0, 1, 1], [], []>} : vector<32x32xf32>, vector<32x64xf32>, vector<32x64xf32> -> vector<32x64xf32>
    %80 = arith.addf %57, %79 : vector<32x64xf32>
    %81 = arith.addf %4, %80 : vector<32x64xf32>
    %c0_47 = arith.constant 0 : index
    %c0_48 = arith.constant 0 : index
    %82 = vector.load %arg10[%c0_47, %c0_48] : memref<1x64xf32, #tpu.memory_space<vmem>>, vector<1x64xf32>
    %83 = vector.broadcast %82 : vector<1x64xf32> to vector<32x64xf32>
    %84 = arith.addf %81, %83 : vector<32x64xf32>
    %c0_49 = arith.constant 0 : index
    %c0_50 = arith.constant 0 : index
    %85 = vector.load %arg11[%c0_49, %c0_50] : memref<1x64xf32, #tpu.memory_space<vmem>>, vector<1x64xf32>
    %c0_51 = arith.constant 0 : index
    %c0_52 = arith.constant 0 : index
    %86 = vector.load %arg12[%c0_51, %c0_52] : memref<1x64xf32, #tpu.memory_space<vmem>>, vector<1x64xf32>
    %cst_53 = arith.constant dense<0.000000e+00> : vector<32xf32>
    %87 = vector.multi_reduction <add>, %84, %cst_53 [1] : vector<32x64xf32> to vector<32xf32>
    %88 = vector.shape_cast %87 : vector<32xf32> to vector<32x1xf32>
    %cst_54 = arith.constant 6.400000e+01 : f32
    %89 = vector.broadcast %cst_54 : f32 to vector<32x1xf32>
    %90 = arith.divf %88, %89 : vector<32x1xf32>
    %91 = vector.broadcast %90 : vector<32x1xf32> to vector<32x64xf32>
    %92 = arith.subf %84, %91 : vector<32x64xf32>
    %93 = arith.mulf %92, %92 : vector<32x64xf32>
    %cst_55 = arith.constant dense<0.000000e+00> : vector<32xf32>
    %94 = vector.multi_reduction <add>, %93, %cst_55 [1] : vector<32x64xf32> to vector<32xf32>
    %95 = vector.shape_cast %94 : vector<32xf32> to vector<32x1xf32>
    %cst_56 = arith.constant 6.400000e+01 : f32
    %96 = vector.broadcast %cst_56 : f32 to vector<32x1xf32>
    %97 = arith.divf %95, %96 : vector<32x1xf32>
    %98 = vector.broadcast %90 : vector<32x1xf32> to vector<32x64xf32>
    %99 = arith.subf %84, %98 : vector<32x64xf32>
    %cst_57 = arith.constant 9.99999974E-6 : f32
    %100 = vector.broadcast %cst_57 : f32 to vector<32x1xf32>
    %101 = arith.addf %97, %100 : vector<32x1xf32>
    %102 = math.rsqrt %101 : vector<32x1xf32>
    %103 = vector.broadcast %102 : vector<32x1xf32> to vector<32x64xf32>
    %104 = arith.mulf %99, %103 : vector<32x64xf32>
    %105 = vector.broadcast %85 : vector<1x64xf32> to vector<32x64xf32>
    %106 = arith.mulf %104, %105 : vector<32x64xf32>
    %107 = vector.broadcast %86 : vector<1x64xf32> to vector<32x64xf32>
    %108 = arith.addf %106, %107 : vector<32x64xf32>
    %c0_58 = arith.constant 0 : index
    %c0_59 = arith.constant 0 : index
    %109 = vector.load %arg13[%c0_58, %c0_59] : memref<64x128xf32, #tpu.memory_space<vmem>>, vector<64x128xf32>
    %cst_60 = arith.constant dense<0.000000e+00> : vector<32x128xf32>
    %110 = tpu.matmul %108, %109, %cst_60 {dimension_numbers = #tpu.dot_dimension_numbers<[1], [0], [0], [1], [0, 0, 1, 1], [], []>} : vector<32x64xf32>, vector<64x128xf32>, vector<32x128xf32> -> vector<32x128xf32>
    %c0_61 = arith.constant 0 : index
    %c0_62 = arith.constant 0 : index
    %111 = vector.load %arg14[%c0_61, %c0_62] : memref<1x128xf32, #tpu.memory_space<vmem>>, vector<1x128xf32>
    %112 = vector.broadcast %111 : vector<1x128xf32> to vector<32x128xf32>
    %113 = arith.addf %110, %112 : vector<32x128xf32>
    %cst_63 = arith.constant 1.702000e+00 : f32
    %114 = vector.broadcast %cst_63 : f32 to vector<32x128xf32>
    %115 = arith.mulf %114, %113 : vector<32x128xf32>
    %116 = arith.negf %115 : vector<32x128xf32>
    %117 = math.exp %116 : vector<32x128xf32>
    %cst_64 = arith.constant 1.000000e+00 : f32
    %118 = vector.broadcast %cst_64 : f32 to vector<32x128xf32>
    %119 = arith.addf %118, %117 : vector<32x128xf32>
    %120 = arith.divf %118, %119 : vector<32x128xf32>
    %121 = arith.mulf %113, %120 : vector<32x128xf32>
    %c0_65 = arith.constant 0 : index
    %c0_66 = arith.constant 0 : index
    %122 = vector.load %arg15[%c0_65, %c0_66] : memref<128x64xf32, #tpu.memory_space<vmem>>, vector<128x64xf32>
    %cst_67 = arith.constant dense<0.000000e+00> : vector<32x64xf32>
    %123 = tpu.matmul %121, %122, %cst_67 {dimension_numbers = #tpu.dot_dimension_numbers<[1], [0], [0], [1], [0, 0, 1, 1], [], []>} : vector<32x128xf32>, vector<128x64xf32>, vector<32x64xf32> -> vector<32x64xf32>
    %124 = arith.addf %84, %123 : vector<32x64xf32>
    %c0_68 = arith.constant 0 : index
    %c0_69 = arith.constant 0 : index
    %125 = vector.load %arg16[%c0_68, %c0_69] : memref<1x64xf32, #tpu.memory_space<vmem>>, vector<1x64xf32>
    %126 = vector.broadcast %125 : vector<1x64xf32> to vector<32x64xf32>
    %127 = arith.addf %124, %126 : vector<32x64xf32>
    %c0_70 = arith.constant 0 : index
    %c0_71 = arith.constant 0 : index
    %128 = vector.load %arg17[%c0_70, %c0_71] : memref<1x64xf32, #tpu.memory_space<vmem>>, vector<1x64xf32>
    %c0_72 = arith.constant 0 : index
    %c0_73 = arith.constant 0 : index
    %129 = vector.load %arg18[%c0_72, %c0_73] : memref<1x64xf32, #tpu.memory_space<vmem>>, vector<1x64xf32>
    %cst_74 = arith.constant dense<0.000000e+00> : vector<32xf32>
    %130 = vector.multi_reduction <add>, %127, %cst_74 [1] : vector<32x64xf32> to vector<32xf32>
    %131 = vector.shape_cast %130 : vector<32xf32> to vector<32x1xf32>
    %cst_75 = arith.constant 6.400000e+01 : f32
    %132 = vector.broadcast %cst_75 : f32 to vector<32x1xf32>
    %133 = arith.divf %131, %132 : vector<32x1xf32>
    %134 = vector.broadcast %133 : vector<32x1xf32> to vector<32x64xf32>
    %135 = arith.subf %127, %134 : vector<32x64xf32>
    %136 = arith.mulf %135, %135 : vector<32x64xf32>
    %cst_76 = arith.constant dense<0.000000e+00> : vector<32xf32>
    %137 = vector.multi_reduction <add>, %136, %cst_76 [1] : vector<32x64xf32> to vector<32xf32>
    %138 = vector.shape_cast %137 : vector<32xf32> to vector<32x1xf32>
    %cst_77 = arith.constant 6.400000e+01 : f32
    %139 = vector.broadcast %cst_77 : f32 to vector<32x1xf32>
    %140 = arith.divf %138, %139 : vector<32x1xf32>
    %141 = vector.broadcast %133 : vector<32x1xf32> to vector<32x64xf32>
    %142 = arith.subf %127, %141 : vector<32x64xf32>
    %cst_78 = arith.constant 9.99999974E-6 : f32
    %143 = vector.broadcast %cst_78 : f32 to vector<32x1xf32>
    %144 = arith.addf %140, %143 : vector<32x1xf32>
    %145 = math.rsqrt %144 : vector<32x1xf32>
    %146 = vector.broadcast %145 : vector<32x1xf32> to vector<32x64xf32>
    %147 = arith.mulf %142, %146 : vector<32x64xf32>
    %148 = vector.broadcast %128 : vector<1x64xf32> to vector<32x64xf32>
    %149 = arith.mulf %147, %148 : vector<32x64xf32>
    %150 = vector.broadcast %129 : vector<1x64xf32> to vector<32x64xf32>
    %151 = arith.addf %149, %150 : vector<32x64xf32>
    %c0_79 = arith.constant 0 : index
    %c0_80 = arith.constant 0 : index
    %152 = vector.load %arg4[%c0_79, %c0_80] : memref<4x32xf32, #tpu.memory_space<vmem>>, vector<4x32xf32>
    %cst_81 = arith.constant dense<0.000000e+00> : vector<4x64xf32>
    %153 = tpu.matmul %152, %151, %cst_81 {dimension_numbers = #tpu.dot_dimension_numbers<[1], [0], [0], [1], [0, 0, 1, 1], [], []>} : vector<4x32xf32>, vector<32x64xf32>, vector<4x64xf32> -> vector<4x64xf32>
    %c0_82 = arith.constant 0 : index
    %c0_83 = arith.constant 0 : index
    %154 = vector.load %arg19[%c0_82, %c0_83] : memref<64x32xf32, #tpu.memory_space<vmem>>, vector<64x32xf32>
    %cst_84 = arith.constant dense<0.000000e+00> : vector<4x32xf32>
    %155 = tpu.matmul %153, %154, %cst_84 {dimension_numbers = #tpu.dot_dimension_numbers<[1], [0], [0], [1], [0, 0, 1, 1], [], []>} : vector<4x64xf32>, vector<64x32xf32>, vector<4x32xf32> -> vector<4x32xf32>
    %c0_85 = arith.constant 0 : index
    %c0_86 = arith.constant 0 : index
    %156 = vector.load %arg20[%c0_85, %c0_86] : memref<4x32xf32, #tpu.memory_space<vmem>>, vector<4x32xf32>
    tpu.vector_store %arg20[%c0_85, %c0_86], %155 {strides = array<i32>} : memref<4x32xf32, #tpu.memory_space<vmem>>, vector<4x32xf32>,
    return
  }
}

</mosaic_0001>

<bundles_post_ra>
// kernel: tile.14
= control target key start
LH: loop header
LB: loop body
LE: loop exit
PB: predicated region body
PF: predicated region fallthrough
CT: control target
= control target key end

     0   :  { %vm3_vm0 = vcmask 523264   ;;  %s34_s0 = inlined_call_operand.vmem [shape: f32[2,5,64], index: 0, kind: input, shape index: {}]   ;;  %s35_s1 = inlined_call_operand.vmem [shape: f32[10,64], index: 1, kind: output, shape index: {}]  }
   0x1   :  { %v2_v0 = vld [vmem:[%s34_s0] sm:$0x1f]   ;;  %v10_v1 = vld [vmem:[%s34_s0 + $0x8] sm:$0x1f]  }
   0x2   :  { %4 = vst.msk [vmem:[%s35_s1] sm:$0x1f] %vm3_vm0, %v2_v0   ;;  %11 = vst.msk [vmem:[%s35_s1 + $0x5] sm:$0x1f] %vm3_vm0, %v10_v1  }

// kernel: eq.15
= control target key start
LH: loop header
LB: loop body
LE: loop exit
PB: predicated region body
PF: predicated region fallthrough
CT: control target
= control target key end

     0   :  { %vm8_vm0 = vcmask 64512   ;;  %s40_s8 = smov 8   ;;  %s41_s9 = smov 16   ;;  %vm14_vm1 = vcmask 261312   ;;  %vm20_vm2 = vcmask 195712   ;;  %vm26_vm3 = vcmask 130112   ;;  %s58_s0 = inlined_call_operand.vmem [shape: s32[4,8], index: 0, kind: input, shape index: {}]   ;;  %s59_s1 = inlined_call_operand.vmem [shape: s32[32], index: 1, kind: output, shape index: {}]  }
   0x1   :  { %v5_v0 = vld [vmem:[%s58_s0] sm:$0xf]  ;;  %s39_s0 = smov 24  }
   0x2   :  { %6 = vst [vmem:[#allocation1] sm:$0xf] %v5_v0 }
   0x9   :  { %v11_v1 = vld [vmem:[#allocation1 + $0x3] sm:$0x1]   ;;  %v23_v2 = vld [vmem:[#allocation1 + $0x1] sm:$0x1]   ;;  %v7_v3 = vld [vmem:[#allocation1] sm:$0x1]  }
   0xa   :  { %12 = vrot.lane.b32.xlu0 %v11_v1, %s39_s0  ;;  %24 = vrot.lane.b32.xlu1 %v23_v2, %s40_s8  ;;  %v17_v4 = vld [vmem:[#allocation1 + $0x2] sm:$0x1]   ;;  %9 = vst.msk [vmem:[#allocation0] sm:$0x1] %vm8_vm0, %v7_v3  }
   0xe   :  { %18 = vrot.lane.b32.xlu0 %v17_v4, %s41_s9 }
  0x7c   :  { %v13_v5 = vpop.permute.xlu0 %12   ;;  %v25_v6 = vpop.permute.xlu1 %24  }
  0x7d   :  { %15 = vst.msk [vmem:[#allocation0] sm:$0x1] %vm14_vm1, %v13_v5  }
  0x80   :  { %v19_v7 = vpop.permute.xlu0 %18  }
  0x81   :  { %21 = vst.msk [vmem:[#allocation0] sm:$0x1] %vm20_vm2, %v19_v7  }
  0x82   :  { %27 = vst.msk [vmem:[#allocation0] sm:$0x1] %vm26_vm3, %v25_v6  }
  0x89   :  { %v32_v8 = vld [vmem:[#allocation0] sm:$0x1] }
  0x8a   :  { %35 = vst [vmem:[%s59_s1] sm:$0x1] %v32_v8 }

// kernel: clip_forward.5
= control target key start
LH: loop header
LB: loop body
LE: loop exit
PB: predicated region body
PF: predicated region fallthrough
CT: control target
= control target key end

     0   :  { %12 = vsyncpa [#allocation4], 0  ;;  %vm33_vm0 = vcmask 257024   ;;  %s304_s0 = inlined_call_operand.vmem [shape: f32[2,32], index: 0, kind: input, shape index: {}]   ;;  %s305_s1 = inlined_call_operand.vmem [shape: f32[4,32], index: 1, kind: input, shape index: {}]   ;;  %s306_s2 = inlined_call_operand.<no memory space> [shape: f32[1,1], index: 2, kind: input, shape index: {}]   ;;  %s307_s3 = inlined_call_operand.vmem [shape: f32[2,4], index: 3, kind: input, shape index: {}]   ;;  %s308_s4 = inlined_call_operand.hbm [shape: f32[2,4], index: 4, kind: output, shape index: {0}]   ;;  %s309_s5 = inlined_call_operand.hbm [shape: f32[1,1], index: 5, kind: output, shape index: {1}]  }
   0x1   :  { %v23_v0 = vld [vmem:[%s305_s1] sm:$0xf] }
   0x2   :  { %v22_v1 = vld [vmem:[%s304_s0] sm:$0x3]  ;;  %v32_v2 = vmul.f32 %v23_v0, %v23_v0 }
   0x3   :  { %v24_v3 = vmul.f32 %v22_v1, %v22_v1 }
   0x4   :  { %13 = vsyncpa [#allocation6], 0  ;;  %vm25_vm1 = vcmask 254976   ;;  %v34_v4 = vsel %vm33_vm0, %v32_v2, 0.0  ;;  %v248_v6 = vmov 0.0   ;;  %vm249_vm2 = vmmov 0  }
   0x5   :  { %35 = vadd.xlane.f32.xlu0 %v34_v4  ;;  %v26_v5 = vsel %vm25_vm1, %v24_v3, 0.0  ;;  %185 = vmatprep.subr.mxu0 %v248_v6  ;;  %vm41_vm3 = vcmask 261120   ;;  %v118_v15 = vstv %s306_s2  ;;  %vm120_vm4 = vcmask 25600   ;;  %v135_v29 = vld [vmem:[%s307_s3] sm:$0x3]  ;;  %s250_s23 = smov [#allocation3]  }
   0x6   :  { %187 = vmatprep.mubr.msk.f32.mxu0 %vm249_vm2, %v248_v6  ;;  %s159_s24 = sshll.u32 %s250_s23, 4  ;;  %s160_s24 = int_to_ptr.vmem [resolvable:$true] %s159_s24 }
   0x7   :  { %s204_s25 = scalar_lea.vmem %s160_s24, 32  ;;  %p209_p1 = scmp.lt.s32.totalorder %s160_s24, %s160_s24 }
   0x8   :  { %p205_p0 = scmp.ne.s32.totalorder %s160_s24, %s204_s25  ;;  %p210_p2 = scmp.lt.s32.totalorder %s204_s25, %s204_s25 }
   0x9   :  { %27 = vadd.xlane.f32.xlu0 %v26_v5 }
   0xa   :  { %p211_p3 = por %p210_p2, %p209_p1 }
   0xc   :  { %p212_p4 = pnand %p211_p3, %p205_p0 }
  0x8e   :  { %v36_v7 = vpop.xlane.xlu0 %35 }
  0x8f   :  { %v37_v8 = vmax.f32 %v36_v7, 1e-12 }
  0x91   :  { %196 = vrsqrt.f32 %v37_v8 }
  0x92   :  { %v28_v9 = vpop.xlane.xlu0 %27 }
  0x93   :  { %v29_v10 = vmax.f32 %v28_v9, 1e-12 }
  0x95   :  { %198 = vrsqrt.f32 %v29_v10 }
  0x9e   :  { %v197_v11 = vpop.eup %196 }
  0x9f   :  { %v39_v12 = vmul.f32 %v197_v11, %v23_v0 }
  0xa1   :  { %186 = vmatpush3.xpose.msk.msra.mxu0 %vm41_vm3, %v39_v12 }
  0xa2   :  { %v199_v13 = vpop.eup %198 }
  0xa3   :  { %v31_v14 = vmul.f32 %v199_v13, %v22_v1 }
  0xa5   :  { %188 = vmatmul.mubr.msk.f32.vlgmr.msra.gmra.mxu0 %vm41_vm3, %v31_v14 }
 0x165   :  { %v114_v16 = vpop.f32.mrf.mxu0 }
 0x166   :  { %v119_v17 = vmul.f32 %v118_v15, %v114_v16 }
 0x167   :  { %v189_v18 = vpop.f32.mrf.mxu0 }
 0x168   :  { %v122_v19 = vsel %vm120_vm4, %v119_v17, -inf  ;;  %121 = vst.msk [vmem:[#allocation3] sm:$0x3] %vm120_vm4, %v119_v17 }
 0x169   :  { %123 = vmax.xlane.f32.xlu1 %v122_v19 }
 0x1f2   :  { %v124_v20 = vpop.xlane.xlu1 %123 }
 0x1f3   :  { %v125_v21 = vsub.f32 %v119_v17, %v124_v20 }
 0x1f5   :  { %v126_v22 = vmul.f32 1.442695, %v125_v21 }
 0x1f7   :  { %200 = vpow2.f32 %v126_v22 }
 0x204   :  { %v201_v23 = vpop.eup %200 }
 0x205   :  { %v128_v24 = vsel %vm120_vm4, %v201_v23, 0.0 }
 0x206   :  { %129 = vadd.xlane.f32.xlu1 %v128_v24 }
 0x28f   :  { %v130_v25 = vpop.xlane.xlu1 %129 }
 0x290   :  { %202 = vlog2.f32 %v130_v25 }
 0x29d   :  { %v203_v26 = vpop.eup %202 }
 0x29e   :  { %v132_v27 = vmul.f32 0.6931472, %v203_v26 }
 0x2a0   :  { %v133_v28 = vadd.f32 %v132_v27, %v124_v20 }
 0x2a2   :  { %v134_v30 = vsub.f32 %v119_v17, %v133_v28 }
 0x2a4   :  { %v136_v31 = vmul.f32 %v135_v29, %v134_v30 }
 0x2a6   :  { %v137_v32 = vsel %vm120_vm4, %v136_v31, 0.0 }
 0x2a7   :  { %138 = vadd.xlane.f32.xlu0 %v137_v32 }
 0x2a8   :  { %215 = shalt.err (!%p212_p4)
}
 0x2a9   :  { %162 = dma.vmem_to_hbm [thread:$0]  %s160_s24, 32, %s308_s4, [#allocation4]   ;;  %vm151_vm5 = vcmask 0  }
 0x2aa   :  { %s251_s28 = smov [#allocation5]  }
 0x2ab   :  { %s169_s29 = sshll.u32 %s251_s28, 4  ;;  %s170_s29 = int_to_ptr.vmem [resolvable:$true] %s169_s29 }
 0x2ac   :  { %s224_s30 = scalar_lea.vmem %s170_s29, 16  ;;  %s228_s4 = scalar_lea.vmem %s170_s29, 32 }
 0x2ad   :  { %p225_p5 = scmp.ne.s32.totalorder %s170_s29, %s224_s30  ;;  %p229_p6 = scmp.lt.s32.totalorder %s170_s29, %s170_s29 }
 0x2ae   :  { %p230_p7 = scmp.lt.s32.totalorder %s228_s4, %s224_s30 }
 0x2b0   :  { %p231_p8 = por %p230_p7, %p229_p6 }
 0x2b2   :  { %p232_p9 = pnand %p231_p8, %p225_p5 }
 0x330   :  { %v139_v33 = vpop.xlane.xlu0 %138 }
 0x331   :  { %v140_v34 = vrot.slane %v139_v33, 4 }
 0x333   :  { %v141_v35 = vadd.f32 %v140_v34, %v139_v33 }
 0x335   :  { %v142_v36 = vrot.slane %v141_v35, 2 }
 0x337   :  { %v143_v37 = vadd.f32 %v142_v36, %v141_v35 }
 0x339   :  { %v144_v38 = vrot.slane %v143_v37, 1 }
 0x33b   :  { %v145_v39 = vadd.f32 %v144_v38, %v143_v37 }
 0x33d   :  { %190 = vpush %v145_v39 }
 0x36e   :  { %s191_s3 = spop %190 }
 0x36f   :  { %v147_v40 = vstv %s191_s3 }
 0x370   :  { %v148_v41 = vsub.f32 0.0, %v147_v40 }
 0x372   :  { %v150_v42 = vmul.f32 0.5, %v148_v41 }
 0x374   :  { %152 = vst.msk [vmem:[#allocation5] sm:$0x1] %vm151_vm5, %v150_v42 }
 0x375   :  { %235 = shalt.err (!%p232_p9)
}
 0x376   :  { %172 = dma.vmem_to_hbm [thread:$0]  %s170_s29, 16, %s309_s5, [#allocation6]  }
 0x377   :  { %244 = dma.done.wait [#allocation4], 32  }
 0x378   :  { %245 = vsyncadd [#allocation4], 4294967264 }
 0x379   :  { %246 = dma.done.wait [#allocation6], 16  }
 0x37a   :  { %247 = vsyncadd [#allocation6], 4294967280 }
 0x37b   :  { %179 = vsyncpa [#allocation4], 1 }
 0x37c   :  { %180 = vsyncpa [#allocation6], 1 }

// kernel: clip_forward.4
= control target key start
LH: loop header
LB: loop body
LE: loop exit
PB: predicated region body
PF: predicated region fallthrough
CT: control target
= control target key end

     0   :  { %vm81_vm0 = vcmask 523264   ;;  %v2169_v56 = vmov 0.0   ;;  %vm419_vm1 = vcmask 261120   ;;  %s2171_s22 = smov 32   ;;  %s2172_s24 = smov 96   ;;  %vm2173_vm2 = vmmov 0   ;;  %s2781_s1 = inlined_call_operand.vmem [shape: f32[64,64], index: 1, kind: input, shape index: {}]   ;;  %s2782_s0 = inlined_call_operand.vmem [shape: f32[32,64], index: 0, kind: input, shape index: {}]   ;;  %s2783_s2 = inlined_call_operand.vmem [shape: f32[32,64], index: 2, kind: input, shape index: {}]   ;;  %s2784_s7 = inlined_call_operand.vmem [shape: f32[64,192], index: 7, kind: input, shape index: {}]   ;;  %s2785_s5 = inlined_call_operand.vmem [shape: f32[1,64], index: 5, kind: input, shape index: {}]   ;;  %s2786_s6 = inlined_call_operand.vmem [shape: f32[1,64], index: 6, kind: input, shape index: {}]   ;;  %s2787_s8 = inlined_call_operand.vmem [shape: f32[1,192], index: 8, kind: input, shape index: {}]   ;;  %s2788_s3 = inlined_call_operand.vmem [shape: f32[32,32], index: 3, kind: input, shape index: {}]   ;;  %s2789_s9 = inlined_call_operand.vmem [shape: f32[2,32,64], index: 9, kind: input, shape index: {}]   ;;  %s2790_s10 = inlined_call_operand.vmem [shape: f32[1,64], index: 10, kind: input, shape index: {}]   ;;  %s2791_s13 = inlined_call_operand.vmem [shape: f32[64,128], index: 13, kind: input, shape index: {}]   ;;  %s2792_s11 = inlined_call_operand.vmem [shape: f32[1,64], index: 11, kind: input, shape index: {}]   ;;  %s2793_s12 = inlined_call_operand.vmem [shape: f32[1,64], index: 12, kind: input, shape index: {}]   ;;  %s2794_s15 = inlined_call_operand.vmem [shape: f32[128,64], index: 15, kind: input, shape index: {}]   ;;  %s2795_s14 = inlined_call_operand.vmem [shape: f32[1,128], index: 14, kind: input, shape index: {}]   ;;  %s2796_s16 = inlined_call_operand.vmem [shape: f32[1,64], index: 16, kind: input, shape index: {}]   ;;  %s2797_s17 = inlined_call_operand.vmem [shape: f32[1,64], index: 17, kind: input, shape index: {}]   ;;  %s2798_s18 = inlined_call_operand.vmem [shape: f32[1,64], index: 18, kind: input, shape index: {}]   ;;  %s2799_s4 = inlined_call_operand.vmem [shape: f32[4,32], index: 4, kind: input, shape index: {}]   ;;  %s2800_s19 = inlined_call_operand.vmem [shape: f32[64,32], index: 19, kind: input, shape index: {}]   ;;  %s2801_s20 = inlined_call_operand.vmem [shape: f32[4,32], index: 20, kind: output, shape index: {}]  }
   0x1   :  { %2806 = sst [smem:[#allocation3_spill]] %s2781_s1  ;;  %362 = vmatprep.mubr.f32.mxu1 %v2169_v56  ;;  %vm1721_vm3 = vcmask 257024  }
   0x2   :  { %2807 = sst [smem:[#allocation4_spill]] %s2782_s0 }
   0x3   :  { %2808 = sst [smem:[#allocation5_spill]] %s2783_s2 }
   0x4   :  { %2809 = sst [smem:[#allocation6_spill]] %s2784_s7 }
   0x5   :  { %2810 = sst [smem:[#allocation7_spill]] %s2785_s5 }
   0x6   :  { %s2811_s23 = sld [smem:[#allocation3_spill]] }
   0x7   :  { %s2812_s28 = sld [smem:[#allocation4_spill]] }
   0x8   :  { %s2813_s21 = sld [smem:[#allocation5_spill]] }
   0x9   :  { %s2814_s27 = sld [smem:[#allocation6_spill]] }
   0xc   :  { %v76_v0 = vld [vmem:[%s2811_s23 + $0x38] sm:$0xff]  ;;  %v75_v1 = vld [vmem:[%s2811_s23 + $0x30] sm:$0xff]  ;;  %v74_v2 = vld [vmem:[%s2811_s23 + $0x28] sm:$0xff] }
   0xd   :  { %1896 = vmatprep.subr.mxu0 %v76_v0  ;;  %v65_v3 = vld [vmem:[%s2812_s28] sm:$0xff]  ;;  %v72_v5 = vld [vmem:[%s2811_s23 + $0x18] sm:$0xff]  ;;  %v71_v6 = vld [vmem:[%s2811_s23 + $0x10] sm:$0xff] }
   0xe   :  { %1897 = vmatpush3.msra.mxu0 %v76_v0  ;;  %1912 = vmatprep.mubr.msk.f32.mxu0 %vm81_vm0, %v65_v3  ;;  %v73_v4 = vld [vmem:[%s2811_s23 + $0x20] sm:$0xff]  ;;  %v70_v7 = vld [vmem:[%s2811_s23 + $0x8] sm:$0xff]  ;;  %v67_v10 = vld [vmem:[%s2812_s28 + $0x10] sm:$0xff] }
   0xf   :  { %1898 = vmatprep.subr.mxu0 %v75_v1  ;;  %v69_v8 = vld [vmem:[%s2811_s23] sm:$0xff]  ;;  %v66_v9 = vld [vmem:[%s2812_s28 + $0x8] sm:$0xff]  ;;  %v68_v11 = vld [vmem:[%s2812_s28 + $0x18] sm:$0xff]  ;;  %s2815_s23 = sld [smem:[#allocation7_spill]] }
  0x10   :  { %1899 = vmatpush3.msra.mxu0 %v75_v1  ;;  %v77_v13 = vld [vmem:[%s2813_s21] sm:$0xff]  ;;  %v78_v14 = vld [vmem:[%s2813_s21 + $0x8] sm:$0xff]  ;;  %v79_v18 = vld [vmem:[%s2813_s21 + $0x10] sm:$0xff] }
  0x11   :  { %1900 = vmatprep.subr.mxu0 %v74_v2  ;;  %v80_v21 = vld [vmem:[%s2813_s21 + $0x18] sm:$0xff]  ;;  %v272_v49 = vld [vmem:[%s2814_s27 + $0x70] sm:$0xff]  ;;  %v271_v50 = vld [vmem:[%s2814_s27 + $0x68] sm:$0xff] }
  0x12   :  { %1901 = vmatpush3.msra.mxu0 %v74_v2  ;;  %v273_v48 = vld [vmem:[%s2814_s27 + $0x78] sm:$0xff]  ;;  %v270_v51 = vld [vmem:[%s2814_s27 + $0x60] sm:$0xff]  ;;  %v268_v53 = vld [vmem:[%s2814_s27 + $0x50] sm:$0xff] }
  0x13   :  { %1902 = vmatprep.subr.mxu0 %v73_v4  ;;  %314 = vmatprep.subr.mxu1 %v273_v48  ;;  %v269_v52 = vld [vmem:[%s2814_s27 + $0x58] sm:$0xff]  ;;  %v267_v54 = vld [vmem:[%s2814_s27 + $0x48] sm:$0xff]  ;;  %v266_v55 = vld [vmem:[%s2814_s27 + $0x40] sm:$0xff] }
  0x14   :  { %1903 = vmatpush3.msra.mxu0 %v73_v4  ;;  %315 = vmatpush1.msra.mxu1 %v272_v49  ;;  %v265_v57 = vld [vmem:[%s2814_s27 + $0x38] sm:$0xff]  ;;  %v264_v58 = vld [vmem:[%s2814_s27 + $0x30] sm:$0xff]  ;;  %v263_v59 = vld [vmem:[%s2814_s27 + $0x28] sm:$0xff] }
  0x15   :  { %1904 = vmatprep.subr.mxu0 %v72_v5  ;;  %316 = vmatprep.subr.mxu1 %v271_v50  ;;  %v262_v60 = vld [vmem:[%s2814_s27 + $0x20] sm:$0xff]  ;;  %v261_v61 = vld [vmem:[%s2814_s27 + $0x18] sm:$0xff]  ;;  %v260_v62 = vld [vmem:[%s2814_s27 + $0x10] sm:$0xff] }
  0x16   :  { %1905 = vmatpush3.msra.mxu0 %v72_v5  ;;  %317 = vmatpush1.msra.mxu1 %v270_v51  ;;  %v259_v63 = vld [vmem:[%s2814_s27 + $0x8] sm:$0xff]  ;;  %v258_v0 = vld [vmem:[%s2814_s27] sm:$0xff] }
  0x17   :  { %1906 = vmatprep.subr.mxu0 %v71_v6  ;;  %318 = vmatprep.subr.mxu1 %v269_v52 }
  0x18   :  { %1907 = vmatpush3.msra.mxu0 %v71_v6  ;;  %319 = vmatpush1.msra.mxu1 %v268_v53 }
  0x19   :  { %1908 = vmatprep.subr.mxu0 %v70_v7  ;;  %320 = vmatprep.subr.mxu1 %v267_v54 }
  0x1a   :  { %1909 = vmatpush3.msra.mxu0 %v70_v7  ;;  %321 = vmatpush1.msra.mxu1 %v266_v55 }
  0x1b   :  { %1910 = vmatprep.subr.mxu0 %v69_v8  ;;  %322 = vmatprep.subr.mxu1 %v265_v57 }
  0x1c   :  { %1911 = vmatpush3.msra.mxu0 %v69_v8  ;;  %323 = vmatpush1.msra.mxu1 %v264_v58 }
  0x1d   :  { %1913 = vmatmul.mubr.msk.f32.vlgmr.msra.gmra.mxu0 %vm81_vm0, %v66_v9  ;;  %324 = vmatprep.subr.mxu1 %v263_v59 }
  0x1e   :  { %1915 = vmatprep.mubr.msk.f32.mxu0 %vm81_vm0, %v67_v10  ;;  %325 = vmatpush1.msra.mxu1 %v262_v60 }
  0x1f   :  { %326 = vmatprep.subr.mxu1 %v261_v61 }
  0x20   :  { %327 = vmatpush1.msra.mxu1 %v260_v62 }
  0x21   :  { %1916 = vmatmul.mubr.msk.f32.gmra.mxu0 %vm81_vm0, %v68_v11  ;;  %328 = vmatprep.subr.mxu1 %v259_v63 }
  0x22   :  { %329 = vmatpush1.msra.mxu1 %v258_v0 }
  0xdd   :  { %v1914_v12 = vpop.f32.mrf.mxu0 }
  0xde   :  { %v2330_v19 = vadd.f32 %v1914_v12, %v78_v14  ;;  %v1731_v14 = vld [vmem:[%s2815_s23] ss:$0 sm:$0xff] }
  0xdf   :  { %v160_v15 = vpop.f32.mrf.mxu0 }
  0xe0   :  { %v2325_v16 = vadd.f32 %v160_v15, %v77_v13  ;;  %v188_v26 = vsel %vm81_vm0, %v2330_v19, 0.0 }
  0xe1   :  { %v1917_v17 = vpop.f32.mrf.mxu0 }
  0xe2   :  { %v185_v20 = vsel %vm81_vm0, %v2325_v16, 0.0  ;;  %v2339_v24 = vadd.f32 %v1917_v17, %v80_v21  ;;  %v1732_v17 = vld [vmem:[%s2786_s6] ss:$0 sm:$0xff] }
  0xe3   :  { %v170_v22 = vpop.f32.mrf.mxu0  ;;  %186 = vadd.xlane.f32.xlu0 %v185_v20 }
  0xe4   :  { %v2337_v23 = vadd.f32 %v170_v22, %v79_v18  ;;  %v194_v27 = vsel %vm81_vm0, %v2339_v24, 0.0 }
  0xe6   :  { %v191_v25 = vsel %vm81_vm0, %v2337_v23, 0.0 }
  0xe7   :  { %192 = vadd.xlane.f32.xlu1 %v191_v25  ;;  %189 = vadd.xlane.f32.xlu0 %v188_v26 }
  0xeb   :  { %195 = vadd.xlane.f32.xlu1 %v194_v27 }
 0x16c   :  { %v187_v28 = vpop.xlane.xlu0 %186 }
 0x16d   :  { %v198_v29 = vmul.f32 0.015625, %v187_v28 }
 0x16f   :  { %v2348_v30 = vsub.f32 %v2325_v16, %v198_v29 }
 0x170   :  { %v193_v31 = vpop.xlane.xlu1 %192  ;;  %v190_v32 = vpop.xlane.xlu0 %189 }
 0x171   :  { %v200_v33 = vmul.f32 0.015625, %v193_v31  ;;  %v199_v34 = vmul.f32 0.015625, %v190_v32  ;;  %v206_v35 = vmul.f32 %v2348_v30, %v2348_v30 }
 0x173   :  { %v2353_v36 = vsub.f32 %v2337_v23, %v200_v33  ;;  %v2356_v37 = vsub.f32 %v2330_v19, %v199_v34  ;;  %v210_v38 = vsel %vm81_vm0, %v206_v35, 0.0  ;;  %v276_v35 = vlaneseq }
 0x174   :  { %v196_v39 = vpop.xlane.xlu1 %195  ;;  %211 = vadd.xlane.f32.xlu0 %v210_v38  ;;  %v274_v38 = vld [vmem:[%s2787_s8] sm:$0x3]  ;;  %s2170_s8 = smov 64  }
 0x175   :  { %v201_v40 = vmul.f32 0.015625, %v196_v39  ;;  %v208_v41 = vmul.f32 %v2353_v36, %v2353_v36  ;;  %v207_v42 = vmul.f32 %v2356_v37, %v2356_v37 }
 0x177   :  { %v2364_v43 = vsub.f32 %v2339_v24, %v201_v40  ;;  %v216_v44 = vsel %vm81_vm0, %v208_v41, 0.0  ;;  %v213_v45 = vsel %vm81_vm0, %v207_v42, 0.0 }
 0x178   :  { %217 = vadd.xlane.f32.xlu0 %v216_v44  ;;  %214 = vadd.xlane.f32.xlu1 %v213_v45 }
 0x179   :  { %v209_v46 = vmul.f32 %v2364_v43, %v2364_v43 }
 0x17b   :  { %v219_v47 = vsel %vm81_vm0, %v209_v46, 0.0 }
 0x17c   :  { %220 = vadd.xlane.f32.xlu1 %v219_v47 }
 0x1fd   :  { %v212_v1 = vpop.xlane.xlu0 %211 }
 0x1fe   :  { %v222_v2 = vmul.f32 0.015625, %v212_v1 }
 0x200   :  { %v226_v3 = vadd.f32 1e-05, %v222_v2 }
 0x201   :  { %v215_v4 = vpop.xlane.xlu1 %214  ;;  %v218_v5 = vpop.xlane.xlu0 %217 }
 0x202   :  { %2097 = vrsqrt.f32 %v226_v3  ;;  %v223_v6 = vmul.f32 0.015625, %v215_v4  ;;  %v224_v7 = vmul.f32 0.015625, %v218_v5 }
 0x204   :  { %v227_v8 = vadd.f32 1e-05, %v223_v6  ;;  %v228_v9 = vadd.f32 1e-05, %v224_v7 }
 0x205   :  { %v221_v10 = vpop.xlane.xlu1 %220 }
 0x206   :  { %2099 = vrsqrt.f32 %v227_v8  ;;  %v225_v11 = vmul.f32 0.015625, %v221_v10 }
 0x207   :  { %2101 = vrsqrt.f32 %v228_v9 }
 0x208   :  { %v229_v12 = vadd.f32 1e-05, %v225_v11 }
 0x20a   :  { %2103 = vrsqrt.f32 %v229_v12 }
 0x20f   :  { %v2098_v13 = vpop.eup %2097 }
 0x210   :  { %v234_v15 = vmul.f32 %v2098_v13, %v2348_v30 }
 0x212   :  { %v244_v18 = vmul.f32 %v1731_v14, %v234_v15  ;;  %v180_v15 = vld [vmem:[%s2788_s3 + $0x8] sm:$0xff] }
 0x213   :  { %v2100_v20 = vpop.eup %2099 }
 0x214   :  { %v2102_v21 = vpop.eup %2101  ;;  %v254_v22 = vadd.f32 %v1732_v17, %v244_v18  ;;  %v235_v25 = vmul.f32 %v2100_v20, %v2356_v37  ;;  %v179_v18 = vld [vmem:[%s2788_s3] sm:$0xff] }
 0x215   :  { %v236_v26 = vmul.f32 %v2102_v21, %v2353_v36  ;;  %v277_v36 = vshrl.u32 %v276_v35, 7 }
 0x216   :  { %1733 = vmatmul.mubr.msk.f32.vlgmr.msra.gmra.mxu1 %vm81_vm0, %v254_v22  ;;  %v245_v27 = vmul.f32 %v1731_v14, %v235_v25  ;;  %v182_v22 = vld [vmem:[%s2788_s3 + $0x18] sm:$0xff] }
 0x217   :  { %v2104_v28 = vpop.eup %2103  ;;  %368 = vmatprep.mubr.f32.mxu1 %v2169_v56  ;;  %v246_v30 = vmul.f32 %v1731_v14, %v236_v26  ;;  %v278_v37 = vsub.s32 0, %v277_v36  ;;  %v282_v39 = vsub.s32 1, %v277_v36 }
 0x218   :  { %v255_v29 = vadd.f32 %v1732_v17, %v245_v27  ;;  %v237_v31 = vmul.f32 %v2104_v28, %v2364_v43 }
 0x219   :  { %v256_v32 = vadd.f32 %v1732_v17, %v246_v30  ;;  %v279_v40 = vrot.slane %v274_v38, %v278_v37  ;;  %v283_v41 = vrot.slane %v274_v38, %v282_v39 }
 0x21a   :  { %1734 = vmatmul.mubr.msk.f32.gmra.mxu1 %vm81_vm0, %v255_v29  ;;  %v247_v33 = vmul.f32 %v1731_v14, %v237_v31  ;;  %v181_v31 = vld [vmem:[%s2788_s3 + $0x10] sm:$0xff] }
 0x21b   :  { %374 = vmatprep.mubr.f32.mxu1 %v2169_v56 }
 0x21c   :  { %v257_v34 = vadd.f32 %v1732_v17, %v247_v33 }
 0x21e   :  { %1735 = vmatmul.mubr.msk.f32.gmra.mxu1 %vm81_vm0, %v256_v32 }
 0x21f   :  { %380 = vmatprep.mubr.f32.mxu1 %v2169_v56 }
 0x222   :  { %1736 = vmatmul.mubr.msk.f32.gmra.mxu1 %vm81_vm0, %v257_v34 }
 0x2d6   :  { %v364_v42 = vpop.f32.mrf.mxu1 }
 0x2d7   :  { %v365_v43 = vadd.f32 %v364_v42, %v279_v40 }
 0x2d8   :  { %v366_v44 = vpop.f32.mrf.mxu1 }
 0x2d9   :  { %v367_v45 = vadd.f32 %v366_v44, %v283_v41  ;;  %v399_v46 = vmul.f32 0.17677669, %v365_v43 }
 0x2da   :  { %v370_v47 = vpop.f32.mrf.mxu1 }
 0x2db   :  { %388 = vst.msk [vmem:[#allocation2 + $0x8] sm:$0xff] %vm81_vm0, %v367_v45  ;;  %v371_v48 = vadd.f32 %v370_v47, %v279_v40  ;;  %1926 = vmatprep.mubr.msk.f32.mxu0 %vm419_vm1, %v399_v46 }
 0x2dc   :  { %v372_v49 = vpop.f32.mrf.mxu1 }
 0x2dd   :  { %v373_v50 = vadd.f32 %v372_v49, %v283_v41  ;;  %v400_v1 = vmul.f32 0.17677669, %v371_v48 }
 0x2de   :  { %v376_v51 = vpop.f32.mrf.mxu1 }
 0x2df   :  { %390 = vst.msk [vmem:[#allocation2 + $0x18] sm:$0xff] %vm81_vm0, %v373_v50  ;;  %v377_v52 = vadd.f32 %v376_v51, %v279_v40 }
 0x2e0   :  { %v378_v53 = vpop.f32.mrf.mxu1 }
 0x2e1   :  { %v379_v54 = vadd.f32 %v378_v53, %v283_v41  ;;  %415 = vrot.lane.b32.xlu1 %v377_v52, %s2170_s8  ;;  %v401_v63 = vmul.f32 0.17677669, %v377_v52 }
 0x2e2   :  { %v382_v55 = vpop.f32.mrf.mxu1  ;;  %v2458_v0 = vld [vmem:[#allocation2 + $0x8] sm:$0xff] }
 0x2e3   :  { %392 = vst.msk [vmem:[#allocation2 + $0x28] sm:$0xff] %vm81_vm0, %v379_v54  ;;  %v383_v57 = vadd.f32 %v382_v55, %v279_v40 }
 0x2e4   :  { %v384_v58 = vpop.f32.mrf.mxu1 }
 0x2e5   :  { %v385_v59 = vadd.f32 %v384_v58, %v283_v41  ;;  %417 = vrot.lane.b32.xlu0 %v383_v57, %s2170_s8  ;;  %413 = vrot.lane.b32.xlu1 %v371_v48, %s2170_s8  ;;  %v402_v2 = vmul.f32 0.17677669, %v383_v57 }
 0x2e6   :  { %v2454_v62 = vld [vmem:[#allocation2 + $0x18] sm:$0xff] }
 0x2e7   :  { %394 = vst.msk [vmem:[#allocation2 + $0x38] sm:$0xff] %vm81_vm0, %v385_v59 }
 0x2e9   :  { %684 = vrot.lane.b32.xlu0 %v383_v57, %s2171_s22  ;;  %411 = vrot.lane.b32.xlu1 %v365_v43, %s2170_s8 }
 0x2ea   :  { %v2449_v61 = vld [vmem:[#allocation2 + $0x28] sm:$0xff] }
 0x2ed   :  { %680 = vrot.lane.b32.xlu0 %v371_v48, %s2171_s22  ;;  %682 = vrot.lane.b32.xlu1 %v377_v52, %s2171_s22 }
 0x2ee   :  { %v2445_v60 = vld [vmem:[#allocation2 + $0x38] sm:$0xff] }
 0x2ef   :  { %1932 = vmatprep.subr.mxu1 %v2445_v60 }
 0x2f0   :  { %1933 = vmatpush3.msra.mxu1 %v2445_v60 }
 0x2f1   :  { %1934 = vmatprep.subr.mxu1 %v2449_v61  ;;  %670 = vrot.lane.b32.xlu0 %v399_v46, %s2172_s24 }
 0x2f2   :  { %1935 = vmatpush3.msra.mxu1 %v2449_v61  ;;  %678 = vrot.lane.b32.xlu1 %v365_v43, %s2171_s22 }
 0x2f3   :  { %1936 = vmatprep.subr.mxu1 %v2454_v62 }
 0x2f4   :  { %1937 = vmatpush3.msra.mxu1 %v2454_v62 }
 0x2f5   :  { %1938 = vmatprep.subr.mxu1 %v2458_v0  ;;  %674 = vrot.lane.b32.xlu0 %v401_v63, %s2172_s24 }
 0x2f6   :  { %1939 = vmatpush3.msra.mxu1 %v2458_v0  ;;  %672 = vrot.lane.b32.xlu1 %v400_v1, %s2172_s24 }
 0x2fa   :  { %676 = vrot.lane.b32.xlu1 %v402_v2, %s2172_s24 }
 0x353   :  { %v416_v3 = vpop.permute.xlu1 %415 }
 0x357   :  { %v418_v4 = vpop.permute.xlu0 %417  ;;  %v414_v5 = vpop.permute.xlu1 %413 }
 0x358   :  { %1918 = vmatprep.subr.msk.mxu0 %vm419_vm1, %v418_v4 }
 0x359   :  { %1919 = vmatpush3.xpose.msk.msra.mxu0 %vm419_vm1, %v418_v4 }
 0x35a   :  { %1920 = vmatprep.subr.msk.mxu0 %vm419_vm1, %v416_v3 }
 0x35b   :  { %v685_v6 = vpop.permute.xlu0 %684  ;;  %v412_v7 = vpop.permute.xlu1 %411 }
 0x35d   :  { %1921 = vmatpush3.xpose.msk.msra.mxu0 %vm419_vm1, %v416_v3 }
 0x35e   :  { %1922 = vmatprep.subr.msk.mxu0 %vm419_vm1, %v414_v5 }
 0x35f   :  { %v681_v8 = vpop.permute.xlu0 %680  ;;  %v683_v9 = vpop.permute.xlu1 %682 }
 0x361   :  { %1923 = vmatpush3.xpose.msk.msra.mxu0 %vm419_vm1, %v414_v5 }
 0x362   :  { %1924 = vmatprep.subr.msk.mxu0 %vm419_vm1, %v412_v7 }
 0x363   :  { %v671_v10 = vpop.permute.xlu0 %670 }
 0x364   :  { %v679_v11 = vpop.permute.xlu1 %678 }
 0x365   :  { %1925 = vmatpush3.xpose.msk.msra.mxu0 %vm419_vm1, %v412_v7 }
 0x366   :  { %1946 = vmatprep.subr.msk.mxu0 %vm419_vm1, %v685_v6 }
 0x367   :  { %v675_v13 = vpop.permute.xlu0 %674 }
 0x368   :  { %1927 = vmatmul.mubr.msk.f32.vlgmr.msra.gmra.mxu0 %vm419_vm1, %v400_v1  ;;  %v673_v12 = vpop.permute.xlu1 %672 }
 0x369   :  { %1929 = vmatprep.mubr.msk.f32.mxu0 %vm419_vm1, %v401_v63  ;;  %1947 = vmatpush3.xpose.msk.msra.mxu0 %vm419_vm1, %v685_v6 }
 0x36a   :  { %1948 = vmatprep.subr.msk.mxu0 %vm419_vm1, %v683_v9 }
 0x36c   :  { %1930 = vmatmul.mubr.msk.f32.gmra.mxu0 %vm419_vm1, %v402_v2  ;;  %v677_v14 = vpop.permute.xlu1 %676 }
 0x36d   :  { %1949 = vmatpush3.xpose.msk.msra.mxu0 %vm419_vm1, %v683_v9  ;;  %1954 = vmatprep.mubr.msk.f32.mxu0 %vm419_vm1, %v671_v10 }
 0x36e   :  { %1950 = vmatprep.subr.msk.mxu0 %vm419_vm1, %v681_v8 }
 0x371   :  { %1951 = vmatpush3.xpose.msk.msra.mxu0 %vm419_vm1, %v681_v8 }
 0x372   :  { %1952 = vmatprep.subr.msk.mxu0 %vm419_vm1, %v679_v11 }
 0x375   :  { %1953 = vmatpush3.xpose.msk.msra.mxu0 %vm419_vm1, %v679_v11 }
 0x378   :  { %1955 = vmatmul.mubr.msk.f32.vlgmr.msra.gmra.mxu0 %vm419_vm1, %v673_v12 }
 0x379   :  { %1957 = vmatprep.mubr.msk.f32.mxu0 %vm419_vm1, %v675_v13 }
 0x37c   :  { %1958 = vmatmul.mubr.msk.f32.gmra.mxu0 %vm419_vm1, %v677_v14 }
 0x428   :  { %v1928_v17 = vpop.f32.mrf.mxu0 }
 0x429   :  { %v512_v20 = vadd.f32 %v1928_v17, %v180_v15 }
 0x42a   :  { %v506_v21 = vpop.f32.mrf.mxu0 }
 0x42b   :  { %v507_v25 = vadd.f32 %v506_v21, %v179_v18  ;;  %v528_v26 = vsel %vm419_vm1, %v512_v20, -inf }
 0x42c   :  { %529 = vmax.xlane.f32.xlu1 %v528_v26  ;;  %v1931_v27 = vpop.f32.mrf.mxu0 }
 0x42d   :  { %v522_v28 = vadd.f32 %v1931_v27, %v182_v22  ;;  %v525_v29 = vsel %vm419_vm1, %v507_v25, -inf }
 0x42e   :  { %526 = vmax.xlane.f32.xlu0 %v525_v29  ;;  %v516_v30 = vpop.f32.mrf.mxu0 }
 0x42f   :  { %v517_v32 = vadd.f32 %v516_v30, %v181_v31  ;;  %v534_v33 = vsel %vm419_vm1, %v522_v28, -inf }
 0x431   :  { %v531_v34 = vsel %vm419_vm1, %v517_v32, -inf }
 0x432   :  { %535 = vmax.xlane.f32.xlu0 %v534_v33  ;;  %v668_v33 = vld [vmem:[%s2789_s9 + $0x10] sm:$0xff] }
 0x436   :  { %532 = vmax.xlane.f32.xlu0 %v531_v34 }
 0x438   :  { %v1956_v35 = vpop.f32.mrf.mxu0 }
 0x439   :  { %v774_v36 = vadd.f32 %v1956_v35, %v180_v15 }
 0x43a   :  { %v768_v37 = vpop.f32.mrf.mxu0 }
 0x43b   :  { %v769_v38 = vadd.f32 %v768_v37, %v179_v18  ;;  %v790_v39 = vsel %vm419_vm1, %v774_v36, -inf }
 0x43c   :  { %791 = vmax.xlane.f32.xlu1 %v790_v39  ;;  %v1959_v40 = vpop.f32.mrf.mxu0 }
 0x43d   :  { %v784_v41 = vadd.f32 %v1959_v40, %v182_v22  ;;  %v787_v42 = vsel %vm419_vm1, %v769_v38, -inf }
 0x43e   :  { %v778_v43 = vpop.f32.mrf.mxu0  ;;  %788 = vmax.xlane.f32.xlu0 %v787_v42 }
 0x43f   :  { %v779_v44 = vadd.f32 %v778_v43, %v181_v31  ;;  %v796_v45 = vsel %vm419_vm1, %v784_v41, -inf }
 0x440   :  { %797 = vmax.xlane.f32.xlu1 %v796_v45 }
 0x441   :  { %v793_v46 = vsel %vm419_vm1, %v779_v44, -inf }
 0x442   :  { %794 = vmax.xlane.f32.xlu0 %v793_v46 }
 0x4b5   :  { %v530_v47 = vpop.xlane.xlu1 %529 }
 0x4b6   :  { %v538_v48 = vsub.f32 %v512_v20, %v530_v47 }
 0x4b7   :  { %v527_v49 = vpop.xlane.xlu0 %526 }
 0x4b8   :  { %v543_v50 = vmul.f32 1.442695, %v538_v48  ;;  %v537_v51 = vsub.f32 %v507_v25, %v527_v49 }
 0x4ba   :  { %2105 = vpow2.f32 %v543_v50  ;;  %v541_v52 = vmul.f32 1.442695, %v537_v51 }
 0x4bb   :  { %v536_v53 = vpop.xlane.xlu0 %535 }
 0x4bc   :  { %2107 = vpow2.f32 %v541_v52  ;;  %v540_v54 = vsub.f32 %v522_v28, %v536_v53 }
 0x4be   :  { %v547_v55 = vmul.f32 1.442695, %v540_v54 }
 0x4bf   :  { %v533_v57 = vpop.xlane.xlu0 %532 }
 0x4c0   :  { %2109 = vpow2.f32 %v547_v55  ;;  %v539_v58 = vsub.f32 %v517_v32, %v533_v57  ;;  %v669_v32 = vld [vmem:[%s2789_s9 + $0x18] sm:$0xff] }
 0x4c1   :  { %1988 = vmatprep.subr.mxu0 %v669_v32 }
 0x4c2   :  { %v545_v59 = vmul.f32 1.442695, %v539_v58  ;;  %1989 = vmatpush3.msra.mxu0 %v669_v32 }
 0x4c3   :  { %1990 = vmatprep.subr.mxu0 %v668_v33 }
 0x4c4   :  { %2111 = vpow2.f32 %v545_v59  ;;  %1991 = vmatpush3.msra.mxu0 %v668_v33  ;;  %v667_v59 = vld [vmem:[%s2789_s9 + $0x8] sm:$0xff] }
 0x4c5   :  { %v792_v63 = vpop.xlane.xlu1 %791  ;;  %1992 = vmatprep.subr.mxu0 %v667_v59 }
 0x4c6   :  { %v800_v1 = vsub.f32 %v774_v36, %v792_v63  ;;  %1993 = vmatpush3.msra.mxu0 %v667_v59  ;;  %v666_v63 = vld [vmem:[%s2789_s9] sm:$0xff]  ;;  %v1235_v59 = vld [vmem:[%s2791_s13 + $0x18] sm:$0xff] }
 0x4c7   :  { %v2106_v2 = vpop.eup %2105  ;;  %v789_v3 = vpop.xlane.xlu0 %788  ;;  %1994 = vmatprep.subr.mxu0 %v666_v63 }
 0x4c8   :  { %v805_v4 = vmul.f32 1.442695, %v800_v1  ;;  %v799_v5 = vsub.f32 %v769_v38, %v789_v3  ;;  %v552_v6 = vsel %vm419_vm1, %v2106_v2, 0.0  ;;  %1995 = vmatpush3.msra.mxu0 %v666_v63  ;;  %v1764_v1 = vld [vmem:[%s2789_s9 + $0x38] sm:$0xff]  ;;  %v1762_v3 = vld [vmem:[%s2789_s9 + $0x28] sm:$0xff]  ;;  %v1234_v63 = vld [vmem:[%s2791_s13 + $0x10] sm:$0xff] }
 0x4c9   :  { %v2108_v7 = vpop.eup %2107  ;;  %553 = vadd.xlane.f32.xlu1 %v552_v6  ;;  %v798_v8 = vpop.xlane.xlu1 %797 }
 0x4ca   :  { %2113 = vpow2.f32 %v805_v4  ;;  %v803_v9 = vmul.f32 1.442695, %v799_v5  ;;  %v802_v10 = vsub.f32 %v784_v41, %v798_v8  ;;  %v549_v11 = vsel %vm419_vm1, %v2108_v7, 0.0  ;;  %v1761_v4 = vld [vmem:[%s2789_s9 + $0x20] sm:$0xff] }
 0x4cb   :  { %550 = vadd.xlane.f32.xlu0 %v549_v11  ;;  %v795_v12 = vpop.xlane.xlu0 %794 }
 0x4cc   :  { %2115 = vpow2.f32 %v803_v9  ;;  %v809_v13 = vmul.f32 1.442695, %v802_v10  ;;  %v801_v14 = vsub.f32 %v779_v44, %v795_v12 }
 0x4cd   :  { %v2110_v15 = vpop.eup %2109 }
 0x4ce   :  { %2117 = vpow2.f32 %v809_v13  ;;  %v807_v17 = vmul.f32 1.442695, %v801_v14  ;;  %v558_v18 = vsel %vm419_vm1, %v2110_v15, 0.0 }
 0x4cf   :  { %559 = vadd.xlane.f32.xlu1 %v558_v18 }
 0x4d0   :  { %2119 = vpow2.f32 %v807_v17 }
 0x4d1   :  { %v2112_v20 = vpop.eup %2111 }
 0x4d2   :  { %v555_v21 = vsel %vm419_vm1, %v2112_v20, 0.0 }
 0x4d3   :  { %556 = vadd.xlane.f32.xlu0 %v555_v21 }
 0x4d7   :  { %v2512_v22 = vpop.eup %2113 }
 0x4d8   :  { %v814_v25 = vsel %vm419_vm1, %v2512_v22, 0.0 }
 0x4d9   :  { %v2116_v26 = vpop.eup %2115  ;;  %815 = vadd.xlane.f32.xlu1 %v814_v25 }
 0x4da   :  { %v811_v27 = vsel %vm419_vm1, %v2116_v26, 0.0 }
 0x4db   :  { %v2517_v28 = vpop.eup %2117  ;;  %812 = vadd.xlane.f32.xlu0 %v811_v27 }
 0x4dc   :  { %v820_v29 = vsel %vm419_vm1, %v2517_v28, 0.0 }
 0x4dd   :  { %v2521_v30 = vpop.eup %2119  ;;  %821 = vadd.xlane.f32.xlu1 %v820_v29 }
 0x4de   :  { %v817_v31 = vsel %vm419_vm1, %v2521_v30, 0.0 }
 0x4df   :  { %818 = vadd.xlane.f32.xlu0 %v817_v31 }
 0x4ee   :  { %839 = vrot.lane.b32.xlu1 %v2449_v61, %s2172_s24 }
 0x4f2   :  { %837 = vrot.lane.b32.xlu1 %v2454_v62, %s2172_s24 }
 0x4f5   :  { %841 = vrot.lane.b32.xlu0 %v2445_v60, %s2172_s24 }
 0x4f6   :  { %835 = vrot.lane.b32.xlu1 %v2458_v0, %s2172_s24 }
 0x552   :  { %v554_v61 = vpop.xlane.xlu1 %553 }
 0x553   :  { %2121 = vrcp.f32 %v554_v61 }
 0x554   :  { %v551_v62 = vpop.xlane.xlu0 %550 }
 0x555   :  { %2123 = vrcp.f32 %v551_v62 }
 0x558   :  { %v560_v60 = vpop.xlane.xlu1 %559 }
 0x559   :  { %2125 = vrcp.f32 %v560_v60 }
 0x55c   :  { %v557_v34 = vpop.xlane.xlu0 %556 }
 0x55d   :  { %2127 = vrcp.f32 %v557_v34 }
 0x560   :  { %v2122_v0 = vpop.eup %2121 }
 0x561   :  { %v566_v38 = vmul.f32 %v2122_v0, %v2106_v2  ;;  %v1763_v2 = vld [vmem:[%s2789_s9 + $0x30] sm:$0xff] }
 0x562   :  { %v2124_v35 = vpop.eup %2123  ;;  %v816_v36 = vpop.xlane.xlu1 %815 }
 0x563   :  { %v565_v37 = vmul.f32 %v2124_v35, %v2108_v7  ;;  %2129 = vrcp.f32 %v816_v36 }
 0x564   :  { %v813_v39 = vpop.xlane.xlu0 %812 }
 0x565   :  { %2131 = vrcp.f32 %v813_v39  ;;  %1940 = vmatprep.mubr.msk.f32.mxu1 %vm419_vm1, %v565_v37 }
 0x566   :  { %v822_v40 = vpop.xlane.xlu1 %821  ;;  %1941 = vmatmul.mubr.msk.f32.vlgmr.msra.gmra.mxu1 %vm419_vm1, %v566_v38  ;;  %v2126_v42 = vpop.eup %2125 }
 0x567   :  { %2133 = vrcp.f32 %v822_v40  ;;  %v568_v47 = vmul.f32 %v2126_v42, %v2110_v15 }
 0x568   :  { %v819_v41 = vpop.xlane.xlu0 %818 }
 0x569   :  { %2135 = vrcp.f32 %v819_v41 }
 0x56a   :  { %v2128_v43 = vpop.eup %2127  ;;  %v840_v44 = vpop.permute.xlu1 %839 }
 0x56b   :  { %v567_v45 = vmul.f32 %v2128_v43, %v2112_v20  ;;  %v1773_v20 = vld [vmem:[%s2790_s10] ss:$0 sm:$0xff] }
 0x56c   :  { %v842_v46 = vpop.permute.xlu0 %841 }
 0x56d   :  { %1943 = vmatprep.mubr.msk.f32.mxu1 %vm419_vm1, %v567_v45  ;;  %1960 = vmatprep.subr.mxu1 %v842_v46 }
 0x56e   :  { %v838_v48 = vpop.permute.xlu1 %837  ;;  %1944 = vmatmul.mubr.msk.f32.gmra.mxu1 %vm419_vm1, %v568_v47 }
 0x56f   :  { %1961 = vmatpush3.msra.mxu1 %v842_v46 }
 0x570   :  { %1962 = vmatprep.subr.mxu1 %v840_v44  ;;  %v2130_v49 = vpop.eup %2129 }
 0x571   :  { %1963 = vmatpush3.msra.mxu1 %v840_v44  ;;  %v828_v53 = vmul.f32 %v2130_v49, %v2512_v22 }
 0x572   :  { %v2132_v50 = vpop.eup %2131  ;;  %1964 = vmatprep.subr.mxu1 %v838_v48  ;;  %v836_v51 = vpop.permute.xlu1 %835 }
 0x573   :  { %1965 = vmatpush3.msra.mxu1 %v838_v48  ;;  %v827_v52 = vmul.f32 %v2132_v50, %v2116_v26 }
 0x574   :  { %1966 = vmatprep.subr.mxu1 %v836_v51  ;;  %v2134_v54 = vpop.eup %2133 }
 0x575   :  { %1967 = vmatpush3.msra.mxu1 %v836_v51  ;;  %1968 = vmatprep.mubr.msk.f32.mxu1 %vm419_vm1, %v827_v52  ;;  %v830_v58 = vmul.f32 %v2134_v54, %v2517_v28  ;;  %v1239_v54 = vld [vmem:[%s2791_s13 + $0x38] sm:$0xff] }
 0x576   :  { %v2136_v55 = vpop.eup %2135  ;;  %1969 = vmatmul.mubr.msk.f32.vlgmr.msra.gmra.mxu1 %vm419_vm1, %v828_v53  ;;  %1974 = vmatprep.subr.mxu1 %v1764_v1 }
 0x577   :  { %v829_v57 = vmul.f32 %v2136_v55, %v2521_v30  ;;  %1975 = vmatpush3.msra.mxu1 %v1764_v1  ;;  %v1238_v55 = vld [vmem:[%s2791_s13 + $0x30] sm:$0xff]  ;;  %v1233_v1 = vld [vmem:[%s2791_s13 + $0x8] sm:$0xff] }
 0x578   :  { %1976 = vmatprep.subr.mxu1 %v1763_v2 }
 0x579   :  { %1971 = vmatprep.mubr.msk.f32.mxu1 %vm419_vm1, %v829_v57  ;;  %1977 = vmatpush3.msra.mxu1 %v1763_v2  ;;  %v1237_v57 = vld [vmem:[%s2791_s13 + $0x28] sm:$0xff]  ;;  %v1232_v2 = vld [vmem:[%s2791_s13] sm:$0xff] }
 0x57a   :  { %1972 = vmatmul.mubr.msk.f32.gmra.mxu1 %vm419_vm1, %v830_v58  ;;  %1978 = vmatprep.subr.mxu1 %v1762_v3  ;;  %v1236_v58 = vld [vmem:[%s2791_s13 + $0x20] sm:$0xff] }
 0x57b   :  { %1979 = vmatpush3.msra.mxu1 %v1762_v3 }
 0x57c   :  { %1980 = vmatprep.subr.mxu1 %v1761_v4 }
 0x57d   :  { %1981 = vmatpush3.msra.mxu1 %v1761_v4 }
 0x57e   :  { %2002 = vmatprep.subr.mxu1 %v1239_v54 }
 0x626   :  { %v1942_v5 = vpop.f32.mrf.mxu1 }
 0x628   :  { %v647_v6 = vpop.f32.mrf.mxu1 }
 0x629   :  { %1996 = vmatprep.mubr.msk.f32.mxu0 %vm419_vm1, %v647_v6 }
 0x62a   :  { %1997 = vmatmul.mubr.msk.f32.vlgmr.msra.gmra.mxu0 %vm419_vm1, %v1942_v5 }
 0x62e   :  { %v1945_v7 = vpop.f32.mrf.mxu1 }
 0x630   :  { %v657_v8 = vpop.f32.mrf.mxu1 }
 0x631   :  { %1999 = vmatprep.mubr.msk.f32.mxu0 %vm419_vm1, %v657_v8 }
 0x632   :  { %2000 = vmatmul.mubr.msk.f32.gmra.mxu0 %vm419_vm1, %v1945_v7 }
 0x636   :  { %v1970_v9 = vpop.f32.mrf.mxu1 }
 0x638   :  { %v925_v10 = vpop.f32.mrf.mxu1 }
 0x639   :  { %1982 = vmatprep.mubr.msk.f32.mxu1 %vm419_vm1, %v925_v10 }
 0x63a   :  { %v1973_v11 = vpop.f32.mrf.mxu1  ;;  %1983 = vmatmul.mubr.msk.f32.vlgmr.msra.gmra.mxu1 %vm419_vm1, %v1970_v9 }
 0x63b   :  { %2003 = vmatpush3.msra.mxu1 %v1239_v54 }
 0x63c   :  { %v935_v12 = vpop.f32.mrf.mxu1  ;;  %2004 = vmatprep.subr.mxu1 %v1238_v55 }
 0x63d   :  { %1985 = vmatprep.mubr.msk.f32.mxu1 %vm419_vm1, %v935_v12  ;;  %2005 = vmatpush3.msra.mxu1 %v1238_v55 }
 0x63e   :  { %1986 = vmatmul.mubr.msk.f32.gmra.mxu1 %vm419_vm1, %v1973_v11  ;;  %2006 = vmatprep.subr.mxu1 %v1237_v57 }
 0x63f   :  { %2007 = vmatpush3.msra.mxu1 %v1237_v57 }
 0x640   :  { %2008 = vmatprep.subr.mxu1 %v1236_v58 }
 0x641   :  { %2009 = vmatpush3.msra.mxu1 %v1236_v58 }
 0x642   :  { %2010 = vmatprep.subr.mxu1 %v1235_v59 }
 0x643   :  { %2011 = vmatpush3.msra.mxu1 %v1235_v59 }
 0x644   :  { %2012 = vmatprep.subr.mxu1 %v1234_v63 }
 0x645   :  { %2013 = vmatpush3.msra.mxu1 %v1234_v63 }
 0x646   :  { %2014 = vmatprep.subr.mxu1 %v1233_v1 }
 0x647   :  { %2015 = vmatpush3.msra.mxu1 %v1233_v1 }
 0x648   :  { %2016 = vmatprep.subr.mxu1 %v1232_v2 }
 0x649   :  { %2017 = vmatpush3.msra.mxu1 %v1232_v2 }
 0x64a   :  { %2062 = vmatprep.subr.mxu1 %v2169_v56 }
 0x6ea   :  { %v1998_v13 = vpop.f32.mrf.mxu0 }
 0x6ec   :  { %v1124_v14 = vpop.f32.mrf.mxu0 }
 0x6f2   :  { %v2001_v18 = vpop.f32.mrf.mxu0 }
 0x6f4   :  { %v1134_v30 = vpop.f32.mrf.mxu0 }
 0x6fa   :  { %v1984_v15 = vpop.f32.mrf.mxu1 }
 0x6fb   :  { %v1130_v17 = vadd.f32 %v1998_v13, %v1984_v15 }
 0x6fc   :  { %v1027_v21 = vpop.f32.mrf.mxu1 }
 0x6fd   :  { %v1144_v22 = vadd.f32 %v1130_v17, %v2330_v19  ;;  %v1125_v25 = vadd.f32 %v1124_v14, %v1027_v21 }
 0x6fe   :  { %v1987_v26 = vpop.f32.mrf.mxu1 }
 0x6ff   :  { %v2580_v27 = vadd.f32 %v1773_v20, %v1144_v22  ;;  %v1143_v28 = vadd.f32 %v1125_v25, %v2325_v16  ;;  %v1140_v29 = vadd.f32 %v2001_v18, %v1987_v26  ;;  %v1774_v18 = vld [vmem:[%s2792_s11] ss:$0 sm:$0xff] }
 0x700   :  { %v1037_v31 = vpop.f32.mrf.mxu1  ;;  %v1775_v25 = vld [vmem:[%s2793_s12] ss:$0 sm:$0xff] }
 0x701   :  { %v2583_v32 = vadd.f32 %v1773_v20, %v1143_v28  ;;  %v1135_v33 = vadd.f32 %v1134_v30, %v1037_v31  ;;  %v1163_v61 = vsel %vm81_vm0, %v2580_v27, 0.0  ;;  %v1146_v62 = vadd.f32 %v1140_v29, %v2339_v24 }
 0x702   :  { %1164 = vadd.xlane.f32.xlu1 %v1163_v61 }
 0x703   :  { %v1145_v19 = vadd.f32 %v1135_v33, %v2337_v23  ;;  %v1160_v60 = vsel %vm81_vm0, %v2583_v32, 0.0  ;;  %v2593_v16 = vadd.f32 %v1773_v20, %v1146_v62 }
 0x704   :  { %1161 = vadd.xlane.f32.xlu0 %v1160_v60 }
 0x705   :  { %v2591_v34 = vadd.f32 %v1773_v20, %v1145_v19  ;;  %v1169_v35 = vsel %vm81_vm0, %v2593_v16, 0.0 }
 0x707   :  { %v1166_v0 = vsel %vm81_vm0, %v2591_v34, 0.0 }
 0x708   :  { %1167 = vadd.xlane.f32.xlu0 %v1166_v0 }
 0x70c   :  { %1170 = vadd.xlane.f32.xlu0 %v1169_v35  ;;  %v1391_v35 = vld [vmem:[%s2794_s15 + $0x78] sm:$0xff] }
 0x70d   :  { %2024 = vmatprep.subr.mxu0 %v1391_v35 }
 0x70e   :  { %2025 = vmatpush3.msra.mxu0 %v1391_v35 }
 0x78b   :  { %v1165_v36 = vpop.xlane.xlu1 %1164 }
 0x78c   :  { %v1173_v24 = vmul.f32 0.015625, %v1165_v36  ;;  %v1390_v36 = vld [vmem:[%s2794_s15 + $0x70] sm:$0xff] }
 0x78d   :  { %v1162_v37 = vpop.xlane.xlu0 %1161  ;;  %2026 = vmatprep.subr.mxu0 %v1390_v36 }
 0x78e   :  { %v2600_v23 = vsub.f32 %v2580_v27, %v1173_v24  ;;  %v1172_v38 = vmul.f32 0.015625, %v1162_v37  ;;  %2027 = vmatpush3.msra.mxu0 %v1390_v36  ;;  %v1389_v24 = vld [vmem:[%s2794_s15 + $0x68] sm:$0xff]  ;;  %v1388_v37 = vld [vmem:[%s2794_s15 + $0x60] sm:$0xff] }
 0x78f   :  { %2028 = vmatprep.subr.mxu0 %v1389_v24 }
 0x790   :  { %v2603_v39 = vsub.f32 %v2583_v32, %v1172_v38  ;;  %v1181_v40 = vmul.f32 %v2600_v23, %v2600_v23  ;;  %2029 = vmatpush3.msra.mxu0 %v1389_v24  ;;  %v1386_v38 = vld [vmem:[%s2794_s15 + $0x50] sm:$0xff] }
 0x791   :  { %v1168_v41 = vpop.xlane.xlu0 %1167  ;;  %2030 = vmatprep.subr.mxu0 %v1388_v37 }
 0x792   :  { %v1174_v42 = vmul.f32 0.015625, %v1168_v41  ;;  %v1187_v43 = vsel %vm81_vm0, %v1181_v40, 0.0  ;;  %v1180_v44 = vmul.f32 %v2603_v39, %v2603_v39  ;;  %2031 = vmatpush3.msra.mxu0 %v1388_v37  ;;  %v1384_v40 = vld [vmem:[%s2794_s15 + $0x40] sm:$0xff]  ;;  %v1383_v41 = vld [vmem:[%s2794_s15 + $0x38] sm:$0xff] }
 0x793   :  { %1188 = vadd.xlane.f32.xlu1 %v1187_v43  ;;  %v1381_v43 = vld [vmem:[%s2794_s15 + $0x28] sm:$0xff] }
 0x794   :  { %v2611_v45 = vsub.f32 %v2591_v34, %v1174_v42  ;;  %v1184_v46 = vsel %vm81_vm0, %v1180_v44, 0.0  ;;  %v1382_v42 = vld [vmem:[%s2794_s15 + $0x30] sm:$0xff]  ;;  %v1380_v44 = vld [vmem:[%s2794_s15 + $0x20] sm:$0xff] }
 0x795   :  { %1185 = vadd.xlane.f32.xlu0 %v1184_v46  ;;  %v1171_v47 = vpop.xlane.xlu0 %1170  ;;  %v1378_v46 = vld [vmem:[%s2794_s15 + $0x10] sm:$0xff] }
 0x796   :  { %v1175_v48 = vmul.f32 0.015625, %v1171_v47  ;;  %v1182_v49 = vmul.f32 %v2611_v45, %v2611_v45  ;;  %v1377_v47 = vld [vmem:[%s2794_s15 + $0x8] sm:$0xff] }
 0x798   :  { %v2617_v50 = vsub.f32 %v2593_v16, %v1175_v48  ;;  %v1190_v51 = vsel %vm81_vm0, %v1182_v49, 0.0  ;;  %v1376_v48 = vld [vmem:[%s2794_s15] sm:$0xff] }
 0x799   :  { %1191 = vadd.xlane.f32.xlu0 %v1190_v51  ;;  %v1776_v49 = vld [vmem:[%s2795_s14] ss:$0 sm:$0xff] }
 0x79a   :  { %v1183_v52 = vmul.f32 %v2617_v50, %v2617_v50 }
 0x79c   :  { %v1193_v53 = vsel %vm81_vm0, %v1183_v52, 0.0 }
 0x79d   :  { %1194 = vadd.xlane.f32.xlu1 %v1193_v53 }
 0x81c   :  { %v1189_v3 = vpop.xlane.xlu1 %1188 }
 0x81d   :  { %v1197_v4 = vmul.f32 0.015625, %v1189_v3 }
 0x81e   :  { %v1186_v5 = vpop.xlane.xlu0 %1185 }
 0x81f   :  { %v1201_v6 = vadd.f32 1e-05, %v1197_v4  ;;  %v1196_v7 = vmul.f32 0.015625, %v1186_v5 }
 0x821   :  { %2137 = vrsqrt.f32 %v1201_v6  ;;  %v1200_v8 = vadd.f32 1e-05, %v1196_v7 }
 0x822   :  { %v1192_v9 = vpop.xlane.xlu0 %1191 }
 0x823   :  { %2139 = vrsqrt.f32 %v1200_v8  ;;  %v1198_v10 = vmul.f32 0.015625, %v1192_v9 }
 0x825   :  { %v1202_v11 = vadd.f32 1e-05, %v1198_v10 }
 0x826   :  { %v1195_v12 = vpop.xlane.xlu1 %1194 }
 0x827   :  { %2141 = vrsqrt.f32 %v1202_v11  ;;  %v1199_v13 = vmul.f32 0.015625, %v1195_v12 }
 0x829   :  { %v1203_v14 = vadd.f32 1e-05, %v1199_v13 }
 0x82b   :  { %2143 = vrsqrt.f32 %v1203_v14 }
 0x82e   :  { %v2138_v15 = vpop.eup %2137 }
 0x82f   :  { %v1209_v17 = vmul.f32 %v2138_v15, %v2600_v23  ;;  %v1387_v23 = vld [vmem:[%s2794_s15 + $0x58] sm:$0xff] }
 0x830   :  { %v2140_v20 = vpop.eup %2139  ;;  %2032 = vmatprep.subr.mxu0 %v1387_v23 }
 0x831   :  { %v1208_v21 = vmul.f32 %v2140_v20, %v2603_v39  ;;  %v1219_v22 = vmul.f32 %v1774_v18, %v1209_v17  ;;  %2033 = vmatpush3.msra.mxu0 %v1387_v23  ;;  %v1385_v39 = vld [vmem:[%s2794_s15 + $0x48] sm:$0xff] }
 0x832   :  { %2034 = vmatprep.subr.mxu0 %v1386_v38 }
 0x833   :  { %v1218_v26 = vmul.f32 %v1774_v18, %v1208_v21  ;;  %v1229_v31 = vadd.f32 %v1775_v25, %v1219_v22  ;;  %2035 = vmatpush3.msra.mxu0 %v1386_v38 }
 0x834   :  { %v2142_v28 = vpop.eup %2141  ;;  %2036 = vmatprep.subr.mxu0 %v1385_v39 }
 0x835   :  { %v1228_v29 = vadd.f32 %v1775_v25, %v1218_v26  ;;  %v1210_v30 = vmul.f32 %v2142_v28, %v2611_v45  ;;  %2037 = vmatpush3.msra.mxu0 %v1385_v39  ;;  %v1379_v45 = vld [vmem:[%s2794_s15 + $0x18] sm:$0xff] }
 0x836   :  { %2038 = vmatprep.subr.mxu0 %v1384_v40 }
 0x837   :  { %2018 = vmatprep.mubr.msk.f32.mxu1 %vm81_vm0, %v1228_v29  ;;  %v1220_v33 = vmul.f32 %v1774_v18, %v1210_v30  ;;  %2039 = vmatpush3.msra.mxu0 %v1384_v40 }
 0x838   :  { %v2144_v61 = vpop.eup %2143  ;;  %2019 = vmatmul.mubr.msk.f32.vlgmr.msra.gmra.mxu1 %vm81_vm0, %v1229_v31  ;;  %2040 = vmatprep.subr.mxu0 %v1383_v41 }
 0x839   :  { %v1230_v62 = vadd.f32 %v1775_v25, %v1220_v33  ;;  %v1211_v19 = vmul.f32 %v2144_v61, %v2617_v50  ;;  %2041 = vmatpush3.msra.mxu0 %v1383_v41 }
 0x83a   :  { %2042 = vmatprep.subr.mxu0 %v1382_v42 }
 0x83b   :  { %2021 = vmatprep.mubr.msk.f32.mxu1 %vm81_vm0, %v1230_v62  ;;  %v1221_v60 = vmul.f32 %v1774_v18, %v1211_v19  ;;  %2043 = vmatpush3.msra.mxu0 %v1382_v42  ;;  %v1785_v62 = vld [vmem:[%s2796_s16] ss:$0 sm:$0xff] }
 0x83c   :  { %2044 = vmatprep.subr.mxu0 %v1381_v43 }
 0x83d   :  { %v1231_v0 = vadd.f32 %v1775_v25, %v1221_v60  ;;  %2045 = vmatpush3.msra.mxu0 %v1381_v43 }
 0x83e   :  { %2046 = vmatprep.subr.mxu0 %v1380_v44 }
 0x83f   :  { %2022 = vmatmul.mubr.msk.f32.gmra.mxu1 %vm81_vm0, %v1231_v0  ;;  %2047 = vmatpush3.msra.mxu0 %v1380_v44 }
 0x840   :  { %2048 = vmatprep.subr.mxu0 %v1379_v45  ;;  %2070 = vmatprep.mubr.msk.f32.mxu1 %vm2173_vm2, %v2169_v56 }
 0x841   :  { %2049 = vmatpush3.msra.mxu0 %v1379_v45 }
 0x842   :  { %2050 = vmatprep.subr.mxu0 %v1378_v46 }
 0x843   :  { %2051 = vmatpush3.msra.mxu0 %v1378_v46 }
 0x844   :  { %2052 = vmatprep.subr.mxu0 %v1377_v47 }
 0x845   :  { %2053 = vmatpush3.msra.mxu0 %v1377_v47 }
 0x846   :  { %2054 = vmatprep.subr.mxu0 %v1376_v48 }
 0x847   :  { %2055 = vmatpush3.msra.mxu0 %v1376_v48 }
 0x8f8   :  { %v2020_v50 = vpop.f32.mrf.mxu1 }
 0x8f9   :  { %v1331_v51 = vadd.f32 %v2020_v50, %v1776_v49 }
 0x8fa   :  { %v1325_v52 = vpop.f32.mrf.mxu1 }
 0x8fb   :  { %v1782_v53 = vmul.f32 -1.702, %v1331_v51  ;;  %v1326_v54 = vadd.f32 %v1776_v49, %v1325_v52 }
 0x8fd   :  { %v1354_v55 = vmul.f32 1.442695, %v1782_v53  ;;  %v1781_v57 = vmul.f32 -1.702, %v1326_v54 }
 0x8ff   :  { %2145 = vpow2.f32 %v1354_v55  ;;  %v1352_v58 = vmul.f32 1.442695, %v1781_v57  ;;  %v2023_v59 = vpop.f32.mrf.mxu1 }
 0x900   :  { %v1341_v63 = vadd.f32 %v2023_v59, %v1776_v49 }
 0x901   :  { %2147 = vpow2.f32 %v1352_v58  ;;  %v1335_v1 = vpop.f32.mrf.mxu1 }
 0x902   :  { %v1784_v2 = vmul.f32 -1.702, %v1341_v63  ;;  %v1336_v3 = vadd.f32 %v1776_v49, %v1335_v1 }
 0x904   :  { %v1358_v4 = vmul.f32 1.442695, %v1784_v2  ;;  %v1783_v5 = vmul.f32 -1.702, %v1336_v3 }
 0x906   :  { %2149 = vpow2.f32 %v1358_v4  ;;  %v1356_v6 = vmul.f32 1.442695, %v1783_v5 }
 0x908   :  { %2151 = vpow2.f32 %v1356_v6 }
 0x90c   :  { %v2146_v7 = vpop.eup %2145 }
 0x90d   :  { %v1361_v8 = vadd.f32 1.0, %v2146_v7 }
 0x90e   :  { %v2148_v9 = vpop.eup %2147 }
 0x90f   :  { %v1360_v10 = vadd.f32 1.0, %v2148_v9  ;;  %2153 = vrcp.f32 %v1361_v8 }
 0x911   :  { %2155 = vrcp.f32 %v1360_v10  ;;  %v1786_v10 = vld [vmem:[%s2797_s17] ss:$0 sm:$0xff] }
 0x913   :  { %v2150_v11 = vpop.eup %2149 }
 0x914   :  { %v1363_v12 = vadd.f32 1.0, %v2150_v11 }
 0x915   :  { %v2152_v13 = vpop.eup %2151 }
 0x916   :  { %v1362_v14 = vadd.f32 1.0, %v2152_v13  ;;  %2157 = vrcp.f32 %v1363_v12  ;;  %v1787_v13 = vld [vmem:[%s2798_s18] ss:$0 sm:$0xff] }
 0x918   :  { %2159 = vrcp.f32 %v1362_v14 }
 0x91c   :  { %v2154_v15 = vpop.eup %2153 }
 0x91d   :  { %v1373_v20 = vmul.f32 %v2154_v15, %v1331_v51 }
 0x91e   :  { %v2156_v17 = vpop.eup %2155 }
 0x91f   :  { %v1372_v18 = vmul.f32 %v2156_v17, %v1326_v54 }
 0x921   :  { %2056 = vmatprep.mubr.f32.mxu0 %v1372_v18 }
 0x922   :  { %2057 = vmatmul.mubr.f32.vlgmr.msra.gmra.mxu0 %v1373_v20 }
 0x923   :  { %v2158_v21 = vpop.eup %2157 }
 0x924   :  { %v1375_v26 = vmul.f32 %v2158_v21, %v1341_v63 }
 0x925   :  { %v2160_v22 = vpop.eup %2159 }
 0x926   :  { %v1374_v25 = vmul.f32 %v2160_v22, %v1336_v3 }
 0x928   :  { %2059 = vmatprep.mubr.f32.mxu0 %v1374_v25 }
 0x929   :  { %2060 = vmatmul.mubr.f32.gmra.mxu0 %v1375_v26 }
 0x9e2   :  { %v2058_v28 = vpop.f32.mrf.mxu0 }
 0x9e3   :  { %v1478_v31 = vadd.f32 %v2058_v28, %v2580_v27 }
 0x9e4   :  { %v1458_v29 = vpop.f32.mrf.mxu0 }
 0x9e5   :  { %v1477_v19 = vadd.f32 %v1458_v29, %v2583_v32  ;;  %v1489_v24 = vadd.f32 %v1785_v62, %v1478_v31 }
 0x9e7   :  { %v1488_v27 = vadd.f32 %v1785_v62, %v1477_v19  ;;  %v1645_v19 = vld [vmem:[%s2800_s19 + $0x28] sm:$0xff] }
 0x9e9   :  { %v2061_v30 = vpop.f32.mrf.mxu0  ;;  %v1494_v23 = vsel %vm81_vm0, %v1488_v27, 0.0 }
 0x9ea   :  { %v1480_v33 = vadd.f32 %v2061_v30, %v2593_v16  ;;  %v1497_v16 = vsel %vm81_vm0, %v1489_v24, 0.0 }
 0x9eb   :  { %v1468_v61 = vpop.f32.mrf.mxu0 }
 0x9ec   :  { %v1479_v60 = vadd.f32 %v1468_v61, %v2591_v34  ;;  %v1491_v0 = vadd.f32 %v1785_v62, %v1480_v33  ;;  %v1566_v33 = vld [vmem:[%s2799_s4] sm:$0xf]  ;;  %v1647_v61 = vld [vmem:[%s2800_s19 + $0x38] sm:$0xff] }
 0x9ee   :  { %v1503_v35 = vsel %vm81_vm0, %v1491_v0, 0.0  ;;  %v1490_v36 = vadd.f32 %v1785_v62, %v1479_v60  ;;  %v1646_v62 = vld [vmem:[%s2800_s19 + $0x30] sm:$0xff]  ;;  %v1644_v60 = vld [vmem:[%s2800_s19 + $0x20] sm:$0xff] }
 0x9ef   :  { %1504 = vadd.xlane.f32.xlu0 %v1503_v35  ;;  %v1642_v35 = vld [vmem:[%s2800_s19 + $0x10] sm:$0xff] }
 0x9f0   :  { %v1500_v37 = vsel %vm81_vm0, %v1490_v36, 0.0 }
 0x9f1   :  { %1501 = vadd.xlane.f32.xlu1 %v1500_v37 }
 0x9f3   :  { %1498 = vadd.xlane.f32.xlu0 %v1497_v16 }
 0x9f5   :  { %1495 = vadd.xlane.f32.xlu1 %v1494_v23 }
 0xa78   :  { %v1505_v38 = vpop.xlane.xlu0 %1504 }
 0xa79   :  { %v1509_v32 = vmul.f32 0.015625, %v1505_v38 }
 0xa7a   :  { %v1502_v39 = vpop.xlane.xlu1 %1501 }
 0xa7b   :  { %v1513_v34 = vsub.f32 %v1491_v0, %v1509_v32  ;;  %v1508_v40 = vmul.f32 0.015625, %v1502_v39  ;;  %v1643_v0 = vld [vmem:[%s2800_s19 + $0x18] sm:$0xff] }
 0xa7c   :  { %v1499_v41 = vpop.xlane.xlu0 %1498 }
 0xa7d   :  { %v1512_v42 = vsub.f32 %v1490_v36, %v1508_v40  ;;  %v1507_v43 = vmul.f32 0.015625, %v1499_v41  ;;  %v1517_v44 = vmul.f32 %v1513_v34, %v1513_v34  ;;  %v1641_v36 = vld [vmem:[%s2800_s19 + $0x8] sm:$0xff] }
 0xa7e   :  { %v1496_v45 = vpop.xlane.xlu1 %1495 }
 0xa7f   :  { %v1511_v46 = vsub.f32 %v1489_v24, %v1507_v43  ;;  %v1506_v47 = vmul.f32 0.015625, %v1496_v45  ;;  %v1527_v48 = vsel %vm81_vm0, %v1517_v44, 0.0  ;;  %v1516_v49 = vmul.f32 %v1512_v42, %v1512_v42  ;;  %v1640_v24 = vld [vmem:[%s2800_s19] sm:$0xff] }
 0xa80   :  { %1528 = vadd.xlane.f32.xlu0 %v1527_v48 }
 0xa81   :  { %v1510_v50 = vsub.f32 %v1488_v27, %v1506_v47  ;;  %v1524_v51 = vsel %vm81_vm0, %v1516_v49, 0.0  ;;  %v1515_v52 = vmul.f32 %v1511_v46, %v1511_v46 }
 0xa82   :  { %1525 = vadd.xlane.f32.xlu1 %v1524_v51 }
 0xa83   :  { %v1521_v53 = vsel %vm81_vm0, %v1515_v52, 0.0  ;;  %v1514_v54 = vmul.f32 %v1510_v50, %v1510_v50 }
 0xa84   :  { %1522 = vadd.xlane.f32.xlu0 %v1521_v53 }
 0xa85   :  { %v1518_v55 = vsel %vm81_vm0, %v1514_v54, 0.0 }
 0xa86   :  { %1519 = vadd.xlane.f32.xlu1 %v1518_v55 }
 0xb09   :  { %v1529_v57 = vpop.xlane.xlu0 %1528 }
 0xb0a   :  { %v1533_v58 = vmul.f32 0.015625, %v1529_v57 }
 0xb0b   :  { %v1526_v59 = vpop.xlane.xlu1 %1525 }
 0xb0c   :  { %v1537_v63 = vadd.f32 1e-05, %v1533_v58  ;;  %v1532_v1 = vmul.f32 0.015625, %v1526_v59 }
 0xb0d   :  { %v1523_v2 = vpop.xlane.xlu0 %1522 }
 0xb0e   :  { %2161 = vrsqrt.f32 %v1537_v63  ;;  %v1536_v3 = vadd.f32 1e-05, %v1532_v1  ;;  %v1531_v4 = vmul.f32 0.015625, %v1523_v2 }
 0xb0f   :  { %v1520_v5 = vpop.xlane.xlu1 %1519 }
 0xb10   :  { %2163 = vrsqrt.f32 %v1536_v3  ;;  %v1535_v6 = vadd.f32 1e-05, %v1531_v4  ;;  %v1530_v7 = vmul.f32 0.015625, %v1520_v5 }
 0xb12   :  { %2165 = vrsqrt.f32 %v1535_v6  ;;  %v1534_v8 = vadd.f32 1e-05, %v1530_v7 }
 0xb14   :  { %2167 = vrsqrt.f32 %v1534_v8 }
 0xb1b   :  { %v2162_v9 = vpop.eup %2161 }
 0xb1c   :  { %v1545_v11 = vmul.f32 %v2162_v9, %v1513_v34 }
 0xb1d   :  { %v2164_v12 = vpop.eup %2163 }
 0xb1e   :  { %v1555_v14 = vmul.f32 %v1786_v10, %v1545_v11  ;;  %v1544_v15 = vmul.f32 %v2164_v12, %v1512_v42 }
 0xb1f   :  { %v2166_v17 = vpop.eup %2165 }
 0xb20   :  { %v1565_v18 = vadd.f32 %v1787_v13, %v1555_v14  ;;  %v1554_v20 = vmul.f32 %v1786_v10, %v1544_v15  ;;  %v1543_v21 = vmul.f32 %v2166_v17, %v1511_v46 }
 0xb21   :  { %v2168_v22 = vpop.eup %2167 }
 0xb22   :  { %2063 = vmatpush3.msra.mxu1 %v1565_v18  ;;  %v1564_v25 = vadd.f32 %v1787_v13, %v1554_v20  ;;  %v1553_v26 = vmul.f32 %v1786_v10, %v1543_v21  ;;  %v1542_v28 = vmul.f32 %v2168_v22, %v1510_v50 }
 0xb23   :  { %2064 = vmatprep.subr.mxu1 %v2169_v56 }
 0xb24   :  { %2065 = vmatpush3.msra.mxu1 %v1564_v25  ;;  %v1563_v29 = vadd.f32 %v1787_v13, %v1553_v26  ;;  %v1552_v30 = vmul.f32 %v1786_v10, %v1542_v28 }
 0xb25   :  { %2066 = vmatprep.subr.mxu1 %v2169_v56 }
 0xb26   :  { %2067 = vmatpush3.msra.mxu1 %v1563_v29  ;;  %v1562_v31 = vadd.f32 %v1787_v13, %v1552_v30 }
 0xb27   :  { %2068 = vmatprep.subr.mxu1 %v2169_v56 }
 0xb28   :  { %2069 = vmatpush3.msra.mxu1 %v1562_v31 }
 0xb29   :  { %2071 = vmatmul.mubr.msk.f32.vlgmr.msra.gmra.mxu1 %vm419_vm1, %v1566_v33  ;;  %2073 = vmatprep.subr.mxu1 %v2169_v56 }
 0xb2a   :  { %2074 = vmatpush3.msra.mxu1 %v1647_v61  ;;  %2089 = vmatprep.mubr.msk.f32.mxu1 %vm2173_vm2, %v2169_v56 }
 0xb2b   :  { %2075 = vmatprep.subr.mxu1 %v2169_v56 }
 0xb2c   :  { %2076 = vmatpush3.msra.mxu1 %v1646_v62 }
 0xb2d   :  { %2077 = vmatprep.subr.mxu1 %v2169_v56 }
 0xb2e   :  { %2078 = vmatpush3.msra.mxu1 %v1645_v19 }
 0xb2f   :  { %2079 = vmatprep.subr.mxu1 %v2169_v56 }
 0xb30   :  { %2080 = vmatpush3.msra.mxu1 %v1644_v60 }
 0xb31   :  { %2081 = vmatprep.subr.mxu1 %v2169_v56 }
 0xb32   :  { %2082 = vmatpush3.msra.mxu1 %v1643_v0 }
 0xb33   :  { %2083 = vmatprep.subr.mxu1 %v2169_v56 }
 0xb34   :  { %2084 = vmatpush3.msra.mxu1 %v1642_v35 }
 0xb35   :  { %2085 = vmatprep.subr.mxu1 %v2169_v56 }
 0xb36   :  { %2086 = vmatpush3.msra.mxu1 %v1641_v36 }
 0xb37   :  { %2087 = vmatprep.subr.mxu1 %v2169_v56 }
 0xb38   :  { %2088 = vmatpush3.msra.mxu1 %v1640_v24 }
 0xbe9   :  { %v1636_v37 = vpop.f32.mrf.mxu1 }
 0xbea   :  { %2090 = vmatmul.mubr.msk.f32.vlgmr.msra.gmra.mxu1 %vm81_vm0, %v1636_v37 }
 0xbeb   :  { %v2072_v27 = vpop.f32.mrf.mxu1 }
 0xcaa   :  { %v1717_v16 = vpop.f32.mrf.mxu1 }
 0xcab   :  { %1722 = vst.msk [vmem:[%s2801_s20] sm:$0xf] %vm1721_vm3, %v1717_v16 }
 0xcac   :  { %v2091_v23 = vpop.f32.mrf.mxu1 }

// kernel: clip_forward.3
= control target key start
LH: loop header
LB: loop body
LE: loop exit
PB: predicated region body
PF: predicated region fallthrough
CT: control target
= control target key end

     0   :  { %vm408_vm0 = vcmask 523264   ;;  %vm412_vm1 = vcmask 517120   ;;  %vm626_vm2 = vcmask 261120   ;;  %vm742_vm3 = vcmask 1041408   ;;  %s2824_s1 = inlined_call_operand.vmem [shape: f32[768,64], index: 1, kind: input, shape index: {}]   ;;  %s2825_s0 = inlined_call_operand.vmem [shape: f32[10,768], index: 0, kind: input, shape index: {}]   ;;  %s2826_s2 = inlined_call_operand.vmem [shape: f32[10,64], index: 2, kind: input, shape index: {}]   ;;  %s2827_s5 = inlined_call_operand.vmem [shape: f32[1,64], index: 5, kind: input, shape index: {}]   ;;  %s2828_s6 = inlined_call_operand.vmem [shape: f32[1,64], index: 6, kind: input, shape index: {}]   ;;  %s2829_s9 = inlined_call_operand.vmem [shape: f32[64,192], index: 9, kind: input, shape index: {}]   ;;  %s2830_s7 = inlined_call_operand.vmem [shape: f32[1,64], index: 7, kind: input, shape index: {}]   ;;  %s2831_s8 = inlined_call_operand.vmem [shape: f32[1,64], index: 8, kind: input, shape index: {}]   ;;  %s2832_s10 = inlined_call_operand.vmem [shape: f32[1,192], index: 10, kind: input, shape index: {}]   ;;  %s2833_s3 = inlined_call_operand.vmem [shape: f32[10,10], index: 3, kind: input, shape index: {}]   ;;  %s2834_s11 = inlined_call_operand.vmem [shape: f32[2,32,64], index: 11, kind: input, shape index: {}]   ;;  %s2835_s12 = inlined_call_operand.vmem [shape: f32[1,64], index: 12, kind: input, shape index: {}]   ;;  %s2836_s15 = inlined_call_operand.vmem [shape: f32[64,128], index: 15, kind: input, shape index: {}]   ;;  %s2837_s13 = inlined_call_operand.vmem [shape: f32[1,64], index: 13, kind: input, shape index: {}]   ;;  %s2838_s14 = inlined_call_operand.vmem [shape: f32[1,64], index: 14, kind: input, shape index: {}]   ;;  %s2839_s17 = inlined_call_operand.vmem [shape: f32[128,64], index: 17, kind: input, shape index: {}]   ;;  %s2840_s16 = inlined_call_operand.vmem [shape: f32[1,128], index: 16, kind: input, shape index: {}]   ;;  %s2841_s18 = inlined_call_operand.vmem [shape: f32[1,64], index: 18, kind: input, shape index: {}]   ;;  %s2842_s4 = inlined_call_operand.vmem [shape: f32[2,10], index: 4, kind: input, shape index: {}]   ;;  %s2843_s21 = inlined_call_operand.vmem [shape: f32[64,32], index: 21, kind: input, shape index: {}]   ;;  %s2844_s19 = inlined_call_operand.vmem [shape: f32[1,64], index: 19, kind: input, shape index: {}]   ;;  %s2845_s20 = inlined_call_operand.vmem [shape: f32[1,64], index: 20, kind: input, shape index: {}]   ;;  %s2846_s22 = inlined_call_operand.vmem [shape: f32[2,32], index: 22, kind: output, shape index: {}]  }
   0x1   :  { %2851 = sst [smem:[#allocation3_spill]] %s2824_s1  ;;  %vm716_vm4 = vcmask 74752   ;;  %vm712_vm5 = vcmask 80896   ;;  %vm2057_vm6 = vmmov 0   ;;  %vm1650_vm7 = vcmask 254976  }
   0x2   :  { %2852 = sst [smem:[#allocation4_spill]] %s2825_s0 }
   0x3   :  { %2853 = sst [smem:[#allocation5_spill]] %s2826_s2 }
   0x4   :  { %2854 = sst [smem:[#allocation6_spill]] %s2827_s5 }
   0x5   :  { %2855 = sst [smem:[#allocation7_spill]] %s2828_s6 }
   0x6   :  { %2856 = sst [smem:[#allocation8_spill]] %s2829_s9 }
   0x7   :  { %2857 = sst [smem:[#allocation9_spill]] %s2830_s7 }
   0x8   :  { %s2858_s29 = sld [smem:[#allocation3_spill]] }
   0x9   :  { %s2859_s25 = sld [smem:[#allocation4_spill]] }
   0xa   :  { %s2860_s28 = sld [smem:[#allocation5_spill]] }
   0xb   :  { %s2861_s23 = sld [smem:[#allocation6_spill]] }
   0xc   :  { %s2862_s24 = sld [smem:[#allocation7_spill]] }
   0xd   :  { %s2863_s2 = sld [smem:[#allocation8_spill]] }
   0xe   :  { %v114_v0 = vld [vmem:[%s2858_s29 + $0xf8] sm:$0xff]  ;;  %v113_v2 = vld [vmem:[%s2858_s29 + $0xf0] sm:$0xff]  ;;  %v112_v6 = vld [vmem:[%s2858_s29 + $0xe8] sm:$0xff]  ;;  %s2864_s30 = sld [smem:[#allocation9_spill]] }
   0xf   :  { %v98_v1 = vld [vmem:[%s2858_s29 + $0x78] sm:$0xff]  ;;  %1698 = vmatprep.subr.mxu0 %v114_v0  ;;  %v97_v4 = vld [vmem:[%s2858_s29 + $0x70] sm:$0xff]  ;;  %v96_v8 = vld [vmem:[%s2858_s29 + $0x68] sm:$0xff] }
  0x10   :  { %v146_v3 = vld [vmem:[%s2858_s29 + $0x1f8] sm:$0xff]  ;;  %1699 = vmatpush3.msra.mxu0 %v98_v1  ;;  %v145_v7 = vld [vmem:[%s2858_s29 + $0x1f0] sm:$0xff]  ;;  %v144_v10 = vld [vmem:[%s2858_s29 + $0x1e8] sm:$0xff] }
  0x11   :  { %v130_v5 = vld [vmem:[%s2858_s29 + $0x178] sm:$0xff]  ;;  %1736 = vmatprep.subr.mxu1 %v146_v3  ;;  %1700 = vmatprep.subr.mxu0 %v113_v2  ;;  %v129_v9 = vld [vmem:[%s2858_s29 + $0x170] sm:$0xff]  ;;  %v111_v11 = vld [vmem:[%s2858_s29 + $0xe0] sm:$0xff] }
  0x12   :  { %1737 = vmatpush3.msra.mxu1 %v130_v5  ;;  %1701 = vmatpush3.msra.mxu0 %v97_v4  ;;  %v128_v12 = vld [vmem:[%s2858_s29 + $0x168] sm:$0xff]  ;;  %v95_v13 = vld [vmem:[%s2858_s29 + $0x60] sm:$0xff]  ;;  %v110_v15 = vld [vmem:[%s2858_s29 + $0xd8] sm:$0xff] }
  0x13   :  { %1738 = vmatprep.subr.mxu1 %v145_v7  ;;  %1702 = vmatprep.subr.mxu0 %v112_v6  ;;  %v143_v14 = vld [vmem:[%s2858_s29 + $0x1e0] sm:$0xff]  ;;  %v94_v17 = vld [vmem:[%s2858_s29 + $0x58] sm:$0xff]  ;;  %v109_v19 = vld [vmem:[%s2858_s29 + $0xd0] sm:$0xff] }
  0x14   :  { %1739 = vmatpush3.msra.mxu1 %v129_v9  ;;  %1703 = vmatpush3.msra.mxu0 %v96_v8  ;;  %v127_v16 = vld [vmem:[%s2858_s29 + $0x160] sm:$0xff]  ;;  %v142_v18 = vld [vmem:[%s2858_s29 + $0x1d8] sm:$0xff]  ;;  %v93_v21 = vld [vmem:[%s2858_s29 + $0x50] sm:$0xff] }
  0x15   :  { %1740 = vmatprep.subr.mxu1 %v144_v10  ;;  %1704 = vmatprep.subr.mxu0 %v111_v11  ;;  %v126_v20 = vld [vmem:[%s2858_s29 + $0x158] sm:$0xff]  ;;  %v141_v22 = vld [vmem:[%s2858_s29 + $0x1d0] sm:$0xff]  ;;  %v108_v23 = vld [vmem:[%s2858_s29 + $0xc8] sm:$0xff] }
  0x16   :  { %1741 = vmatpush3.msra.mxu1 %v128_v12  ;;  %1705 = vmatpush3.msra.mxu0 %v95_v13  ;;  %v125_v24 = vld [vmem:[%s2858_s29 + $0x150] sm:$0xff]  ;;  %v92_v25 = vld [vmem:[%s2858_s29 + $0x48] sm:$0xff]  ;;  %v107_v27 = vld [vmem:[%s2858_s29 + $0xc0] sm:$0xff] }
  0x17   :  { %1742 = vmatprep.subr.mxu1 %v143_v14  ;;  %1706 = vmatprep.subr.mxu0 %v110_v15  ;;  %v140_v26 = vld [vmem:[%s2858_s29 + $0x1c8] sm:$0xff]  ;;  %v91_v29 = vld [vmem:[%s2858_s29 + $0x40] sm:$0xff]  ;;  %v106_v31 = vld [vmem:[%s2858_s29 + $0xb8] sm:$0xff] }
  0x18   :  { %1743 = vmatpush3.msra.mxu1 %v127_v16  ;;  %1707 = vmatpush3.msra.mxu0 %v94_v17  ;;  %v124_v28 = vld [vmem:[%s2858_s29 + $0x148] sm:$0xff]  ;;  %v139_v30 = vld [vmem:[%s2858_s29 + $0x1c0] sm:$0xff]  ;;  %v90_v33 = vld [vmem:[%s2858_s29 + $0x38] sm:$0xff] }
  0x19   :  { %1744 = vmatprep.subr.mxu1 %v142_v18  ;;  %1708 = vmatprep.subr.mxu0 %v109_v19  ;;  %v123_v32 = vld [vmem:[%s2858_s29 + $0x140] sm:$0xff]  ;;  %v138_v34 = vld [vmem:[%s2858_s29 + $0x1b8] sm:$0xff]  ;;  %v105_v35 = vld [vmem:[%s2858_s29 + $0xb0] sm:$0xff] }
  0x1a   :  { %1745 = vmatpush3.msra.mxu1 %v126_v20  ;;  %1709 = vmatpush3.msra.mxu0 %v93_v21  ;;  %v122_v36 = vld [vmem:[%s2858_s29 + $0x138] sm:$0xff]  ;;  %v89_v37 = vld [vmem:[%s2858_s29 + $0x30] sm:$0xff]  ;;  %v104_v39 = vld [vmem:[%s2858_s29 + $0xa8] sm:$0xff] }
  0x1b   :  { %1746 = vmatprep.subr.mxu1 %v141_v22  ;;  %1710 = vmatprep.subr.mxu0 %v108_v23  ;;  %v137_v38 = vld [vmem:[%s2858_s29 + $0x1b0] sm:$0xff]  ;;  %v88_v41 = vld [vmem:[%s2858_s29 + $0x28] sm:$0xff]  ;;  %v103_v43 = vld [vmem:[%s2858_s29 + $0xa0] sm:$0xff] }
  0x1c   :  { %1747 = vmatpush3.msra.mxu1 %v125_v24  ;;  %1711 = vmatpush3.msra.mxu0 %v92_v25  ;;  %v121_v40 = vld [vmem:[%s2858_s29 + $0x130] sm:$0xff]  ;;  %v136_v42 = vld [vmem:[%s2858_s29 + $0x1a8] sm:$0xff]  ;;  %v87_v45 = vld [vmem:[%s2858_s29 + $0x20] sm:$0xff] }
  0x1d   :  { %1748 = vmatprep.subr.mxu1 %v140_v26  ;;  %1712 = vmatprep.subr.mxu0 %v107_v27  ;;  %v120_v44 = vld [vmem:[%s2858_s29 + $0x128] sm:$0xff]  ;;  %v135_v46 = vld [vmem:[%s2858_s29 + $0x1a0] sm:$0xff]  ;;  %v102_v47 = vld [vmem:[%s2858_s29 + $0x98] sm:$0xff] }
  0x1e   :  { %1749 = vmatpush3.msra.mxu1 %v124_v28  ;;  %1713 = vmatpush3.msra.mxu0 %v91_v29  ;;  %v119_v48 = vld [vmem:[%s2858_s29 + $0x120] sm:$0xff]  ;;  %v86_v49 = vld [vmem:[%s2858_s29 + $0x18] sm:$0xff]  ;;  %v101_v51 = vld [vmem:[%s2858_s29 + $0x90] sm:$0xff] }
  0x1f   :  { %1750 = vmatprep.subr.mxu1 %v139_v30  ;;  %1714 = vmatprep.subr.mxu0 %v106_v31  ;;  %v134_v50 = vld [vmem:[%s2858_s29 + $0x198] sm:$0xff]  ;;  %v85_v53 = vld [vmem:[%s2858_s29 + $0x10] sm:$0xff]  ;;  %v100_v55 = vld [vmem:[%s2858_s29 + $0x88] sm:$0xff] }
  0x20   :  { %1751 = vmatpush3.msra.mxu1 %v123_v32  ;;  %1715 = vmatpush3.msra.mxu0 %v90_v33  ;;  %v118_v52 = vld [vmem:[%s2858_s29 + $0x118] sm:$0xff]  ;;  %v133_v54 = vld [vmem:[%s2858_s29 + $0x190] sm:$0xff]  ;;  %v84_v57 = vld [vmem:[%s2858_s29 + $0x8] sm:$0xff] }
  0x21   :  { %1752 = vmatprep.subr.mxu1 %v138_v34  ;;  %1716 = vmatprep.subr.mxu0 %v105_v35  ;;  %v117_v56 = vld [vmem:[%s2858_s29 + $0x110] sm:$0xff]  ;;  %v132_v58 = vld [vmem:[%s2858_s29 + $0x188] sm:$0xff]  ;;  %v99_v59 = vld [vmem:[%s2858_s29 + $0x80] sm:$0xff] }
  0x22   :  { %1753 = vmatpush3.msra.mxu1 %v122_v36  ;;  %1717 = vmatpush3.msra.mxu0 %v89_v37  ;;  %v72_v60 = vld [vmem:[%s2859_s25 + $0x8] sm:$0xff]  ;;  %v83_v61 = vld [vmem:[%s2858_s29] sm:$0xff]  ;;  %v178_v1 = vld [vmem:[%s2858_s29 + $0x2f8] sm:$0xff] }
  0x23   :  { %1754 = vmatprep.subr.mxu1 %v137_v38  ;;  %1718 = vmatprep.subr.mxu0 %v104_v39  ;;  %v116_v62 = vld [vmem:[%s2858_s29 + $0x108] sm:$0xff]  ;;  %v71_v63 = vld [vmem:[%s2859_s25] sm:$0xff]  ;;  %v74_v3 = vld [vmem:[%s2859_s25 + $0x18] sm:$0xff] }
  0x24   :  { %1755 = vmatpush3.msra.mxu1 %v121_v40  ;;  %1719 = vmatpush3.msra.mxu0 %v88_v41  ;;  %v131_v0 = vld [vmem:[%s2858_s29 + $0x180] sm:$0xff]  ;;  %v162_v4 = vld [vmem:[%s2858_s29 + $0x278] sm:$0xff]  ;;  %v73_v5 = vld [vmem:[%s2859_s25 + $0x10] sm:$0xff] }
  0x25   :  { %1756 = vmatprep.subr.mxu1 %v136_v42  ;;  %1720 = vmatprep.subr.mxu0 %v103_v43  ;;  %v115_v2 = vld [vmem:[%s2858_s29 + $0x100] sm:$0xff]  ;;  %v177_v6 = vld [vmem:[%s2858_s29 + $0x2f0] sm:$0xff]  ;;  %v78_v8 = vld [vmem:[%s2859_s25 + $0x38] sm:$0x3] }
  0x26   :  { %1757 = vmatpush3.msra.mxu1 %v120_v44  ;;  %1721 = vmatpush3.msra.mxu0 %v87_v45  ;;  %v161_v7 = vld [vmem:[%s2858_s29 + $0x270] sm:$0xff]  ;;  %v176_v9 = vld [vmem:[%s2858_s29 + $0x2e8] sm:$0xff]  ;;  %v175_v13 = vld [vmem:[%s2858_s29 + $0x2e0] sm:$0xff] }
  0x27   :  { %1758 = vmatprep.subr.mxu1 %v135_v46  ;;  %1722 = vmatprep.subr.mxu0 %v102_v47  ;;  %v77_v10 = vld [vmem:[%s2859_s25 + $0x30] sm:$0x3]  ;;  %v160_v11 = vld [vmem:[%s2858_s29 + $0x268] sm:$0xff]  ;;  %v79_v14 = vld [vmem:[%s2859_s25 + $0x40] sm:$0x3] }
  0x28   :  { %1759 = vmatpush3.msra.mxu1 %v119_v48  ;;  %1723 = vmatpush3.msra.mxu0 %v86_v49  ;;  %v80_v12 = vld [vmem:[%s2859_s25 + $0x48] sm:$0x3]  ;;  %v159_v15 = vld [vmem:[%s2858_s29 + $0x260] sm:$0xff]  ;;  %v174_v17 = vld [vmem:[%s2858_s29 + $0x2d8] sm:$0xff] }
  0x29   :  { %1760 = vmatprep.subr.mxu1 %v134_v50  ;;  %1724 = vmatprep.subr.mxu0 %v101_v51  ;;  %v76_v16 = vld [vmem:[%s2859_s25 + $0x28] sm:$0xff]  ;;  %v158_v18 = vld [vmem:[%s2858_s29 + $0x258] sm:$0xff]  ;;  %v173_v19 = vld [vmem:[%s2858_s29 + $0x2d0] sm:$0xff] }
  0x2a   :  { %1761 = vmatpush3.msra.mxu1 %v118_v52  ;;  %1725 = vmatpush3.msra.mxu0 %v85_v53  ;;  %v157_v20 = vld [vmem:[%s2858_s29 + $0x250] sm:$0xff]  ;;  %v172_v21 = vld [vmem:[%s2858_s29 + $0x2c8] sm:$0xff]  ;;  %v171_v23 = vld [vmem:[%s2858_s29 + $0x2c0] sm:$0xff] }
  0x2b   :  { %1762 = vmatprep.subr.mxu1 %v133_v54  ;;  %1726 = vmatprep.subr.mxu0 %v100_v55  ;;  %v156_v22 = vld [vmem:[%s2858_s29 + $0x248] sm:$0xff]  ;;  %v155_v24 = vld [vmem:[%s2858_s29 + $0x240] sm:$0xff]  ;;  %v170_v25 = vld [vmem:[%s2858_s29 + $0x2b8] sm:$0xff] }
  0x2c   :  { %1763 = vmatpush3.msra.mxu1 %v117_v56  ;;  %1727 = vmatpush3.msra.mxu0 %v84_v57  ;;  %v154_v26 = vld [vmem:[%s2858_s29 + $0x238] sm:$0xff]  ;;  %v169_v27 = vld [vmem:[%s2858_s29 + $0x2b0] sm:$0xff]  ;;  %v168_v29 = vld [vmem:[%s2858_s29 + $0x2a8] sm:$0xff] }
  0x2d   :  { %1764 = vmatprep.subr.mxu1 %v132_v58  ;;  %1728 = vmatprep.subr.mxu0 %v99_v59  ;;  %v153_v28 = vld [vmem:[%s2858_s29 + $0x230] sm:$0xff]  ;;  %v152_v30 = vld [vmem:[%s2858_s29 + $0x228] sm:$0xff]  ;;  %v167_v31 = vld [vmem:[%s2858_s29 + $0x2a0] sm:$0xff] }
  0x2e   :  { %245 = vmatprep.mubr.f32.mxu0 %v72_v60  ;;  %1729 = vmatpush3.msra.mxu0 %v83_v61  ;;  %v151_v32 = vld [vmem:[%s2858_s29 + $0x220] sm:$0xff]  ;;  %v166_v33 = vld [vmem:[%s2858_s29 + $0x298] sm:$0xff]  ;;  %v165_v35 = vld [vmem:[%s2858_s29 + $0x290] sm:$0xff] }
  0x2f   :  { %1765 = vmatpush3.msra.mxu1 %v116_v62  ;;  %246 = vmatmul.mubr.f32.vlgmr.msra.gmra.mxu0 %v71_v63  ;;  %v150_v34 = vld [vmem:[%s2858_s29 + $0x218] sm:$0xff]  ;;  %v149_v36 = vld [vmem:[%s2858_s29 + $0x210] sm:$0xff]  ;;  %v164_v37 = vld [vmem:[%s2858_s29 + $0x288] sm:$0xff] }
  0x30   :  { %1766 = vmatprep.subr.mxu1 %v131_v0  ;;  %1774 = vmatprep.subr.mxu0 %v178_v1  ;;  %v148_v38 = vld [vmem:[%s2858_s29 + $0x208] sm:$0xff]  ;;  %v163_v39 = vld [vmem:[%s2858_s29 + $0x280] sm:$0xff]  ;;  %v82_v42 = vld [vmem:[%s2859_s25 + $0x58] sm:$0x3] }
  0x31   :  { %1767 = vmatpush3.msra.mxu1 %v115_v2  ;;  %320 = vmatprep.mubr.f32.mxu1 %v74_v3  ;;  %v147_v40 = vld [vmem:[%s2858_s29 + $0x200] sm:$0xff]  ;;  %v81_v43 = vld [vmem:[%s2859_s25 + $0x50] sm:$0x3]  ;;  %v180_v56 = vld [vmem:[%s2860_s28 + $0x8] sm:$0x3] }
  0x32   :  { %1775 = vmatpush3.msra.mxu0 %v162_v4  ;;  %321 = vmatmul.mubr.f32.vlgmr.msra.gmra.mxu1 %v73_v5  ;;  %v75_v41 = vld [vmem:[%s2859_s25 + $0x20] sm:$0xff] }
  0x33   :  { %1776 = vmatprep.subr.mxu0 %v177_v6  ;;  %250 = vmatprep.mubr.f32.mxu0 %v78_v8  ;;  %v179_v50 = vld [vmem:[%s2860_s28] sm:$0xff] }
  0x34   :  { %1777 = vmatpush3.msra.mxu0 %v161_v7  ;;  %325 = vmatprep.mubr.f32.mxu1 %v80_v12 }
  0x35   :  { %1778 = vmatprep.subr.mxu0 %v176_v9  ;;  %251 = vmatmul.mubr.f32.gmra.mxu0 %v77_v10 }
  0x36   :  { %1779 = vmatpush3.msra.mxu0 %v160_v11  ;;  %326 = vmatmul.mubr.f32.gmra.mxu1 %v79_v14 }
  0x37   :  { %1780 = vmatprep.subr.mxu0 %v175_v13  ;;  %395 = vmatprep.mubr.f32.mxu0 %v76_v16 }
  0x38   :  { %1781 = vmatpush3.msra.mxu0 %v159_v15 }
  0x39   :  { %1782 = vmatprep.subr.mxu0 %v174_v17 }
  0x3a   :  { %1783 = vmatpush3.msra.mxu0 %v158_v18 }
  0x3b   :  { %1784 = vmatprep.subr.mxu0 %v173_v19 }
  0x3c   :  { %1785 = vmatpush3.msra.mxu0 %v157_v20 }
  0x3d   :  { %1786 = vmatprep.subr.mxu0 %v172_v21 }
  0x3e   :  { %1787 = vmatpush3.msra.mxu0 %v156_v22 }
  0x3f   :  { %1788 = vmatprep.subr.mxu0 %v171_v23 }
  0x40   :  { %1789 = vmatpush3.msra.mxu0 %v155_v24 }
  0x41   :  { %1790 = vmatprep.subr.mxu0 %v170_v25  ;;  %v1656_v25 = vld [vmem:[%s2861_s23] ss:$0 sm:$0xff] }
  0x42   :  { %1791 = vmatpush3.msra.mxu0 %v154_v26 }
  0x43   :  { %1792 = vmatprep.subr.mxu0 %v169_v27  ;;  %v1657_v27 = vld [vmem:[%s2862_s24] ss:$0 sm:$0xff]  ;;  %s2056_s24 = smov 96  }
  0x44   :  { %1793 = vmatpush3.msra.mxu0 %v153_v28 }
  0x45   :  { %1794 = vmatprep.subr.mxu0 %v168_v29 }
  0x46   :  { %1795 = vmatpush3.msra.mxu0 %v152_v30 }
  0x47   :  { %1796 = vmatprep.subr.mxu0 %v167_v31 }
  0x48   :  { %1797 = vmatpush3.msra.mxu0 %v151_v32 }
  0x49   :  { %1798 = vmatprep.subr.mxu0 %v166_v33 }
  0x4a   :  { %1799 = vmatpush3.msra.mxu0 %v150_v34 }
  0x4b   :  { %1800 = vmatprep.subr.mxu0 %v165_v35 }
  0x4c   :  { %1801 = vmatpush3.msra.mxu0 %v149_v36 }
  0x4d   :  { %1802 = vmatprep.subr.mxu0 %v164_v37 }
  0x4e   :  { %1803 = vmatpush3.msra.mxu0 %v148_v38 }
  0x4f   :  { %1804 = vmatprep.subr.mxu0 %v163_v39 }
  0x50   :  { %1805 = vmatpush3.msra.mxu0 %v147_v40 }
  0x51   :  { %396 = vmatmul.mubr.f32.vlgmr.msra.gmra.mxu0 %v75_v41 }
  0x52   :  { %400 = vmatprep.mubr.f32.mxu0 %v82_v42 }
  0x55   :  { %401 = vmatmul.mubr.f32.gmra.mxu0 %v81_v43 }
  0xef   :  { %v1730_v44 = vpop.f32.mrf.mxu0 }
  0xf1   :  { %v1731_v45 = vpop.f32.mrf.mxu0 }
  0xf2   :  { %v1768_v46 = vpop.f32.mrf.mxu1  ;;  %v1732_v49 = vadd.f32 %v1731_v45, %v1730_v44 }
  0xf4   :  { %v1769_v48 = vpop.f32.mrf.mxu1  ;;  %v248_v53 = vadd.f32 %v1732_v49, %v179_v50  ;;  %v511_v49 = vld [vmem:[%s2863_s2 + $0x60] sm:$0xff]  ;;  %v510_v50 = vld [vmem:[%s2863_s2 + $0x58] sm:$0xff] }
  0xf5   :  { %v1733_v47 = vpop.f32.mrf.mxu0  ;;  %v1770_v54 = vadd.f32 %v1769_v48, %v1768_v46  ;;  %v514_v46 = vld [vmem:[%s2863_s2 + $0x78] sm:$0xff]  ;;  %v512_v48 = vld [vmem:[%s2863_s2 + $0x68] sm:$0xff] }
  0xf6   :  { %v1771_v52 = vpop.f32.mrf.mxu1  ;;  %549 = vmatprep.subr.mxu1 %v514_v46 }
  0xf7   :  { %v1734_v51 = vpop.f32.mrf.mxu0  ;;  %v323_v60 = vadd.f32 %v1770_v54, %v248_v53  ;;  %v507_v53 = vld [vmem:[%s2863_s2 + $0x40] sm:$0xff]  ;;  %v506_v54 = vld [vmem:[%s2863_s2 + $0x38] sm:$0xff] }
  0xf8   :  { %v1735_v55 = vadd.f32 %v1734_v51, %v1733_v47  ;;  %v1772_v57 = vpop.f32.mrf.mxu1  ;;  %v513_v47 = vld [vmem:[%s2863_s2 + $0x70] sm:$0xff] }
  0xf9   :  { %v1773_v62 = vadd.f32 %v1772_v57, %v1771_v52  ;;  %550 = vmatpush1.msra.mxu1 %v513_v47  ;;  %v509_v51 = vld [vmem:[%s2863_s2 + $0x50] sm:$0xff]  ;;  %v508_v52 = vld [vmem:[%s2863_s2 + $0x48] sm:$0xff]  ;;  %v503_v57 = vld [vmem:[%s2863_s2 + $0x20] sm:$0xff] }
  0xfa   :  { %v253_v61 = vadd.f32 %v1735_v55, %v180_v56  ;;  %551 = vmatprep.subr.mxu1 %v512_v48  ;;  %v505_v55 = vld [vmem:[%s2863_s2 + $0x30] sm:$0xff]  ;;  %v504_v56 = vld [vmem:[%s2863_s2 + $0x28] sm:$0xff] }
  0xfb   :  { %552 = vmatpush1.msra.mxu1 %v511_v49 }
  0xfc   :  { %v328_v3 = vadd.f32 %v1773_v62, %v253_v61  ;;  %553 = vmatprep.subr.mxu1 %v510_v50  ;;  %v499_v61 = vld [vmem:[%s2863_s2] sm:$0xff]  ;;  %v2053_v62 = vmov 0.0  }
  0xfd   :  { %554 = vmatpush1.msra.mxu1 %v509_v51  ;;  %597 = vmatprep.mubr.f32.mxu1 %v2053_v62 }
  0xfe   :  { %555 = vmatprep.subr.mxu1 %v508_v52 }
  0xff   :  { %556 = vmatpush1.msra.mxu1 %v507_v53 }
 0x100   :  { %557 = vmatprep.subr.mxu1 %v506_v54 }
 0x101   :  { %558 = vmatpush1.msra.mxu1 %v505_v55 }
 0x102   :  { %559 = vmatprep.subr.mxu1 %v504_v56 }
 0x103   :  { %560 = vmatpush1.msra.mxu1 %v503_v57 }
 0x111   :  { %v1806_v58 = vpop.f32.mrf.mxu0 }
 0x113   :  { %v1807_v59 = vpop.f32.mrf.mxu0 }
 0x114   :  { %v1808_v63 = vadd.f32 %v1807_v59, %v1806_v58  ;;  %v502_v58 = vld [vmem:[%s2863_s2 + $0x18] sm:$0xff]  ;;  %v501_v59 = vld [vmem:[%s2863_s2 + $0x10] sm:$0xff] }
 0x115   :  { %v1809_v0 = vpop.f32.mrf.mxu0  ;;  %561 = vmatprep.subr.mxu1 %v502_v58 }
 0x116   :  { %v398_v1 = vadd.f32 %v1808_v63, %v323_v60  ;;  %v500_v60 = vld [vmem:[%s2863_s2 + $0x8] sm:$0xff]  ;;  %562 = vmatpush1.msra.mxu1 %v501_v59 }
 0x117   :  { %v1810_v2 = vpop.f32.mrf.mxu0  ;;  %563 = vmatprep.subr.mxu1 %v500_v60 }
 0x118   :  { %v1811_v4 = vadd.f32 %v1810_v2, %v1809_v0  ;;  %v409_v5 = vsel %vm408_vm0, %v398_v1, 0.0  ;;  %564 = vmatpush1.msra.mxu1 %v499_v61 }
 0x119   :  { %410 = vadd.xlane.f32.xlu0 %v409_v5 }
 0x11a   :  { %v403_v6 = vadd.f32 %v1811_v4, %v328_v3 }
 0x11c   :  { %v413_v7 = vsel %vm412_vm1, %v403_v6, 0.0 }
 0x11d   :  { %414 = vadd.xlane.f32.xlu0 %v413_v7 }
 0x1a2   :  { %v411_v8 = vpop.xlane.xlu0 %410 }
 0x1a3   :  { %v417_v9 = vmul.f32 0.015625, %v411_v8  ;;  %v1659_v8 = vld [vmem:[%s2831_s8] ss:$0 sm:$0xff]  ;;  %s2054_s8 = smov 64  }
 0x1a5   :  { %v419_v10 = vsub.f32 %v398_v1, %v417_v9 }
 0x1a6   :  { %v415_v11 = vpop.xlane.xlu0 %414 }
 0x1a7   :  { %v418_v12 = vmul.f32 0.015625, %v415_v11  ;;  %v421_v13 = vmul.f32 %v419_v10, %v419_v10 }
 0x1a9   :  { %v420_v14 = vsub.f32 %v403_v6, %v418_v12  ;;  %v423_v15 = vsel %vm408_vm0, %v421_v13, 0.0  ;;  %v1658_v6 = vld [vmem:[%s2864_s30] ss:$0 sm:$0xff] }
 0x1aa   :  { %424 = vadd.xlane.f32.xlu1 %v423_v15  ;;  %v517_v15 = vlaneseq }
 0x1ab   :  { %v422_v16 = vmul.f32 %v420_v14, %v420_v14 }
 0x1ad   :  { %v426_v17 = vsel %vm412_vm1, %v422_v16, 0.0  ;;  %v518_v16 = vshrl.u32 %v517_v15, 7 }
 0x1ae   :  { %427 = vadd.xlane.f32.xlu1 %v426_v17 }
 0x1af   :  { %v519_v17 = vsub.s32 0, %v518_v16 }
 0x233   :  { %v425_v18 = vpop.xlane.xlu1 %424 }
 0x234   :  { %v429_v19 = vmul.f32 0.015625, %v425_v18  ;;  %v515_v18 = vld [vmem:[%s2832_s10] sm:$0x3] }
 0x236   :  { %v431_v20 = vadd.f32 1e-05, %v429_v19  ;;  %v523_v19 = vsub.s32 1, %v518_v16 }
 0x237   :  { %v428_v21 = vpop.xlane.xlu1 %427 }
 0x238   :  { %2015 = vrsqrt.f32 %v431_v20  ;;  %v430_v22 = vmul.f32 0.015625, %v428_v21  ;;  %v520_v20 = vrot.slane %v515_v18, %v519_v17  ;;  %v524_v21 = vrot.slane %v515_v18, %v523_v19 }
 0x23a   :  { %v432_v23 = vadd.f32 1e-05, %v430_v22 }
 0x23c   :  { %2017 = vrsqrt.f32 %v432_v23 }
 0x245   :  { %v2016_v24 = vpop.eup %2015 }
 0x246   :  { %v435_v26 = vmul.f32 %v2016_v24, %v419_v10 }
 0x248   :  { %v443_v28 = vmul.f32 %v1656_v25, %v435_v26 }
 0x249   :  { %v2018_v29 = vpop.eup %2017 }
 0x24a   :  { %v2513_v30 = vadd.f32 %v1657_v27, %v443_v28  ;;  %v436_v31 = vmul.f32 %v2018_v29, %v420_v14 }
 0x24c   :  { %v457_v32 = vsel %vm408_vm0, %v2513_v30, 0.0  ;;  %v444_v33 = vmul.f32 %v1656_v25, %v436_v31 }
 0x24d   :  { %458 = vadd.xlane.f32.xlu0 %v457_v32 }
 0x24e   :  { %v2517_v34 = vadd.f32 %v1657_v27, %v444_v33 }
 0x250   :  { %v460_v35 = vsel %vm412_vm1, %v2517_v34, 0.0 }
 0x251   :  { %461 = vadd.xlane.f32.xlu1 %v460_v35 }
 0x2d6   :  { %v459_v36 = vpop.xlane.xlu0 %458 }
 0x2d7   :  { %v463_v37 = vmul.f32 0.015625, %v459_v36 }
 0x2d9   :  { %v465_v38 = vsub.f32 %v2513_v30, %v463_v37 }
 0x2da   :  { %v462_v39 = vpop.xlane.xlu1 %461 }
 0x2db   :  { %v464_v40 = vmul.f32 0.015625, %v462_v39  ;;  %v467_v41 = vmul.f32 %v465_v38, %v465_v38  ;;  %v454_v39 = vld [vmem:[%s2833_s3 + $0x8] sm:$0x3] }
 0x2dd   :  { %v466_v42 = vsub.f32 %v2517_v34, %v464_v40  ;;  %v469_v43 = vsel %vm408_vm0, %v467_v41, 0.0  ;;  %v453_v41 = vld [vmem:[%s2833_s3] sm:$0xff]  ;;  %s2055_s3 = smov 32  }
 0x2de   :  { %470 = vadd.xlane.f32.xlu0 %v469_v43 }
 0x2df   :  { %v468_v44 = vmul.f32 %v466_v42, %v466_v42 }
 0x2e1   :  { %v472_v45 = vsel %vm412_vm1, %v468_v44, 0.0 }
 0x2e2   :  { %473 = vadd.xlane.f32.xlu1 %v472_v45 }
 0x367   :  { %v471_v63 = vpop.xlane.xlu0 %470 }
 0x368   :  { %v475_v0 = vmul.f32 0.015625, %v471_v63 }
 0x36a   :  { %v477_v1 = vadd.f32 1e-05, %v475_v0 }
 0x36b   :  { %v474_v2 = vpop.xlane.xlu1 %473 }
 0x36c   :  { %2019 = vrsqrt.f32 %v477_v1  ;;  %v476_v3 = vmul.f32 0.015625, %v474_v2 }
 0x36e   :  { %v478_v4 = vadd.f32 1e-05, %v476_v3 }
 0x370   :  { %2021 = vrsqrt.f32 %v478_v4 }
 0x379   :  { %v2020_v5 = vpop.eup %2019 }
 0x37a   :  { %v481_v7 = vmul.f32 %v2020_v5, %v465_v38 }
 0x37c   :  { %v489_v9 = vmul.f32 %v1658_v6, %v481_v7 }
 0x37d   :  { %v2022_v10 = vpop.eup %2021 }
 0x37e   :  { %v497_v11 = vadd.f32 %v1659_v8, %v489_v9  ;;  %v482_v12 = vmul.f32 %v2022_v10, %v466_v42 }
 0x380   :  { %1660 = vmatmul.mubr.msk.f32.vlgmr.msra.gmra.mxu1 %vm408_vm0, %v497_v11  ;;  %v490_v13 = vmul.f32 %v1658_v6, %v482_v12 }
 0x381   :  { %603 = vmatprep.mubr.f32.mxu1 %v2053_v62 }
 0x382   :  { %v498_v14 = vadd.f32 %v1659_v8, %v490_v13 }
 0x384   :  { %1661 = vmatmul.mubr.msk.f32.gmra.mxu1 %vm408_vm0, %v498_v14 }
 0x440   :  { %v599_v22 = vpop.f32.mrf.mxu1 }
 0x441   :  { %v600_v23 = vadd.f32 %v599_v22, %v520_v20  ;;  %v1679_v22 = vld [vmem:[%s2834_s11 + $0x38] sm:$0xff] }
 0x442   :  { %v601_v24 = vpop.f32.mrf.mxu1 }
 0x443   :  { %v602_v25 = vadd.f32 %v601_v24, %v524_v21  ;;  %622 = vrot.lane.b32.xlu1 %v600_v23, %s2054_s8  ;;  %v616_v26 = vmul.f32 0.17677669, %v600_v23 }
 0x444   :  { %v605_v27 = vpop.f32.mrf.mxu1 }
 0x445   :  { %611 = vst.msk [vmem:[#allocation2 + $0x8] sm:$0xff] %vm408_vm0, %v602_v25  ;;  %v606_v28 = vadd.f32 %v605_v27, %v520_v20  ;;  %1884 = vmatprep.mubr.msk.f32.mxu1 %vm626_vm2, %v616_v26 }
 0x446   :  { %v607_v29 = vpop.f32.mrf.mxu1 }
 0x447   :  { %612 = vst [vmem:[#allocation2 + $0x10] sm:$0x3] %v606_v28  ;;  %v608_v31 = vadd.f32 %v607_v29, %v524_v21  ;;  %v824_v28 = vld [vmem:[%s2834_s11 + $0x18] sm:$0xff] }
 0x449   :  { %613 = vst.msk [vmem:[#allocation2 + $0x18] sm:$0x3] %vm412_vm1, %v608_v31 }
 0x44c   :  { %v2600_v38 = vld [vmem:[#allocation2 + $0x8] sm:$0xff] }
 0x44e   :  { %v615_v32 = vld [vmem:[#allocation2 + $0x10] sm:$0x3] }
 0x44f   :  { %624 = vrot.lane.b32.xlu0 %v615_v32, %s2054_s8  ;;  %v617_v37 = vmul.f32 0.17677669, %v615_v32 }
 0x450   :  { %v2593_v36 = vld [vmem:[#allocation2 + $0x18] sm:$0x3] }
 0x4b5   :  { %v623_v35 = vpop.permute.xlu1 %622 }
 0x4c1   :  { %v625_v33 = vpop.permute.xlu0 %624 }
 0x4c2   :  { %1880 = vmatprep.subr.msk.mxu1 %vm626_vm2, %v625_v33 }
 0x4c3   :  { %1881 = vmatpush3.xpose.msk.msra.mxu1 %vm626_vm2, %v625_v33 }
 0x4c4   :  { %1882 = vmatprep.subr.msk.mxu1 %vm626_vm2, %v623_v35 }
 0x4c7   :  { %1883 = vmatpush3.xpose.msk.msra.mxu1 %vm626_vm2, %v623_v35  ;;  %v823_v35 = vld [vmem:[%s2834_s11 + $0x10] sm:$0xff] }
 0x4c8   :  { %1887 = vmatprep.subr.msk.mxu1 %vm742_vm3, %v2593_v36 }
 0x4ca   :  { %1885 = vmatmul.mubr.msk.f32.vlgmr.msra.gmra.mxu1 %vm626_vm2, %v617_v37 }
 0x4cb   :  { %1888 = vmatpush3.msk.msra.mxu1 %vm742_vm3, %v2593_v36 }
 0x4cc   :  { %1889 = vmatprep.subr.mxu1 %v2600_v38 }
 0x4cd   :  { %1890 = vmatpush3.msra.mxu1 %v2600_v38 }
 0x58a   :  { %v1886_v40 = vpop.f32.mrf.mxu1 }
 0x58b   :  { %v709_v42 = vadd.f32 %v1886_v40, %v454_v39 }
 0x58c   :  { %v703_v43 = vpop.f32.mrf.mxu1 }
 0x58d   :  { %v704_v44 = vadd.f32 %v703_v43, %v453_v41  ;;  %v717_v45 = vsel %vm716_vm4, %v709_v42, -inf }
 0x58e   :  { %718 = vmax.xlane.f32.xlu0 %v717_v45 }
 0x58f   :  { %v713_v46 = vsel %vm712_vm5, %v704_v44, -inf }
 0x590   :  { %714 = vmax.xlane.f32.xlu1 %v713_v46  ;;  %v1684_v46 = vld [vmem:[%s2835_s12] ss:$0 sm:$0xff] }
 0x617   :  { %v719_v47 = vpop.xlane.xlu0 %718 }
 0x618   :  { %v721_v48 = vsub.f32 %v709_v42, %v719_v47 }
 0x619   :  { %v715_v49 = vpop.xlane.xlu1 %714 }
 0x61a   :  { %v724_v50 = vmul.f32 1.442695, %v721_v48  ;;  %v720_v51 = vsub.f32 %v704_v44, %v715_v49 }
 0x61c   :  { %2023 = vpow2.f32 %v724_v50  ;;  %v722_v52 = vmul.f32 1.442695, %v720_v51 }
 0x61e   :  { %2025 = vpow2.f32 %v722_v52 }
 0x629   :  { %v2024_v53 = vpop.eup %2023 }
 0x62a   :  { %v729_v54 = vsel %vm716_vm4, %v2024_v53, 0.0 }
 0x62b   :  { %v2026_v55 = vpop.eup %2025  ;;  %730 = vadd.xlane.f32.xlu1 %v729_v54 }
 0x62c   :  { %v726_v56 = vsel %vm712_vm5, %v2026_v55, 0.0 }
 0x62d   :  { %727 = vadd.xlane.f32.xlu0 %v726_v56 }
 0x63c   :  { %829 = vrot.lane.b32.xlu1 %v600_v23, %s2055_s3  ;;  %v1678_v23 = vld [vmem:[%s2834_s11 + $0x30] sm:$0xff] }
 0x640   :  { %825 = vrot.lane.b32.xlu1 %v616_v26, %s2056_s24 }
 0x643   :  { %831 = vrot.lane.b32.xlu0 %v615_v32, %s2055_s3 }
 0x644   :  { %827 = vrot.lane.b32.xlu1 %v617_v37, %s2056_s24  ;;  %v821_v37 = vld [vmem:[%s2834_s11] sm:$0xff] }
 0x6b4   :  { %v731_v57 = vpop.xlane.xlu1 %730 }
 0x6b5   :  { %2027 = vrcp.f32 %v731_v57 }
 0x6b6   :  { %v728_v58 = vpop.xlane.xlu0 %727 }
 0x6b7   :  { %2029 = vrcp.f32 %v728_v58 }
 0x6b8   :  { %v830_v60 = vpop.permute.xlu1 %829 }
 0x6ba   :  { %v832_v59 = vpop.permute.xlu0 %831 }
 0x6bb   :  { %1894 = vmatprep.subr.msk.mxu1 %vm626_vm2, %v832_v59 }
 0x6bc   :  { %v826_v2 = vpop.permute.xlu1 %825 }
 0x6c0   :  { %v828_v3 = vpop.permute.xlu1 %827 }
 0x6c2   :  { %v2028_v61 = vpop.eup %2027 }
 0x6c3   :  { %v735_v1 = vmul.f32 %v2028_v61, %v2024_v53 }
 0x6c4   :  { %v2030_v63 = vpop.eup %2029 }
 0x6c5   :  { %v734_v0 = vmul.f32 %v2030_v63, %v2026_v55 }
 0x6c7   :  { %1891 = vmatprep.mubr.msk.f32.mxu1 %vm712_vm5, %v734_v0  ;;  %v1256_v0 = vld [vmem:[%s2836_s15 + $0x38] sm:$0xff] }
 0x6c8   :  { %1892 = vmatmul.mubr.msk.f32.vlgmr.msra.gmra.mxu1 %vm712_vm5, %v735_v1  ;;  %v1255_v1 = vld [vmem:[%s2836_s15 + $0x30] sm:$0xff] }
 0x6c9   :  { %1895 = vmatpush3.xpose.msk.msra.mxu1 %vm626_vm2, %v832_v59  ;;  %1898 = vmatprep.mubr.msk.f32.mxu1 %vm626_vm2, %v826_v2  ;;  %v1254_v2 = vld [vmem:[%s2836_s15 + $0x28] sm:$0xff] }
 0x6ca   :  { %1896 = vmatprep.subr.msk.mxu1 %vm626_vm2, %v830_v60 }
 0x6cd   :  { %1897 = vmatpush3.xpose.msk.msra.mxu1 %vm626_vm2, %v830_v60 }
 0x6ce   :  { %1908 = vmatprep.subr.mxu1 %v1679_v22 }
 0x6d0   :  { %1899 = vmatmul.mubr.msk.f32.vlgmr.msra.gmra.mxu1 %vm626_vm2, %v828_v3  ;;  %v1253_v3 = vld [vmem:[%s2836_s15 + $0x20] sm:$0xff] }
 0x6d1   :  { %1909 = vmatpush3.msra.mxu1 %v1679_v22 }
 0x6d2   :  { %1910 = vmatprep.subr.mxu1 %v1678_v23 }
 0x6d3   :  { %1911 = vmatpush3.msra.mxu1 %v1678_v23 }
 0x788   :  { %v1893_v4 = vpop.f32.mrf.mxu1 }
 0x78a   :  { %v812_v5 = vpop.f32.mrf.mxu1 }
 0x790   :  { %v1900_v6 = vpop.f32.mrf.mxu1 }
 0x791   :  { %v913_v7 = vadd.f32 %v1900_v6, %v454_v39  ;;  %v1676_v39 = vld [vmem:[%s2834_s11 + $0x20] sm:$0xff]  ;;  %v1250_v6 = vld [vmem:[%s2836_s15 + $0x8] sm:$0xff] }
 0x792   :  { %v907_v8 = vpop.f32.mrf.mxu1 }
 0x793   :  { %v908_v9 = vadd.f32 %v907_v8, %v453_v41  ;;  %v919_v10 = vsel %vm716_vm4, %v913_v7, -inf }
 0x794   :  { %920 = vmax.xlane.f32.xlu1 %v919_v10 }
 0x795   :  { %v916_v11 = vsel %vm712_vm5, %v908_v9, -inf }
 0x796   :  { %917 = vmax.xlane.f32.xlu0 %v916_v11 }
 0x7a5   :  { %939 = vrot.lane.b32.xlu1 %v2600_v38, %s2056_s24  ;;  %v1677_v38 = vld [vmem:[%s2834_s11 + $0x28] sm:$0xff] }
 0x7a6   :  { %1912 = vmatprep.subr.mxu1 %v1677_v38 }
 0x7a7   :  { %1913 = vmatpush3.msra.mxu1 %v1677_v38  ;;  %v1364_v38 = vld [vmem:[%s2839_s17 + $0x18] sm:$0xff] }
 0x7a8   :  { %1914 = vmatprep.subr.mxu1 %v1676_v39 }
 0x7a9   :  { %1915 = vmatpush3.msra.mxu1 %v1676_v39  ;;  %v1363_v39 = vld [vmem:[%s2839_s17 + $0x10] sm:$0xff] }
 0x7aa   :  { %1930 = vmatprep.subr.mxu1 %v1256_v0 }
 0x81d   :  { %v921_v12 = vpop.xlane.xlu1 %920 }
 0x81e   :  { %v923_v13 = vsub.f32 %v913_v7, %v921_v12  ;;  %v1249_v7 = vld [vmem:[%s2836_s15] sm:$0xff] }
 0x81f   :  { %v918_v14 = vpop.xlane.xlu0 %917 }
 0x820   :  { %v926_v15 = vmul.f32 1.442695, %v923_v13  ;;  %v922_v16 = vsub.f32 %v908_v9, %v918_v14 }
 0x821   :  { %v940_v27 = vpop.permute.xlu1 %939 }
 0x822   :  { %2031 = vpow2.f32 %v926_v15  ;;  %v924_v17 = vmul.f32 1.442695, %v922_v16  ;;  %v1685_v15 = vld [vmem:[%s2837_s13] ss:$0 sm:$0xff] }
 0x824   :  { %2033 = vpow2.f32 %v924_v17 }
 0x82f   :  { %v2032_v18 = vpop.eup %2031 }
 0x830   :  { %v931_v19 = vsel %vm716_vm4, %v2032_v18, 0.0 }
 0x831   :  { %v2034_v20 = vpop.eup %2033  ;;  %932 = vadd.xlane.f32.xlu0 %v931_v19 }
 0x832   :  { %v928_v21 = vsel %vm712_vm5, %v2034_v20, 0.0 }
 0x835   :  { %929 = vadd.xlane.f32.xlu0 %v928_v21 }
 0x84b   :  { %941 = vrot.lane.b32.xlu0 %v2593_v36, %s2056_s24  ;;  %v822_v36 = vld [vmem:[%s2834_s11 + $0x8] sm:$0xff] }
 0x8ba   :  { %v933_v24 = vpop.xlane.xlu0 %932 }
 0x8bb   :  { %2035 = vrcp.f32 %v933_v24  ;;  %v1376_v24 = vld [vmem:[%s2839_s17 + $0x78] sm:$0xff] }
 0x8be   :  { %v930_v25 = vpop.xlane.xlu0 %929 }
 0x8bf   :  { %2037 = vrcp.f32 %v930_v25  ;;  %v1375_v25 = vld [vmem:[%s2839_s17 + $0x70] sm:$0xff] }
 0x8c2   :  { %v942_v26 = vpop.permute.xlu0 %941 }
 0x8c3   :  { %1901 = vmatprep.subr.msk.mxu0 %vm742_vm3, %v942_v26 }
 0x8c4   :  { %1902 = vmatpush3.msk.msra.mxu0 %vm742_vm3, %v942_v26  ;;  %v1374_v26 = vld [vmem:[%s2839_s17 + $0x68] sm:$0xff] }
 0x8c5   :  { %1903 = vmatprep.subr.mxu0 %v940_v27 }
 0x8c6   :  { %1904 = vmatpush3.msra.mxu0 %v940_v27  ;;  %v1373_v27 = vld [vmem:[%s2839_s17 + $0x60] sm:$0xff] }
 0x8c7   :  { %1919 = vmatprep.subr.mxu0 %v824_v28 }
 0x8c8   :  { %v2036_v29 = vpop.eup %2035 }
 0x8c9   :  { %v937_v33 = vmul.f32 %v2036_v29, %v2032_v18  ;;  %v1371_v29 = vld [vmem:[%s2839_s17 + $0x50] sm:$0xff] }
 0x8cc   :  { %v2038_v31 = vpop.eup %2037 }
 0x8cd   :  { %v936_v32 = vmul.f32 %v2038_v31, %v2034_v20  ;;  %v1686_v20 = vld [vmem:[%s2838_s14] ss:$0 sm:$0xff]  ;;  %v1370_v31 = vld [vmem:[%s2839_s17 + $0x48] sm:$0xff] }
 0x8cf   :  { %1905 = vmatprep.mubr.msk.f32.mxu0 %vm712_vm5, %v936_v32  ;;  %v1369_v32 = vld [vmem:[%s2839_s17 + $0x40] sm:$0xff] }
 0x8d0   :  { %1906 = vmatmul.mubr.msk.f32.vlgmr.msra.gmra.mxu0 %vm712_vm5, %v937_v33  ;;  %v1368_v33 = vld [vmem:[%s2839_s17 + $0x38] sm:$0xff] }
 0x8d1   :  { %1920 = vmatpush3.msra.mxu0 %v824_v28  ;;  %1927 = vmatprep.mubr.msk.f32.mxu0 %vm626_vm2, %v812_v5  ;;  %v1251_v5 = vld [vmem:[%s2836_s15 + $0x10] sm:$0xff]  ;;  %v1372_v28 = vld [vmem:[%s2839_s17 + $0x58] sm:$0xff] }
 0x8d2   :  { %1921 = vmatprep.subr.mxu0 %v823_v35 }
 0x8d3   :  { %1922 = vmatpush3.msra.mxu0 %v823_v35  ;;  %v1367_v35 = vld [vmem:[%s2839_s17 + $0x30] sm:$0xff] }
 0x8d4   :  { %1923 = vmatprep.subr.mxu0 %v822_v36 }
 0x8d5   :  { %1924 = vmatpush3.msra.mxu0 %v822_v36  ;;  %v1366_v36 = vld [vmem:[%s2839_s17 + $0x28] sm:$0xff] }
 0x8d6   :  { %1925 = vmatprep.subr.mxu0 %v821_v37 }
 0x8d7   :  { %1926 = vmatpush3.msra.mxu0 %v821_v37  ;;  %v1365_v37 = vld [vmem:[%s2839_s17 + $0x20] sm:$0xff] }
 0x8d8   :  { %1928 = vmatmul.mubr.msk.f32.vlgmr.msra.gmra.mxu0 %vm626_vm2, %v1893_v4  ;;  %v1252_v4 = vld [vmem:[%s2836_s15 + $0x18] sm:$0xff]  ;;  %1949 = vmatprep.subr.mxu0 %v1376_v24 }
 0x8d9   :  { %1950 = vmatpush3.msra.mxu0 %v1376_v24  ;;  %v1696_v24 = vld [vmem:[%s2845_s20] ss:$0 sm:$0xff] }
 0x8da   :  { %1951 = vmatprep.subr.mxu0 %v1375_v25 }
 0x8db   :  { %1952 = vmatpush3.msra.mxu0 %v1375_v25 }
 0x8dc   :  { %1953 = vmatprep.subr.mxu0 %v1374_v26 }
 0x8dd   :  { %1954 = vmatpush3.msra.mxu0 %v1374_v26 }
 0x8de   :  { %1955 = vmatprep.subr.mxu0 %v1373_v27 }
 0x8df   :  { %1956 = vmatpush3.msra.mxu0 %v1373_v27 }
 0x8e0   :  { %1957 = vmatprep.subr.mxu0 %v1372_v28 }
 0x8e1   :  { %1958 = vmatpush3.msra.mxu0 %v1372_v28 }
 0x8e2   :  { %1959 = vmatprep.subr.mxu0 %v1371_v29 }
 0x8e3   :  { %1960 = vmatpush3.msra.mxu0 %v1371_v29 }
 0x8e4   :  { %1961 = vmatprep.subr.mxu0 %v1370_v31 }
 0x8e5   :  { %1962 = vmatpush3.msra.mxu0 %v1370_v31 }
 0x8e6   :  { %1963 = vmatprep.subr.mxu0 %v1369_v32 }
 0x8e7   :  { %1964 = vmatpush3.msra.mxu0 %v1369_v32 }
 0x8e8   :  { %1965 = vmatprep.subr.mxu0 %v1368_v33 }
 0x8e9   :  { %1966 = vmatpush3.msra.mxu0 %v1368_v33 }
 0x8ea   :  { %1967 = vmatprep.subr.mxu0 %v1367_v35 }
 0x8eb   :  { %1968 = vmatpush3.msra.mxu0 %v1367_v35 }
 0x8ec   :  { %1969 = vmatprep.subr.mxu0 %v1366_v36 }
 0x8ed   :  { %1970 = vmatpush3.msra.mxu0 %v1366_v36 }
 0x8ee   :  { %1971 = vmatprep.subr.mxu0 %v1365_v37 }
 0x8ef   :  { %1972 = vmatpush3.msra.mxu0 %v1365_v37 }
 0x8f0   :  { %1973 = vmatprep.subr.mxu0 %v1364_v38 }
 0x8f1   :  { %1974 = vmatpush3.msra.mxu0 %v1364_v38 }
 0x8f2   :  { %1975 = vmatprep.subr.mxu0 %v1363_v39 }
 0x8f3   :  { %1976 = vmatpush3.msra.mxu0 %v1363_v39 }
 0x990   :  { %v1907_v40 = vpop.f32.mrf.mxu0 }
 0x992   :  { %v1018_v41 = vpop.f32.mrf.mxu0 }
 0x993   :  { %1916 = vmatprep.mubr.msk.f32.mxu1 %vm626_vm2, %v1018_v41  ;;  %v1361_v41 = vld [vmem:[%s2839_s17] sm:$0xff] }
 0x994   :  { %1917 = vmatmul.mubr.msk.f32.vlgmr.msra.gmra.mxu1 %vm626_vm2, %v1907_v40  ;;  %v1362_v40 = vld [vmem:[%s2839_s17 + $0x8] sm:$0xff] }
 0x995   :  { %1931 = vmatpush3.msra.mxu1 %v1256_v0  ;;  %1977 = vmatprep.subr.mxu0 %v1362_v40 }
 0x996   :  { %1932 = vmatprep.subr.mxu1 %v1255_v1  ;;  %1978 = vmatpush3.msra.mxu0 %v1362_v40 }
 0x997   :  { %1933 = vmatpush3.msra.mxu1 %v1255_v1  ;;  %1979 = vmatprep.subr.mxu0 %v1361_v41 }
 0x998   :  { %v1929_v42 = vpop.f32.mrf.mxu0  ;;  %1934 = vmatprep.subr.mxu1 %v1254_v2  ;;  %1980 = vmatpush3.msra.mxu0 %v1361_v41 }
 0x999   :  { %1935 = vmatpush3.msra.mxu1 %v1254_v2 }
 0x99a   :  { %v1185_v45 = vpop.f32.mrf.mxu0  ;;  %1936 = vmatprep.subr.mxu1 %v1253_v3 }
 0x99b   :  { %1937 = vmatpush3.msra.mxu1 %v1253_v3  ;;  %v1463_v3 = vld [vmem:[%s2842_s4] sm:$0x3] }
 0x99c   :  { %1938 = vmatprep.subr.mxu1 %v1252_v4 }
 0x99d   :  { %1939 = vmatpush3.msra.mxu1 %v1252_v4 }
 0x99e   :  { %1940 = vmatprep.subr.mxu1 %v1251_v5 }
 0x99f   :  { %1941 = vmatpush3.msra.mxu1 %v1251_v5 }
 0x9a0   :  { %1942 = vmatprep.subr.mxu1 %v1250_v6 }
 0x9a1   :  { %1943 = vmatpush3.msra.mxu1 %v1250_v6 }
 0x9a2   :  { %1944 = vmatprep.subr.mxu1 %v1249_v7 }
 0x9a3   :  { %1945 = vmatpush3.msra.mxu1 %v1249_v7 }
 0x9a4   :  { %1984 = vmatprep.subr.mxu1 %v2053_v62 }
 0xa54   :  { %v1918_v43 = vpop.f32.mrf.mxu1 }
 0xa55   :  { %v1191_v44 = vadd.f32 %v1929_v42, %v1918_v43  ;;  %v1687_v42 = vld [vmem:[%s2840_s16] ss:$0 sm:$0xff] }
 0xa56   :  { %v1104_v47 = vpop.f32.mrf.mxu1 }
 0xa57   :  { %v1195_v48 = vadd.f32 %v1191_v44, %v2517_v34  ;;  %v1186_v49 = vadd.f32 %v1185_v45, %v1104_v47 }
 0xa59   :  { %v2668_v50 = vadd.f32 %v1684_v46, %v1195_v48  ;;  %v1194_v51 = vadd.f32 %v1186_v49, %v2513_v30 }
 0xa5b   :  { %v2671_v52 = vadd.f32 %v1684_v46, %v1194_v51  ;;  %v1210_v53 = vsel %vm412_vm1, %v2668_v50, 0.0 }
 0xa5c   :  { %1211 = vadd.xlane.f32.xlu0 %v1210_v53 }
 0xa5d   :  { %v1207_v54 = vsel %vm408_vm0, %v2671_v52, 0.0 }
 0xa5e   :  { %1208 = vadd.xlane.f32.xlu1 %v1207_v54 }
 0xae5   :  { %v1212_v55 = vpop.xlane.xlu0 %1211 }
 0xae6   :  { %v1214_v56 = vmul.f32 0.015625, %v1212_v55 }
 0xae7   :  { %v1209_v57 = vpop.xlane.xlu1 %1208 }
 0xae8   :  { %v1216_v34 = vsub.f32 %v2668_v50, %v1214_v56  ;;  %v1213_v58 = vmul.f32 0.015625, %v1209_v57 }
 0xaea   :  { %v1215_v59 = vsub.f32 %v2671_v52, %v1213_v58  ;;  %v1218_v60 = vmul.f32 %v1216_v34, %v1216_v34 }
 0xaec   :  { %v1222_v30 = vsel %vm412_vm1, %v1218_v60, 0.0  ;;  %v1217_v61 = vmul.f32 %v1215_v59, %v1215_v59 }
 0xaed   :  { %1223 = vadd.xlane.f32.xlu1 %v1222_v30  ;;  %v1692_v30 = vld [vmem:[%s2841_s18] ss:$0 sm:$0xff] }
 0xaee   :  { %v1219_v63 = vsel %vm408_vm0, %v1217_v61, 0.0 }
 0xaef   :  { %1220 = vadd.xlane.f32.xlu0 %v1219_v63 }
 0xb76   :  { %v1224_v8 = vpop.xlane.xlu1 %1223 }
 0xb77   :  { %v1226_v9 = vmul.f32 0.015625, %v1224_v8 }
 0xb78   :  { %v1221_v10 = vpop.xlane.xlu0 %1220 }
 0xb79   :  { %v1228_v11 = vadd.f32 1e-05, %v1226_v9  ;;  %v1225_v12 = vmul.f32 0.015625, %v1221_v10  ;;  %v1576_v10 = vld [vmem:[%s2843_s21 + $0x38] sm:$0xff] }
 0xb7b   :  { %2039 = vrsqrt.f32 %v1228_v11  ;;  %v1227_v13 = vadd.f32 1e-05, %v1225_v12  ;;  %v1575_v11 = vld [vmem:[%s2843_s21 + $0x30] sm:$0xff]  ;;  %v1574_v12 = vld [vmem:[%s2843_s21 + $0x28] sm:$0xff] }
 0xb7d   :  { %2041 = vrsqrt.f32 %v1227_v13  ;;  %v1573_v13 = vld [vmem:[%s2843_s21 + $0x20] sm:$0xff] }
 0xb88   :  { %v2040_v14 = vpop.eup %2039 }
 0xb89   :  { %v1232_v16 = vmul.f32 %v2040_v14, %v1216_v34  ;;  %v1572_v14 = vld [vmem:[%s2843_s21 + $0x18] sm:$0xff] }
 0xb8a   :  { %v2042_v17 = vpop.eup %2041 }
 0xb8b   :  { %v1231_v18 = vmul.f32 %v2042_v17, %v1215_v59  ;;  %v1240_v19 = vmul.f32 %v1685_v15, %v1232_v16  ;;  %v1570_v16 = vld [vmem:[%s2843_s21 + $0x8] sm:$0xff]  ;;  %v1569_v17 = vld [vmem:[%s2843_s21] sm:$0xff] }
 0xb8d   :  { %v1239_v21 = vmul.f32 %v1685_v15, %v1231_v18  ;;  %v1248_v23 = vadd.f32 %v1686_v20, %v1240_v19  ;;  %v1571_v15 = vld [vmem:[%s2843_s21 + $0x10] sm:$0xff] }
 0xb8f   :  { %v1247_v22 = vadd.f32 %v1686_v20, %v1239_v21 }
 0xb91   :  { %1946 = vmatprep.mubr.msk.f32.mxu1 %vm408_vm0, %v1247_v22  ;;  %v1695_v22 = vld [vmem:[%s2844_s19] ss:$0 sm:$0xff] }
 0xb92   :  { %1947 = vmatmul.mubr.msk.f32.vlgmr.msra.gmra.mxu1 %vm408_vm0, %v1248_v23 }
 0xb93   :  { %1988 = vmatprep.mubr.msk.f32.mxu1 %vm2057_vm6, %v2053_v62 }
 0xc52   :  { %v1948_v43 = vpop.f32.mrf.mxu1 }
 0xc53   :  { %v1342_v44 = vadd.f32 %v1948_v43, %v1687_v42 }
 0xc54   :  { %v1336_v45 = vpop.f32.mrf.mxu1 }
 0xc55   :  { %v1691_v46 = vmul.f32 -1.702, %v1342_v44  ;;  %v1337_v47 = vadd.f32 %v1687_v42, %v1336_v45 }
 0xc57   :  { %v1351_v48 = vmul.f32 1.442695, %v1691_v46  ;;  %v1690_v49 = vmul.f32 -1.702, %v1337_v47 }
 0xc59   :  { %2043 = vpow2.f32 %v1351_v48  ;;  %v1349_v51 = vmul.f32 1.442695, %v1690_v49 }
 0xc5b   :  { %2045 = vpow2.f32 %v1349_v51 }
 0xc66   :  { %v2044_v53 = vpop.eup %2043 }
 0xc67   :  { %v1354_v54 = vadd.f32 1.0, %v2044_v53 }
 0xc68   :  { %v2046_v55 = vpop.eup %2045 }
 0xc69   :  { %v1353_v56 = vadd.f32 1.0, %v2046_v55  ;;  %2047 = vrcp.f32 %v1354_v54 }
 0xc6b   :  { %2049 = vrcp.f32 %v1353_v56 }
 0xc76   :  { %v2048_v57 = vpop.eup %2047 }
 0xc77   :  { %v1360_v59 = vmul.f32 %v2048_v57, %v1342_v44 }
 0xc78   :  { %v2050_v34 = vpop.eup %2049 }
 0xc79   :  { %v1359_v58 = vmul.f32 %v2050_v34, %v1337_v47 }
 0xc7b   :  { %1981 = vmatprep.mubr.f32.mxu0 %v1359_v58 }
 0xc7c   :  { %1982 = vmatmul.mubr.f32.vlgmr.msra.gmra.mxu0 %v1360_v59 }
 0xd3c   :  { %v1983_v60 = vpop.f32.mrf.mxu0 }
 0xd3d   :  { %v1453_v61 = vadd.f32 %v1983_v60, %v2668_v50 }
 0xd3e   :  { %v1443_v63 = vpop.f32.mrf.mxu0 }
 0xd3f   :  { %v1462_v0 = vadd.f32 %v1692_v30, %v1453_v61  ;;  %v1452_v1 = vadd.f32 %v1443_v63, %v2671_v52 }
 0xd41   :  { %v1461_v2 = vadd.f32 %v1692_v30, %v1452_v1  ;;  %1985 = vmatpush3.msk.msra.mxu1 %vm742_vm3, %v1462_v0 }
 0xd42   :  { %1986 = vmatprep.subr.mxu1 %v2053_v62 }
 0xd43   :  { %1987 = vmatpush3.msra.mxu1 %v1461_v2 }
 0xd44   :  { %1989 = vmatmul.mubr.msk.f32.vlgmr.msra.gmra.mxu1 %vm712_vm5, %v1463_v3  ;;  %1991 = vmatprep.subr.mxu1 %v2053_v62 }
 0xd45   :  { %2007 = vmatprep.mubr.msk.f32.mxu1 %vm2057_vm6, %v2053_v62  ;;  %1992 = vmatpush3.msra.mxu1 %v1576_v10 }
 0xd46   :  { %1993 = vmatprep.subr.mxu1 %v2053_v62 }
 0xd47   :  { %1994 = vmatpush3.msra.mxu1 %v1575_v11 }
 0xd48   :  { %1995 = vmatprep.subr.mxu1 %v2053_v62 }
 0xd49   :  { %1996 = vmatpush3.msra.mxu1 %v1574_v12 }
 0xd4a   :  { %1997 = vmatprep.subr.mxu1 %v2053_v62 }
 0xd4b   :  { %1998 = vmatpush3.msra.mxu1 %v1573_v13 }
 0xd4c   :  { %1999 = vmatprep.subr.mxu1 %v2053_v62 }
 0xd4d   :  { %2000 = vmatpush3.msra.mxu1 %v1572_v14 }
 0xd4e   :  { %2001 = vmatprep.subr.mxu1 %v2053_v62 }
 0xd4f   :  { %2002 = vmatpush3.msra.mxu1 %v1571_v15 }
 0xd50   :  { %2003 = vmatprep.subr.mxu1 %v2053_v62 }
 0xd51   :  { %2004 = vmatpush3.msra.mxu1 %v1570_v16 }
 0xd52   :  { %2005 = vmatprep.subr.mxu1 %v2053_v62 }
 0xd53   :  { %2006 = vmatpush3.msra.mxu1 %v1569_v17 }
 0xe04   :  { %v1536_v50 = vpop.f32.mrf.mxu1 }
 0xe05   :  { %v1542_v52 = vsel %vm412_vm1, %v1536_v50, 0.0 }
 0xe06   :  { %1543 = vadd.xlane.f32.xlu0 %v1542_v52  ;;  %v1990_v4 = vpop.f32.mrf.mxu1 }
 0xe8f   :  { %v1544_v5 = vpop.xlane.xlu0 %1543 }
 0xe90   :  { %v1545_v6 = vmul.f32 0.015625, %v1544_v5 }
 0xe92   :  { %v1546_v7 = vsub.f32 %v1536_v50, %v1545_v6 }
 0xe94   :  { %v1547_v8 = vmul.f32 %v1546_v7, %v1546_v7 }
 0xe96   :  { %v1548_v9 = vsel %vm412_vm1, %v1547_v8, 0.0 }
 0xe97   :  { %1549 = vadd.xlane.f32.xlu1 %v1548_v9 }
 0xf20   :  { %v1550_v18 = vpop.xlane.xlu1 %1549 }
 0xf21   :  { %v1551_v19 = vmul.f32 0.015625, %v1550_v18 }
 0xf23   :  { %v1552_v20 = vadd.f32 1e-05, %v1551_v19 }
 0xf25   :  { %2051 = vrsqrt.f32 %v1552_v20 }
 0xf32   :  { %v2052_v21 = vpop.eup %2051 }
 0xf33   :  { %v1554_v23 = vmul.f32 %v2052_v21, %v1546_v7 }
 0xf35   :  { %v1561_v25 = vmul.f32 %v1695_v22, %v1554_v23 }
 0xf37   :  { %v1568_v26 = vadd.f32 %v1696_v24, %v1561_v25 }
 0xf39   :  { %2008 = vmatmul.mubr.msk.f32.vlgmr.msra.gmra.mxu1 %vm408_vm0, %v1568_v26 }
 0xff9   :  { %v1646_v62 = vpop.f32.mrf.mxu1 }
 0xffa   :  { %1651 = vst.msk [vmem:[%s2846_s22] sm:$0x3] %vm1650_vm7, %v1646_v62 }
 0xffb   :  { %v2009_v27 = vpop.f32.mrf.mxu1 }

</bundles_post_ra>
